<compile_context>
chip_gen: v5e
topology: v5e:2x2
jax: 0.10.0
libtpu: 0.0.40
codegen_flags: <defaults>
</compile_context>

<pallas_src>
import functools

import jax
import jax.numpy as jnp
from jax.experimental import pallas as pl
from jax.experimental.pallas import tpu as pltpu


_TM_CONV = 512                    # row tile for the fused conv+stats kernel
_TM_BN = 2048                     # row tile for the mem-bound BN+ReLU kernel
_TK_MAX = 1024                    # keep K resident (single tile) up to this
_TK_STREAM = 512                  # K tile when the contraction is streamed
_LANE = 128
_VMEM_LIMIT = 48 * 1024 * 1024    # explicit scoped-VMEM budget (fits v7x)


def _round_up(x, m):
    return (x + m - 1) // m * m


def _weight_spec(tk, c_pad, index_map, resident):
    """Weight BlockSpec; single-buffered when fully resident (constant index)."""
    if resident and hasattr(pl, "Buffered"):
        try:
            return pl.BlockSpec((tk, c_pad), index_map,
                                pipeline_mode=pl.Buffered(1))
        except TypeError:   # jax without BlockSpec.pipeline_mode: plain spec
            pass
    return pl.BlockSpec((tk, c_pad), index_map)


# ----------------------------------------------------------------------------
# Kernel A: K-tiled conv-as-matmul fused with per-tile channel sum / sum-sq
# ----------------------------------------------------------------------------
def _conv_stats_kernel(p_ref, w_ref, o_ref, ps_ref, acc_ref):
    k = pl.program_id(1)

    @pl.when(k == 0)
    def _init():
        acc_ref[...] = jnp.zeros_like(acc_ref)

    acc_ref[...] += jnp.dot(p_ref[...], w_ref[...],
                            preferred_element_type=jnp.float32)

    @pl.when(k == pl.num_programs(1) - 1)
    def _finalize():
        acc = acc_ref[...]
        o_ref[...] = acc.astype(o_ref.dtype)            # bf16 intermediate
        s1 = jnp.sum(acc, axis=0, keepdims=True)        # (1, Cpad), f32
        s2 = jnp.sum(acc * acc, axis=0, keepdims=True)  # (1, Cpad), f32
        pad = jnp.zeros((6, acc.shape[1]), jnp.float32)
        # 8-sublane stats block -> one full unmasked store per row tile.
        ps_ref[...] = jnp.concatenate([s1, s2, pad], axis=0)[None]


def conv_stats(patches, w2, *, tm=_TM_CONV, out_dtype=jnp.bfloat16):
    m_pad, k_pad = patches.shape
    c_pad = w2.shape[1]
    tk = k_pad if k_pad <= _TK_MAX else _TK_STREAM
    n_m, n_k = m_pad // tm, k_pad // tk
    return pl.pallas_call(
        _conv_stats_kernel,
        out_shape=(
            jax.ShapeDtypeStruct((m_pad, c_pad), out_dtype),
            jax.ShapeDtypeStruct((n_m, 8, c_pad), jnp.float32),
        ),
        grid=(n_m, n_k),                      # reduction (K) axis last
        in_specs=[
            pl.BlockSpec((tm, tk), lambda i, k: (i, k)),
            _weight_spec(tk, c_pad, lambda i, k: (k, 0), resident=(n_k == 1)),
        ],
        out_specs=(
            pl.BlockSpec((tm, c_pad), lambda i, k: (i, 0)),
            pl.BlockSpec((1, 8, c_pad), lambda i, k: (i, 0, 0)),
        ),
        scratch_shapes=[pltpu.VMEM((tm, c_pad), jnp.float32)],
        compiler_params=pltpu.CompilerParams(
            dimension_semantics=("parallel", "arbitrary"),
            vmem_limit_bytes=_VMEM_LIMIT,
        ),
    )(patches, w2)


# ----------------------------------------------------------------------------
# Kernel B: fused batch-norm affine + ReLU  (y = max(x*scale + shift, 0))
# ----------------------------------------------------------------------------
def _bn_relu_kernel(x_ref, scale_ref, shift_ref, o_ref):
    x = x_ref[...].astype(jnp.float32)        # bf16 load, f32 math
    y = jnp.maximum(x * scale_ref[...] + shift_ref[...], 0.0)
    o_ref[...] = y.astype(o_ref.dtype)


def bn_relu(x, scale, shift, *, tm=_TM_BN):
    m_pad, c_pad = x.shape
    return pl.pallas_call(
        _bn_relu_kernel,
        out_shape=jax.ShapeDtypeStruct((m_pad, c_pad), x.dtype),
        grid=(m_pad // tm,),
        in_specs=[
            pl.BlockSpec((tm, c_pad), lambda i: (i, 0)),
            pl.BlockSpec((1, c_pad), lambda i: (0, 0)),
            pl.BlockSpec((1, c_pad), lambda i: (0, 0)),
        ],
        out_specs=pl.BlockSpec((tm, c_pad), lambda i: (i, 0)),
        input_output_aliases={0: 0},   # write BN+ReLU in place of the conv buf
        compiler_params=pltpu.CompilerParams(
            dimension_semantics=("parallel",),
            vmem_limit_bytes=_VMEM_LIMIT,
        ),
    )(x, scale, shift)


# ----------------------------------------------------------------------------
# Glue: im2col, weight reshape, full Conv3DBlock forward
# ----------------------------------------------------------------------------
def _im2col_3d(x_ndhwc, k):
    """x: (N, D, H, W, C) -> patches (N*D*H*W, k^3*C), 'same' padding."""
    n, d, h, w, c = x_ndhwc.shape
    p = (k - 1) // 2
    xp = jnp.pad(x_ndhwc, ((0, 0), (p, p), (p, p), (p, p), (0, 0)))
    cols = []
    for kd in range(k):
        for kh in range(k):
            for kw in range(k):
                cols.append(xp[:, kd:kd + d, kh:kh + h, kw:kw + w, :])
    patches = jnp.concatenate(cols, axis=-1)          # (N, D, H, W, k^3*C)
    return patches.reshape(n * d * h * w, k * k * k * c)


@functools.partial(jax.jit, static_argnames=("eps", "use_bf16"))
def conv3d_block_forward(x_ncdhw, w, b, gamma, beta, eps=1e-5, use_bf16=True):
    """Conv3d + BatchNorm3d(training-mode batch stats) + ReLU.

    x_ncdhw: (N, Cin, D, H, W)   w: (Cout, Cin, k, k, k)   b,gamma,beta: (Cout,)
    returns: (N, Cout, D, H, W) float32
    """
    n, cin, d, h, wd = x_ncdhw.shape
    cout, _, k, _, _ = w.shape
    # Training-mode BN subtracts the per-channel batch mean, so a pre-BN
    # per-channel bias cancels exactly; intentionally not added.
    del b

    m = n * d * h * wd
    kk = k * k * k * cin
    # M padded to a multiple of 2048: conv row grid (tm=512) even for the two
    # v7x TensorCores, BN tile (2048) divides exactly.
    m_pad = _round_up(m, _TM_BN)
    k_pad = _round_up(kk, _LANE)
    if k_pad > _TK_MAX:                       # streamed K: align to the K tile
        k_pad = _round_up(kk, _TK_STREAM)
    # Lane-dense output channels; 256-wide MXU feeds on v6e/v7x when possible.
    c_pad = _round_up(cout, 256 if cout >= 256 else _LANE)

    mm_dtype = jnp.bfloat16 if use_bf16 else jnp.float32

    x = jnp.transpose(x_ncdhw, (0, 2, 3, 4, 1)).astype(mm_dtype)  # NCDHW->NDHWC
    patches = _im2col_3d(x, k)                                    # (m, kk)
    patches = jnp.pad(patches, ((0, m_pad - m), (0, k_pad - kk)))

    # weight (Cout, Cin, kd, kh, kw) -> (kd, kh, kw, Cin, Cout) -> (kk, Cout),
    # matching the (kd, kh, kw, c) column ordering of _im2col_3d.
    w2 = jnp.transpose(w, (2, 3, 4, 1, 0)).reshape(kk, cout)
    w2 = jnp.pad(w2, ((0, k_pad - kk), (0, c_pad - cout))).astype(mm_dtype)

    gamma_p = jnp.pad(gamma, (0, c_pad - cout), constant_values=1.0)
    beta_p = jnp.pad(beta, (0, c_pad - cout))

    # Hot path 1: K-tiled MXU conv matmul + per-tile channel partial sums.
    conv, psums = conv_stats(patches, w2, out_dtype=mm_dtype)

    # Finish the BN statistics in plain JAX (tiny).  Zero-padded rows/channels
    # contribute nothing to the sums (no bias), so divide by the true M.
    s1 = jnp.sum(psums[:, 0, :], axis=0)               # (c_pad,)
    s2 = jnp.sum(psums[:, 1, :], axis=0)               # (c_pad,)
    mean = s1 / m
    var = jnp.maximum(s2 / m - mean * mean, 0.0)       # biased var (PyTorch BN)
    scale = gamma_p * jax.lax.rsqrt(var + eps)
    shift = beta_p - mean * scale

    # Hot path 2: fused BN affine + ReLU, aliased onto the conv buffer.
    out = bn_relu(conv, scale[None, :], shift[None, :])

    out = out[:m, :cout].astype(jnp.float32).reshape(n, d, h, wd, cout)
    return jnp.transpose(out, (0, 4, 1, 2, 3))         # NDHWC -> NCDHW (glue)


# ----------------------------------------------------------------------------
# Pure-JAX reference for verification
# ----------------------------------------------------------------------------
def reference_forward(x, w, b, gamma, beta, eps=1e-5):
    k = w.shape[2]
    p = (k - 1) // 2
    conv = jax.lax.conv_general_dilated(
        x, w, window_strides=(1, 1, 1), padding=[(p, p)] * 3,
        dimension_numbers=("NCDHW", "OIDHW", "NCDHW"),
    ) + b[None, :, None, None, None]
    mean = conv.mean(axis=(0, 2, 3, 4), keepdims=True)
    var = conv.var(axis=(0, 2, 3, 4), keepdims=True)
    y = (conv - mean) / jnp.sqrt(var + eps)
    y = y * gamma[None, :, None, None, None] + beta[None, :, None, None, None]
    return jnp.maximum(y, 0.0)


if __name__ == "__main__":
    key = jax.random.PRNGKey(0)
    k_x, k_w, k_b, k_g, k_be = jax.random.split(key, 5)

    N, Cin, Cout, D, H, W, K = 2, 4, 8, 8, 16, 16, 3

    x = jax.random.normal(k_x, (N, Cin, D, H, W), dtype=jnp.float32)
    w = jax.random.normal(k_w, (Cout, Cin, K, K, K), dtype=jnp.float32) * 0.1
    b = jax.random.normal(k_b, (Cout,), dtype=jnp.float32) * 0.1
    gamma = 1.0 + 0.1 * jax.random.normal(k_g, (Cout,), dtype=jnp.float32)
    beta = 0.1 * jax.random.normal(k_be, (Cout,), dtype=jnp.float32)

    ref = reference_forward(x, w, b, gamma, beta)

    # Default perf path: bf16 MXU operands + bf16 intermediates, f32 accumulation.
    out = jax.block_until_ready(conv3d_block_forward(x, w, b, gamma, beta))
    assert out.shape == (N, Cout, D, H, W), out.shape
    assert jnp.allclose(out, ref, atol=5e-2, rtol=5e-2), float(
        jnp.max(jnp.abs(out - ref)))

    # f32 debug path: exact module semantics.
    out_f32 = jax.block_until_ready(
        conv3d_block_forward(x, w, b, gamma, beta, use_bf16=False))
    assert jnp.allclose(out_f32, ref, atol=1e-4, rtol=1e-4), float(
        jnp.max(jnp.abs(out_f32 - ref)))

    print("KERNEL_OK")
</pallas_src>

<mosaic_0001>
module attributes {stable_mosaic.version = 11 : i64} {
  func.func @_conv_stats_kernel(%arg0: i32, %arg1: i32, %arg2: memref<512x128xbf16, #tpu.memory_space<vmem>>, %arg3: memref<128x128xbf16, #tpu.memory_space<vmem>>, %arg4: memref<512x128xbf16, #tpu.memory_space<vmem>>, %arg5: memref<1x8x128xf32, #tpu.memory_space<vmem>>, %arg6: memref<512x128xf32, #tpu.memory_space<vmem>>) attributes {dimension_semantics = [#tpu.dimension_semantics<parallel>, #tpu.dimension_semantics<arbitrary>], iteration_bounds = array<i64: 8, 1>, scalar_prefetch = 0 : i64, scratch_operands = 1 : i64, tpu.core_type = #tpu.core_type<tc>, window_params = [{transform_indices = @transform_0, window_bounds = array<i64: 512, 128>}, {pipeline_mode = #tpu.pipeline_mode<synchronous>, transform_indices = @transform_1, window_bounds = array<i64: 128, 128>}, {transform_indices = @transform_2, window_bounds = array<i64: 512, 128>}, {transform_indices = @transform_3, window_bounds = array<i64: 1, 8, 128>}]} {
    %c0_i32 = arith.constant 0 : i32
    %0 = arith.cmpi eq, %arg1, %c0_i32 : i32
    %1 = arith.extui %0 : i1 to i32
    %c0_i32_0 = arith.constant 0 : i32
    %2 = arith.cmpi ne, %1, %c0_i32_0 : i32
    scf.if %2 {
      %cst_10 = arith.constant 0.000000e+00 : f32
      %12 = vector.broadcast %cst_10 : f32 to vector<512x128xf32>
      %c0_11 = arith.constant 0 : index
      %c0_12 = arith.constant 0 : index
      %13 = vector.load %arg6[%c0_11, %c0_12] : memref<512x128xf32, #tpu.memory_space<vmem>>, vector<512x128xf32>
      tpu.vector_store %arg6[%c0_11, %c0_12], %12 {strides = array<i32>} : memref<512x128xf32, #tpu.memory_space<vmem>>, vector<512x128xf32>,
    } else {
    }
    %c0 = arith.constant 0 : index
    %c0_1 = arith.constant 0 : index
    %3 = vector.load %arg6[%c0, %c0_1] : memref<512x128xf32, #tpu.memory_space<vmem>>, vector<512x128xf32>
    %c0_2 = arith.constant 0 : index
    %c0_3 = arith.constant 0 : index
    %4 = vector.load %arg2[%c0_2, %c0_3] : memref<512x128xbf16, #tpu.memory_space<vmem>>, vector<512x128xbf16>
    %c0_4 = arith.constant 0 : index
    %c0_5 = arith.constant 0 : index
    %5 = vector.load %arg3[%c0_4, %c0_5] : memref<128x128xbf16, #tpu.memory_space<vmem>>, vector<128x128xbf16>
    %cst = arith.constant dense<0.000000e+00> : vector<512x128xf32>
    %6 = tpu.matmul %4, %5, %cst {dimension_numbers = #tpu.dot_dimension_numbers<[1], [0], [0], [1], [0, 0, 1, 1], [], []>} : vector<512x128xbf16>, vector<128x128xbf16>, vector<512x128xf32> -> vector<512x128xf32>
    %7 = arith.addf %3, %6 : vector<512x128xf32>
    %c0_6 = arith.constant 0 : index
    %c0_7 = arith.constant 0 : index
    %8 = vector.load %arg6[%c0_6, %c0_7] : memref<512x128xf32, #tpu.memory_space<vmem>>, vector<512x128xf32>
    tpu.vector_store %arg6[%c0_6, %c0_7], %7 {strides = array<i32>} : memref<512x128xf32, #tpu.memory_space<vmem>>, vector<512x128xf32>,
    %c0_i32_8 = arith.constant 0 : i32
    %9 = arith.cmpi eq, %arg1, %c0_i32_8 : i32
    %10 = arith.extui %9 : i1 to i32
    %c0_i32_9 = arith.constant 0 : i32
    %11 = arith.cmpi ne, %10, %c0_i32_9 : i32
    scf.if %11 {
      %c0_10 = arith.constant 0 : index
      %c0_11 = arith.constant 0 : index
      %12 = vector.load %arg6[%c0_10, %c0_11] : memref<512x128xf32, #tpu.memory_space<vmem>>, vector<512x128xf32>
      %13 = arith.truncf %12 : vector<512x128xf32> to vector<512x128xbf16>
      %c0_12 = arith.constant 0 : index
      %c0_13 = arith.constant 0 : index
      %14 = vector.load %arg4[%c0_12, %c0_13] : memref<512x128xbf16, #tpu.memory_space<vmem>>, vector<512x128xbf16>
      tpu.vector_store %arg4[%c0_12, %c0_13], %13 {strides = array<i32>} : memref<512x128xbf16, #tpu.memory_space<vmem>>, vector<512x128xbf16>,
      %cst_14 = arith.constant dense<0.000000e+00> : vector<128xf32>
      %15 = vector.multi_reduction <add>, %12, %cst_14 [0] : vector<512x128xf32> to vector<128xf32>
      %16 = vector.shape_cast %15 : vector<128xf32> to vector<1x128xf32>
      %17 = arith.mulf %12, %12 : vector<512x128xf32>
      %cst_15 = arith.constant dense<0.000000e+00> : vector<128xf32>
      %18 = vector.multi_reduction <add>, %17, %cst_15 [0] : vector<512x128xf32> to vector<128xf32>
      %19 = vector.shape_cast %18 : vector<128xf32> to vector<1x128xf32>
      %cst_16 = arith.constant 0.000000e+00 : f32
      %20 = vector.broadcast %cst_16 : f32 to vector<6x128xf32>
      %21 = tpu.concatenate %16, %19, %20 in 0 : vector<1x128xf32>, vector<1x128xf32>, vector<6x128xf32> -> vector<8x128xf32>
      %22 = vector.shape_cast %21 : vector<8x128xf32> to vector<1x8x128xf32>
      %c0_17 = arith.constant 0 : index
      %c0_18 = arith.constant 0 : index
      %c0_19 = arith.constant 0 : index
      %23 = vector.load %arg5[%c0_17, %c0_18, %c0_19] : memref<1x8x128xf32, #tpu.memory_space<vmem>>, vector<1x8x128xf32>
      tpu.vector_store %arg5[%c0_17, %c0_18, %c0_19], %22 {strides = array<i32>} : memref<1x8x128xf32, #tpu.memory_space<vmem>>, vector<1x8x128xf32>,
    } else {
    }
    return
  }
  func.func @transform_0(%arg0: i32, %arg1: i32) -> (i32, i32) {
    %c0_i32 = arith.constant 0 : i32
    return %arg0, %arg1 : i32, i32
  }
  func.func @transform_1(%arg0: i32, %arg1: i32) -> (i32, i32) {
    %c0_i32 = arith.constant 0 : i32
    %c0_i32_0 = arith.constant 0 : i32
    return %arg1, %c0_i32 : i32, i32
  }
  func.func @transform_2(%arg0: i32, %arg1: i32) -> (i32, i32) {
    %c0_i32 = arith.constant 0 : i32
    %c0_i32_0 = arith.constant 0 : i32
    return %arg0, %c0_i32 : i32, i32
  }
  func.func @transform_3(%arg0: i32, %arg1: i32) -> (i32, i32, i32) {
    %c0_i32 = arith.constant 0 : i32
    %c0_i32_0 = arith.constant 0 : i32
    %c0_i32_1 = arith.constant 0 : i32
    return %arg0, %c0_i32, %c0_i32_0 : i32, i32, i32
  }
}

module attributes {stable_mosaic.version = 11 : i64} {
  func.func @_bn_relu_kernel(%arg0: i32, %arg1: memref<2048x128xbf16, #tpu.memory_space<vmem>>, %arg2: memref<1x128xf32, #tpu.memory_space<vmem>>, %arg3: memref<1x128xf32, #tpu.memory_space<vmem>>, %arg4: memref<2048x128xbf16, #tpu.memory_space<vmem>>) attributes {dimension_semantics = [#tpu.dimension_semantics<parallel>], iteration_bounds = array<i64: 2>, scalar_prefetch = 0 : i64, scratch_operands = 0 : i64, tpu.core_type = #tpu.core_type<tc>, window_params = [{transform_indices = @transform_0, window_bounds = array<i64: 2048, 128>}, {pipeline_mode = #tpu.pipeline_mode<synchronous>, transform_indices = @transform_1, window_bounds = array<i64: 1, 128>}, {pipeline_mode = #tpu.pipeline_mode<synchronous>, transform_indices = @transform_2, window_bounds = array<i64: 1, 128>}, {transform_indices = @transform_3, window_bounds = array<i64: 2048, 128>}]} {
    %c0 = arith.constant 0 : index
    %c0_0 = arith.constant 0 : index
    %0 = vector.load %arg1[%c0, %c0_0] : memref<2048x128xbf16, #tpu.memory_space<vmem>>, vector<2048x128xbf16>
    %1 = arith.extf %0 : vector<2048x128xbf16> to vector<2048x128xf32>
    %c0_1 = arith.constant 0 : index
    %c0_2 = arith.constant 0 : index
    %2 = vector.load %arg2[%c0_1, %c0_2] : memref<1x128xf32, #tpu.memory_space<vmem>>, vector<1x128xf32>
    %3 = vector.broadcast %2 : vector<1x128xf32> to vector<2048x128xf32>
    %4 = arith.mulf %1, %3 : vector<2048x128xf32>
    %c0_3 = arith.constant 0 : index
    %c0_4 = arith.constant 0 : index
    %5 = vector.load %arg3[%c0_3, %c0_4] : memref<1x128xf32, #tpu.memory_space<vmem>>, vector<1x128xf32>
    %6 = vector.broadcast %5 : vector<1x128xf32> to vector<2048x128xf32>
    %7 = arith.addf %4, %6 : vector<2048x128xf32>
    %cst = arith.constant 0.000000e+00 : f32
    %8 = vector.broadcast %cst : f32 to vector<2048x128xf32>
    %9 = arith.maximumf %7, %8 : vector<2048x128xf32>
    %10 = arith.truncf %9 : vector<2048x128xf32> to vector<2048x128xbf16>
    %c0_5 = arith.constant 0 : index
    %c0_6 = arith.constant 0 : index
    %11 = vector.load %arg4[%c0_5, %c0_6] : memref<2048x128xbf16, #tpu.memory_space<vmem>>, vector<2048x128xbf16>
    tpu.vector_store %arg4[%c0_5, %c0_6], %10 {strides = array<i32>} : memref<2048x128xbf16, #tpu.memory_space<vmem>>, vector<2048x128xbf16>,
    return
  }
  func.func @transform_0(%arg0: i32) -> (i32, i32) {
    %c0_i32 = arith.constant 0 : i32
    %c0_i32_0 = arith.constant 0 : i32
    return %arg0, %c0_i32 : i32, i32
  }
  func.func @transform_1(%arg0: i32) -> (i32, i32) {
    %c0_i32 = arith.constant 0 : i32
    %c0_i32_0 = arith.constant 0 : i32
    %c0_i32_1 = arith.constant 0 : i32
    return %c0_i32, %c0_i32_0 : i32, i32
  }
  func.func @transform_2(%arg0: i32) -> (i32, i32) {
    %c0_i32 = arith.constant 0 : i32
    %c0_i32_0 = arith.constant 0 : i32
    %c0_i32_1 = arith.constant 0 : i32
    return %c0_i32, %c0_i32_0 : i32, i32
  }
  func.func @transform_3(%arg0: i32) -> (i32, i32) {
    %c0_i32 = arith.constant 0 : i32
    %c0_i32_0 = arith.constant 0 : i32
    return %arg0, %c0_i32 : i32, i32
  }
}

</mosaic_0001>

<bundles_post_ra>
// kernel: conv3d_block_forward.2
= control target key start
LH: loop header
LB: loop body
LE: loop exit
PB: predicated region body
PF: predicated region fallthrough
CT: control target
= control target key end

     0   :  { %s1991_s12 = smov 0   ;;  %s1993_s13 = smov 0   ;;  %s2419_s0 = inlined_call_operand.vmem [shape: bf16[4096,128], index: 0, kind: input, shape index: {}]   ;;  %s2420_s1 = inlined_call_operand.vmem [shape: bf16[128,128], index: 1, kind: input, shape index: {}]   ;;  %s2421_s2 = inlined_call_operand.vmem [shape: bf16[4096,128], index: 2, kind: output, shape index: {0}]   ;;  %s2422_s3 = inlined_call_operand.vmem [shape: f32[8,8,128], index: 3, kind: output, shape index: {1}]  }
   0x1   :  { %s1995_s14 = smov 0  }
   0x2 LB: > { %s26_s15 = sadd.s32 1, %s1965_s13  ;;  %p1500_p0 = scmp.ge.s32.totalorder %s1969_s14, 1  ;;  %s1969_s14 = sphi %s1995_s14, %s14_s14   ;;  %s1965_s13 = sphi %s1993_s13, %s2424_s13   ;;  %s1961_s12 = sphi %s1991_s12, %s2423_s12  }
   0x3   : > { %p28_p1 = scmp.ge.s32.totalorder %s26_s15, 8  ;;  %p169_p2 = scmp.lt.s32.totalorder %s1969_s14, 9 }
   0x5   : > { %s2426_s15 = smov (%p28_p1, %s26_s15), 0  ;;  %p170_p3 = pnand %p1500_p0, %p169_p2 }
   0x6   : > { %s1501_s24 = sshll.u32 (!%p170_p3), %s1961_s12, 6  ;;  %p226_p5 = scmp.lt.s32.totalorder (!%p170_p3), %s1961_s12, 7 }
   0x7   : > { %173 = sbr.rel (%p170_p3) target bundleno = 405 (0x195), region = 28  ;;  %p206_p4 = scmp.lt.s32.totalorder (!%p170_p3), %s1501_s24, 511 }
   0xc   : > { %v1707_v0 = vld [vmem:[%s2420_s1 + $0x38] sm:$0xff]  ;;  %v1706_v1 = vld [vmem:[%s2420_s1 + $0x30] sm:$0xff]  ;;  %v1705_v2 = vld [vmem:[%s2420_s1 + $0x28] sm:$0xff]  ;;  %s2428_s24 = smov (!%p206_p4, %s1501_s24), 511  ;;  %s2430_s12 = smov (!%p226_p5, %s1961_s12), 7  ;;  %vm1376_vm0 = vcmask 1040384  }
   0xd   : > { %682 = vmatpush.bf16.msra.mxu0 %v1707_v0  ;;  %1899 = vmatpush.bf16.msra.mxu1 %v1707_v0  ;;  %v1704_v3 = vld [vmem:[%s2420_s1 + $0x20] sm:$0xff]  ;;  %v1703_v4 = vld [vmem:[%s2420_s1 + $0x18] sm:$0xff]  ;;  %v1702_v5 = vld [vmem:[%s2420_s1 + $0x10] sm:$0xff]  ;;  %s1502_s4 = sshll.u32 %s2428_s24, 2  ;;  %s1505_s17 = sshll.u32 %s2430_s12, 3  ;;  %vm1378_vm1 = vcmask 1041408  }
   0xe   : > { %1900 = vmatpush.bf16.msra.mxu2 %v1707_v0  ;;  %1901 = vmatpush.bf16.msra.mxu3 %v1707_v0  ;;  %v1701_v6 = vld [vmem:[%s2420_s1 + $0x8] sm:$0xff]  ;;  %v1700_v7 = vld [vmem:[%s2420_s1] sm:$0xff]  ;;  %s2044_s9 = scalar_lea.vmem %s2419_s0, %s1502_s4  ;;  %s2083_s16 = scalar_lea.vmem %s2421_s2, %s1502_s4 }
   0xf   : > { %v1668_v8 = vld [vmem:[%s2044_s9] sm:$0xff]  ;;  %v1669_v10 = vld [vmem:[%s2044_s9 + $0x8] sm:$0xff]  ;;  %v1670_v13 = vld [vmem:[%s2044_s9 + $0x10] sm:$0xff]  ;;  %s229_s20 = scalar_lea.vmem %s2422_s3, %s1505_s17 }
  0x10   : > { %v1676_v9 = vld [vmem:[%s2044_s9 + $0x40] sm:$0xff]  ;;  %v1677_v11 = vld [vmem:[%s2044_s9 + $0x48] sm:$0xff]  ;;  %v1678_v14 = vld [vmem:[%s2044_s9 + $0x50] sm:$0xff] }
  0x11   : > { %683 = vmatpush.bf16.msra.mxu0 %v1706_v1  ;;  %1902 = vmatpush.bf16.msra.mxu1 %v1706_v1  ;;  %v1684_v12 = vld [vmem:[%s2044_s9 + $0x80] sm:$0xff]  ;;  %v1685_v15 = vld [vmem:[%s2044_s9 + $0x88] sm:$0xff]  ;;  %v1671_v16 = vld [vmem:[%s2044_s9 + $0x18] sm:$0xff] }
  0x12   : > { %1903 = vmatpush.bf16.msra.mxu2 %v1706_v1  ;;  %1904 = vmatpush.bf16.msra.mxu3 %v1706_v1  ;;  %v1679_v17 = vld [vmem:[%s2044_s9 + $0x58] sm:$0xff]  ;;  %v1686_v18 = vld [vmem:[%s2044_s9 + $0x90] sm:$0xff]  ;;  %v1692_v19 = vld [vmem:[%s2044_s9 + $0xc0] sm:$0xff] }
  0x13   : > { %v1672_v20 = vld [vmem:[%s2044_s9 + $0x20] sm:$0xff]  ;;  %v1687_v22 = vld [vmem:[%s2044_s9 + $0x98] sm:$0xff]  ;;  %v1693_v23 = vld [vmem:[%s2044_s9 + $0xc8] sm:$0xff] }
  0x14   : > { %v1680_v21 = vld [vmem:[%s2044_s9 + $0x60] sm:$0xff]  ;;  %v1673_v24 = vld [vmem:[%s2044_s9 + $0x28] sm:$0xff]  ;;  %v1694_v27 = vld [vmem:[%s2044_s9 + $0xd0] sm:$0xff] }
  0x15   : > { %684 = vmatpush.bf16.msra.mxu0 %v1705_v2  ;;  %1905 = vmatpush.bf16.msra.mxu1 %v1705_v2  ;;  %v1681_v25 = vld [vmem:[%s2044_s9 + $0x68] sm:$0xff]  ;;  %v1688_v26 = vld [vmem:[%s2044_s9 + $0xa0] sm:$0xff]  ;;  %v1674_v28 = vld [vmem:[%s2044_s9 + $0x30] sm:$0xff] }
  0x16   : > { %1906 = vmatpush.bf16.msra.mxu2 %v1705_v2  ;;  %1907 = vmatpush.bf16.msra.mxu3 %v1705_v2  ;;  %v1682_v29 = vld [vmem:[%s2044_s9 + $0x70] sm:$0xff]  ;;  %v1689_v30 = vld [vmem:[%s2044_s9 + $0xa8] sm:$0xff]  ;;  %v1695_v31 = vld [vmem:[%s2044_s9 + $0xd8] sm:$0xff] }
  0x17   : > { %v1675_v32 = vld [vmem:[%s2044_s9 + $0x38] sm:$0xff]  ;;  %v1690_v34 = vld [vmem:[%s2044_s9 + $0xb0] sm:$0xff]  ;;  %v1696_v35 = vld [vmem:[%s2044_s9 + $0xe0] sm:$0xff] }
  0x18   : > { %v1683_v33 = vld [vmem:[%s2044_s9 + $0x78] sm:$0xff]  ;;  %v1697_v39 = vld [vmem:[%s2044_s9 + $0xe8] sm:$0xff]  ;;  %v1698_v53 = vld [vmem:[%s2044_s9 + $0xf0] sm:$0xff] }
  0x19   : > { %685 = vmatpush.bf16.msra.mxu0 %v1704_v3  ;;  %1908 = vmatpush.bf16.msra.mxu1 %v1704_v3  ;;  %v1691_v38 = vld [vmem:[%s2044_s9 + $0xb8] sm:$0xff] }
  0x1a   : > { %1909 = vmatpush.bf16.msra.mxu2 %v1704_v3  ;;  %1910 = vmatpush.bf16.msra.mxu3 %v1704_v3 }
  0x1d   : > { %686 = vmatpush.bf16.msra.mxu0 %v1703_v4  ;;  %1911 = vmatpush.bf16.msra.mxu1 %v1703_v4 }
  0x1e   : > { %1912 = vmatpush.bf16.msra.mxu2 %v1703_v4  ;;  %1913 = vmatpush.bf16.msra.mxu3 %v1703_v4 }
  0x21   : > { %687 = vmatpush.bf16.msra.mxu0 %v1702_v5  ;;  %1914 = vmatpush.bf16.msra.mxu1 %v1702_v5 }
  0x22   : > { %1915 = vmatpush.bf16.msra.mxu2 %v1702_v5  ;;  %1916 = vmatpush.bf16.msra.mxu3 %v1702_v5  ;;  %v1699_v5 = vld [vmem:[%s2044_s9 + $0xf8] sm:$0xff] }
  0x25   : > { %688 = vmatpush.bf16.msra.mxu0 %v1701_v6  ;;  %1917 = vmatpush.bf16.msra.mxu1 %v1701_v6 }
  0x26   : > { %1918 = vmatpush.bf16.msra.mxu2 %v1701_v6  ;;  %1919 = vmatpush.bf16.msra.mxu3 %v1701_v6 }
  0x29   : > { %689 = vmatpush.bf16.msra.mxu0 %v1700_v7  ;;  %1920 = vmatpush.bf16.msra.mxu1 %v1700_v7 }
  0x2a   : > { %1921 = vmatpush.bf16.msra.mxu2 %v1700_v7  ;;  %1922 = vmatpush.bf16.msra.mxu3 %v1700_v7 }
  0x2c   : > { %690 = vmatmul.bf16.vlgmr.msra.gmra.mxu0 %v1668_v8  ;;  %730 = vmatmul.bf16.vlgmr.msra.gmra.mxu1 %v1676_v9 }
  0x2d   : > { %770 = vmatmul.bf16.vlgmr.msra.gmra.mxu2 %v1684_v12  ;;  %810 = vmatmul.bf16.vlgmr.msra.gmra.mxu3 %v1692_v19 }
  0x3c   : > { %695 = vmatmul.bf16.gmra.mxu0 %v1669_v10  ;;  %735 = vmatmul.bf16.gmra.mxu1 %v1677_v11 }
  0x3d   : > { %775 = vmatmul.bf16.gmra.mxu2 %v1685_v15  ;;  %815 = vmatmul.bf16.gmra.mxu3 %v1693_v23 }
  0x4c   : > { %700 = vmatmul.bf16.gmra.mxu0 %v1670_v13  ;;  %740 = vmatmul.bf16.gmra.mxu1 %v1678_v14 }
  0x4d   : > { %780 = vmatmul.bf16.gmra.mxu2 %v1686_v18  ;;  %820 = vmatmul.bf16.gmra.mxu3 %v1694_v27 }
  0x5c   : > { %705 = vmatmul.bf16.gmra.mxu0 %v1671_v16  ;;  %745 = vmatmul.bf16.gmra.mxu1 %v1679_v17 }
  0x5d   : > { %785 = vmatmul.bf16.gmra.mxu2 %v1687_v22  ;;  %825 = vmatmul.bf16.gmra.mxu3 %v1695_v31 }
  0x6c   : > { %710 = vmatmul.bf16.gmra.mxu0 %v1672_v20  ;;  %750 = vmatmul.bf16.gmra.mxu1 %v1680_v21 }
  0x6d   : > { %790 = vmatmul.bf16.gmra.mxu2 %v1688_v26  ;;  %830 = vmatmul.bf16.gmra.mxu3 %v1696_v35 }
  0x7c   : > { %715 = vmatmul.bf16.gmra.mxu0 %v1673_v24  ;;  %755 = vmatmul.bf16.gmra.mxu1 %v1681_v25 }
  0x7d   : > { %795 = vmatmul.bf16.gmra.mxu2 %v1689_v30  ;;  %835 = vmatmul.bf16.gmra.mxu3 %v1697_v39 }
  0x8c   : > { %720 = vmatmul.bf16.gmra.mxu0 %v1674_v28  ;;  %760 = vmatmul.bf16.gmra.mxu1 %v1682_v29 }
  0x8d   : > { %800 = vmatmul.bf16.gmra.mxu2 %v1690_v34  ;;  %840 = vmatmul.bf16.gmra.mxu3 %v1698_v53 }
  0x9c   : > { %725 = vmatmul.bf16.gmra.mxu0 %v1675_v32  ;;  %765 = vmatmul.bf16.gmra.mxu1 %v1683_v33 }
  0x9d   : > { %805 = vmatmul.bf16.gmra.mxu2 %v1691_v38  ;;  %845 = vmatmul.bf16.gmra.mxu3 %v1699_v5 }
  0xa9   : > { %v691_v36 = vpop.f32.mrf.mxu0  ;;  %v2074_v37 = vpop.f32.mrf.mxu1 }
  0xaa   : > { %v1243_v40 = vmul.f32 %v691_v36, %v691_v36 }
  0xb0   : > { %v2098_v60 = vpop.f32.mrf.mxu2  ;;  %v2135_v20 = vpop.f32.mrf.mxu3 }
  0xb1   : > { %v693_v41 = vpop.f32.mrf.mxu0  ;;  %v2085_v42 = vpop.f32.mrf.mxu1 }
  0xb2   : > { %v1711_v43 = vpack.c.bf16 %v693_v41, %v691_v36  ;;  %v1174_v44 = vadd.f32 %v693_v41, %v691_v36  ;;  %v1244_v45 = vmul.f32 %v693_v41, %v693_v41  ;;  %v1751_v46 = vpack.c.bf16 %v2085_v42, %v2074_v37 }
  0xb4   : > { %1712 = vst [vmem:[%s2083_s16] sm:$0xff] %v1711_v43   ;;  %v1307_v47 = vadd.f32 %v1244_v45, %v1243_v40 }
  0xb5   : > { %1875 = vst [vmem:[%s2083_s16 + $0x40] sm:$0xff] %v1751_v46  }
  0xb8   : > { %v2106_v2 = vpop.f32.mrf.mxu2  ;;  %v2143_v24 = vpop.f32.mrf.mxu3 }
  0xb9   : > { %v696_v48 = vpop.f32.mrf.mxu0  ;;  %v2091_v49 = vpop.f32.mrf.mxu1  ;;  %v1791_v3 = vpack.c.bf16 %v2106_v2, %v2098_v60  ;;  %v1831_v26 = vpack.c.bf16 %v2143_v24, %v2135_v20 }
  0xba   : > { %v1175_v50 = vadd.f32 %v1174_v44, %v696_v48  ;;  %v1245_v51 = vmul.f32 %v696_v48, %v696_v48 }
  0xbb   : > { %1883 = vst [vmem:[%s2083_s16 + $0x80] sm:$0xff] %v1791_v3  }
  0xbc   : > { %v1308_v52 = vadd.f32 %v1307_v47, %v1245_v51  ;;  %1891 = vst [vmem:[%s2083_s16 + $0xc0] sm:$0xff] %v1831_v26  }
  0xc0   : > { %v2118_v10 = vpop.f32.mrf.mxu2  ;;  %v2157_v32 = vpop.f32.mrf.mxu3 }
  0xc1   : > { %v698_v54 = vpop.f32.mrf.mxu0  ;;  %v2094_v55 = vpop.f32.mrf.mxu1 }
  0xc2   : > { %v1716_v56 = vpack.c.bf16 %v698_v54, %v696_v48  ;;  %v1176_v57 = vadd.f32 %v1175_v50, %v698_v54  ;;  %v1246_v58 = vmul.f32 %v698_v54, %v698_v54  ;;  %v1756_v59 = vpack.c.bf16 %v2094_v55, %v2091_v49 }
  0xc4   : > { %1868 = vst [vmem:[%s2083_s16 + $0x8] sm:$0xff] %v1716_v56   ;;  %v1309_v61 = vadd.f32 %v1308_v52, %v1246_v58 }
  0xc5   : > { %1876 = vst [vmem:[%s2083_s16 + $0x48] sm:$0xff] %v1756_v59  }
  0xc8   : > { %v2124_v13 = vpop.f32.mrf.mxu2  ;;  %v2165_v36 = vpop.f32.mrf.mxu3 }
  0xc9   : > { %v701_v62 = vpop.f32.mrf.mxu0  ;;  %v2102_v63 = vpop.f32.mrf.mxu1  ;;  %v1796_v14 = vpack.c.bf16 %v2124_v13, %v2118_v10  ;;  %v1836_v39 = vpack.c.bf16 %v2165_v36, %v2157_v32 }
  0xca   : > { %v2104_v0 = vadd.f32 %v1176_v57, %v701_v62  ;;  %v1247_v1 = vmul.f32 %v701_v62, %v701_v62 }
  0xcb   : > { %1884 = vst [vmem:[%s2083_s16 + $0x88] sm:$0xff] %v1796_v14  }
  0xcc   : > { %v2110_v4 = vadd.f32 %v1309_v61, %v1247_v1  ;;  %1892 = vst [vmem:[%s2083_s16 + $0xc8] sm:$0xff] %v1836_v39  }
  0xd0   : > { %v2133_v19 = vpop.f32.mrf.mxu2  ;;  %v2179_v46 = vpop.f32.mrf.mxu3 }
  0xd1   : > { %v703_v6 = vpop.f32.mrf.mxu0  ;;  %v2114_v7 = vpop.f32.mrf.mxu1 }
  0xd2   : > { %v1721_v8 = vpack.c.bf16 %v703_v6, %v701_v62  ;;  %v1761_v9 = vpack.c.bf16 %v2114_v7, %v2102_v63  ;;  %v1248_v52 = vmul.f32 %v703_v6, %v703_v6  ;;  %v1178_v57 = vadd.f32 %v2104_v0, %v703_v6 }
  0xd4   : > { %1869 = vst [vmem:[%s2083_s16 + $0x10] sm:$0xff] %v1721_v8   ;;  %v1311_v58 = vadd.f32 %v2110_v4, %v1248_v52 }
  0xd5   : > { %1877 = vst [vmem:[%s2083_s16 + $0x50] sm:$0xff] %v1761_v9  }
  0xd8   : > { %v2141_v23 = vpop.f32.mrf.mxu2  ;;  %v2187_v51 = vpop.f32.mrf.mxu3 }
  0xd9   : > { %v706_v11 = vpop.f32.mrf.mxu0  ;;  %v2122_v12 = vpop.f32.mrf.mxu1  ;;  %v1801_v25 = vpack.c.bf16 %v2141_v23, %v2133_v19  ;;  %v1841_v54 = vpack.c.bf16 %v2187_v51, %v2179_v46 }
  0xda   : > { %v1249_v56 = vmul.f32 %v706_v11, %v706_v11  ;;  %v1179_v61 = vadd.f32 %v1178_v57, %v706_v11 }
  0xdb   : > { %1885 = vst [vmem:[%s2083_s16 + $0x90] sm:$0xff] %v1801_v25  }
  0xdc   : > { %1893 = vst [vmem:[%s2083_s16 + $0xd0] sm:$0xff] %v1841_v54   ;;  %v1312_v62 = vadd.f32 %v1311_v58, %v1249_v56 }
  0xe0   : > { %v2155_v31 = vpop.f32.mrf.mxu2  ;;  %v2203_v0 = vpop.f32.mrf.mxu3 }
  0xe1   : > { %v708_v15 = vpop.f32.mrf.mxu0  ;;  %v2129_v16 = vpop.f32.mrf.mxu1 }
  0xe2   : > { %v1726_v17 = vpack.c.bf16 %v708_v15, %v706_v11  ;;  %v1766_v18 = vpack.c.bf16 %v2129_v16, %v2122_v12  ;;  %v1250_v59 = vmul.f32 %v708_v15, %v708_v15  ;;  %v1180_v8 = vadd.f32 %v1179_v61, %v708_v15 }
  0xe4   : > { %1870 = vst [vmem:[%s2083_s16 + $0x18] sm:$0xff] %v1726_v17   ;;  %v1313_v6 = vadd.f32 %v1312_v62, %v1250_v59 }
  0xe5   : > { %1878 = vst [vmem:[%s2083_s16 + $0x58] sm:$0xff] %v1766_v18  }
  0xe8   : > { %v2163_v35 = vpop.f32.mrf.mxu2  ;;  %v2211_v54 = vpop.f32.mrf.mxu3 }
  0xe9   : > { %v711_v21 = vpop.f32.mrf.mxu0  ;;  %v2139_v22 = vpop.f32.mrf.mxu1  ;;  %v1806_v38 = vpack.c.bf16 %v2163_v35, %v2155_v31  ;;  %v1846_v57 = vpack.c.bf16 %v2211_v54, %v2203_v0 }
  0xea   : > { %v1251_v1 = vmul.f32 %v711_v21, %v711_v21  ;;  %v1181_v4 = vadd.f32 %v1180_v8, %v711_v21 }
  0xeb   : > { %1886 = vst [vmem:[%s2083_s16 + $0x98] sm:$0xff] %v1806_v38  }
  0xec   : > { %v1314_v11 = vadd.f32 %v1313_v6, %v1251_v1  ;;  %1894 = vst [vmem:[%s2083_s16 + $0xd8] sm:$0xff] %v1846_v57  }
  0xf0   : > { %v2177_v45 = vpop.f32.mrf.mxu2 }
  0xf1   : > { %v713_v27 = vpop.f32.mrf.mxu0  ;;  %v2151_v28 = vpop.f32.mrf.mxu1 }
  0xf2   : > { %v1731_v29 = vpack.c.bf16 %v713_v27, %v711_v21  ;;  %v1771_v30 = vpack.c.bf16 %v2151_v28, %v2139_v22  ;;  %v1252_v18 = vmul.f32 %v713_v27, %v713_v27  ;;  %v1182_v26 = vadd.f32 %v1181_v4, %v713_v27 }
  0xf4   : > { %1871 = vst [vmem:[%s2083_s16 + $0x20] sm:$0xff] %v1731_v29   ;;  %v1315_v29 = vadd.f32 %v1314_v11, %v1252_v18  ;;  %v2225_v11 = vpop.f32.mrf.mxu3 }
  0xf5   : > { %1879 = vst [vmem:[%s2083_s16 + $0x60] sm:$0xff] %v1771_v30  }
  0xf8   : > { %v2185_v50 = vpop.f32.mrf.mxu2 }
  0xf9   : > { %v716_v33 = vpop.f32.mrf.mxu0  ;;  %v2161_v34 = vpop.f32.mrf.mxu1  ;;  %v1811_v53 = vpack.c.bf16 %v2185_v50, %v2177_v45 }
  0xfa   : > { %v1253_v25 = vmul.f32 %v716_v33, %v716_v33  ;;  %v1183_v15 = vadd.f32 %v1182_v26, %v716_v33 }
  0xfb   : > { %1887 = vst [vmem:[%s2083_s16 + $0xa0] sm:$0xff] %v1811_v53  }
  0xfc   : > { %v1316_v38 = vadd.f32 %v1315_v29, %v1253_v25  ;;  %v1260_v29 = vmul.f32 %v2085_v42, %v2085_v42 }
 0x100   : > { %v2201_v17 = vpop.f32.mrf.mxu2 }
 0x101   : > { %v718_v40 = vpop.f32.mrf.mxu0  ;;  %v2173_v41 = vpop.f32.mrf.mxu1 }
 0x102   : > { %v1736_v43 = vpack.c.bf16 %v718_v40, %v716_v33  ;;  %v1776_v44 = vpack.c.bf16 %v2173_v41, %v2161_v34  ;;  %v1254_v30 = vmul.f32 %v718_v40, %v718_v40  ;;  %v1184_v52 = vadd.f32 %v1183_v15, %v718_v40 }
 0x104   : > { %1872 = vst [vmem:[%s2083_s16 + $0x28] sm:$0xff] %v1736_v43   ;;  %v1317_v21 = vadd.f32 %v1316_v38, %v1254_v30  ;;  %v1261_v38 = vmul.f32 %v2091_v49, %v2091_v49 }
 0x105   : > { %1880 = vst [vmem:[%s2083_s16 + $0x68] sm:$0xff] %v1776_v44  }
 0x108   : > { %v2209_v53 = vpop.f32.mrf.mxu2 }
 0x109   : > { %v721_v47 = vpop.f32.mrf.mxu0  ;;  %v2183_v48 = vpop.f32.mrf.mxu1  ;;  %v1816_v27 = vpack.c.bf16 %v2209_v53, %v2201_v17 }
 0x10a   : > { %v1255_v39 = vmul.f32 %v721_v47, %v721_v47  ;;  %v1185_v33 = vadd.f32 %v1184_v52, %v721_v47  ;;  %v1262_v52 = vmul.f32 %v2094_v55, %v2094_v55 }
 0x10b   : > { %1888 = vst [vmem:[%s2083_s16 + $0xa8] sm:$0xff] %v1816_v27   ;;  %v2243_v27 = vpop.f32.mrf.mxu3 }
 0x10c   : > { %v1318_v58 = vadd.f32 %v1317_v21, %v1255_v39  ;;  %v1851_v57 = vpack.c.bf16 %v2243_v27, %v2225_v11 }
 0x10e   : > { %1895 = vst [vmem:[%s2083_s16 + $0xe0] sm:$0xff] %v1851_v57  }
 0x111   : > { %v723_v3 = vpop.f32.mrf.mxu0  ;;  %v2197_v5 = vpop.f32.mrf.mxu1 }
 0x112   : > { %v1741_v9 = vpack.c.bf16 %v723_v3, %v721_v47  ;;  %v1781_v14 = vpack.c.bf16 %v2197_v5, %v2183_v48  ;;  %v1256_v56 = vmul.f32 %v723_v3, %v723_v3  ;;  %v1186_v61 = vadd.f32 %v1185_v33, %v723_v3  ;;  %v2223_v47 = vpop.f32.mrf.mxu2 }
 0x113   : > { %v1259_v3 = vmul.f32 %v2074_v37, %v2074_v37  ;;  %v1272_v57 = vmul.f32 %v2197_v5, %v2197_v5 }
 0x114   : > { %1873 = vst [vmem:[%s2083_s16 + $0x30] sm:$0xff] %v1741_v9   ;;  %v1319_v40 = vadd.f32 %v1318_v58, %v1256_v56 }
 0x115   : > { %1881 = vst [vmem:[%s2083_s16 + $0x70] sm:$0xff] %v1781_v14  }
 0x119   : > { %v726_v43 = vpop.f32.mrf.mxu0  ;;  %v2207_v44 = vpop.f32.mrf.mxu1 }
 0x11a   : > { %v1257_v59 = vmul.f32 %v726_v43, %v726_v43  ;;  %v1187_v62 = vadd.f32 %v1186_v61, %v726_v43  ;;  %v2241_v56 = vpop.f32.mrf.mxu2 }
 0x11c   : > { %v1320_v1 = vadd.f32 %v1319_v40, %v1257_v59  ;;  %v1265_v40 = vmul.f32 %v2122_v12, %v2122_v12 }
 0x121   : > { %v728_v8 = vpop.f32.mrf.mxu0  ;;  %v2219_v9 = vpop.f32.mrf.mxu1 }
 0x122   : > { %v1746_v14 = vpack.c.bf16 %v728_v8, %v726_v43  ;;  %v1188_v6 = vadd.f32 %v1187_v62, %v728_v8  ;;  %v1258_v18 = vmul.f32 %v728_v8, %v728_v8  ;;  %v1786_v4 = vpack.c.bf16 %v2219_v9, %v2207_v44 }
 0x123   : > { %v1266_v8 = vmul.f32 %v2129_v16, %v2129_v16 }
 0x124   : > { %1874 = vst [vmem:[%s2083_s16 + $0x38] sm:$0xff] %v1746_v14   ;;  %v1189_v25 = vadd.f32 %v1188_v6, %v2074_v37  ;;  %v1321_v26 = vadd.f32 %v1320_v1, %v1258_v18  ;;  %v2263_v6 = vpop.f32.mrf.mxu2  ;;  %v2265_v18 = vpop.f32.mrf.mxu3 }
 0x125   : > { %1882 = vst [vmem:[%s2083_s16 + $0x78] sm:$0xff] %v1786_v4  }
 0x126   : > { %v1190_v30 = vadd.f32 %v1189_v25, %v2085_v42  ;;  %v1322_v15 = vadd.f32 %v1321_v26, %v1259_v3  ;;  %v1821_v42 = vpack.c.bf16 %v2241_v56, %v2223_v47  ;;  %v1268_v25 = vmul.f32 %v2151_v28, %v2151_v28 }
 0x128   : > { %v1191_v39 = vadd.f32 %v1190_v30, %v2091_v49  ;;  %v1323_v43 = vadd.f32 %v1322_v15, %v1260_v29  ;;  %v1263_v49 = vmul.f32 %v2102_v63, %v2102_v63  ;;  %1889 = vst [vmem:[%s2083_s16 + $0xb0] sm:$0xff] %v1821_v42   ;;  %v1270_v15 = vmul.f32 %v2173_v41, %v2173_v41 }
 0x12a   : > { %v1192_v37 = vadd.f32 %v1191_v39, %v2094_v55  ;;  %v1324_v21 = vadd.f32 %v1323_v43, %v1261_v38  ;;  %v1264_v55 = vmul.f32 %v2114_v7, %v2114_v7 }
 0x12c   : > { %v1193_v33 = vadd.f32 %v1192_v37, %v2102_v63  ;;  %v1325_v58 = vadd.f32 %v1324_v21, %v1262_v52  ;;  %v2279_v39 = vpop.f32.mrf.mxu2  ;;  %v2281_v43 = vpop.f32.mrf.mxu3  ;;  %v1271_v37 = vmul.f32 %v2183_v48, %v2183_v48 }
 0x12d   : > { %v1856_v52 = vpack.c.bf16 %v2281_v43, %v2265_v18 }
 0x12e   : > { %v1194_v59 = vadd.f32 %v1193_v33, %v2114_v7  ;;  %v1326_v61 = vadd.f32 %v1325_v58, %v1263_v49  ;;  %v1267_v7 = vmul.f32 %v2139_v22, %v2139_v22  ;;  %v1273_v58 = vmul.f32 %v2207_v44, %v2207_v44 }
 0x12f   : > { %1896 = vst [vmem:[%s2083_s16 + $0xe8] sm:$0xff] %v1856_v52   ;;  %v1283_v52 = vmul.f32 %v2177_v45, %v2177_v45 }
 0x130   : > { %v1327_v62 = vadd.f32 %v1326_v61, %v1264_v55  ;;  %v1195_v1 = vadd.f32 %v1194_v59, %v2122_v12 }
 0x132   : > { %v1196_v63 = vadd.f32 %v1195_v1, %v2129_v16  ;;  %v1328_v14 = vadd.f32 %v1327_v62, %v1265_v40  ;;  %v1269_v16 = vmul.f32 %v2161_v34, %v2161_v34  ;;  %v1275_v40 = vmul.f32 %v2098_v60, %v2098_v60 }
 0x133   : > { %v1276_v1 = vmul.f32 %v2106_v2, %v2106_v2 }
 0x134   : > { %v1197_v4 = vadd.f32 %v1196_v63, %v2139_v22  ;;  %v1329_v3 = vadd.f32 %v1328_v14, %v1266_v8  ;;  %v2301_v61 = vpop.f32.mrf.mxu3  ;;  %v1277_v63 = vmul.f32 %v2118_v10, %v2118_v10 }
 0x136   : > { %v1198_v12 = vadd.f32 %v1197_v4, %v2151_v28  ;;  %v1330_v26 = vadd.f32 %v1329_v3, %v1267_v7  ;;  %v1826_v28 = vpack.c.bf16 %v2279_v39, %v2263_v6  ;;  %v1278_v7 = vmul.f32 %v2124_v13, %v2124_v13 }
 0x138   : > { %v1199_v29 = vadd.f32 %v1198_v12, %v2161_v34  ;;  %v1331_v30 = vadd.f32 %v1330_v26, %v1268_v25  ;;  %1890 = vst [vmem:[%s2083_s16 + $0xb8] sm:$0xff] %v1826_v28  }
 0x13a   : > { %v1200_v22 = vadd.f32 %v1199_v29, %v2173_v41  ;;  %v1332_v38 = vadd.f32 %v1331_v30, %v1269_v16 }
 0x13c   : > { %v1201_v34 = vadd.f32 %v1200_v22, %v2183_v48  ;;  %v1333_v21 = vadd.f32 %v1332_v38, %v1270_v15  ;;  %v1274_v48 = vmul.f32 %v2219_v9, %v2219_v9  ;;  %v2315_v3 = vpop.f32.mrf.mxu3  ;;  %v1282_v22 = vmul.f32 %v2163_v35, %v2163_v35 }
 0x13d   : > { %v1861_v25 = vpack.c.bf16 %v2315_v3, %v2301_v61 }
 0x13e   : > { %v1334_v42 = vadd.f32 %v1333_v21, %v1271_v37  ;;  %v1202_v41 = vadd.f32 %v1201_v34, %v2197_v5  ;;  %v1284_v37 = vmul.f32 %v2185_v50, %v2185_v50 }
 0x13f   : > { %1897 = vst [vmem:[%s2083_s16 + $0xf0] sm:$0xff] %v1861_v25  }
 0x140   : > { %v1335_v49 = vadd.f32 %v1334_v42, %v1272_v57  ;;  %v1203_v33 = vadd.f32 %v1202_v41, %v2207_v44  ;;  %v1285_v42 = vmul.f32 %v2201_v17, %v2201_v17 }
 0x142   : > { %v1336_v55 = vadd.f32 %v1335_v49, %v1273_v58  ;;  %v1204_v59 = vadd.f32 %v1203_v33, %v2219_v9  ;;  %v1286_v49 = vmul.f32 %v2209_v53, %v2209_v53 }
 0x144   : > { %v1205_v5 = vadd.f32 %v1204_v59, %v2098_v60  ;;  %v1337_v62 = vadd.f32 %v1336_v55, %v1274_v48  ;;  %v2332_v28 = vpop.f32.mrf.mxu3 }
 0x146   : > { %v1206_v44 = vadd.f32 %v1205_v5, %v2106_v2  ;;  %v1338_v8 = vadd.f32 %v1337_v62, %v1275_v40  ;;  %v1279_v2 = vmul.f32 %v2133_v19, %v2133_v19  ;;  %v1288_v40 = vmul.f32 %v2241_v56, %v2241_v56 }
 0x147   : > { %v1289_v62 = vmul.f32 %v2263_v6, %v2263_v6 }
 0x148   : > { %v1207_v9 = vadd.f32 %v1206_v44, %v2118_v10  ;;  %v1339_v14 = vadd.f32 %v1338_v8, %v1276_v1  ;;  %v1280_v10 = vmul.f32 %v2141_v23, %v2141_v23  ;;  %v1290_v8 = vmul.f32 %v2279_v39, %v2279_v39 }
 0x14a   : > { %v1208_v4 = vadd.f32 %v1207_v9, %v2124_v13  ;;  %v1340_v60 = vadd.f32 %v1339_v14, %v1277_v63  ;;  %v1281_v13 = vmul.f32 %v2155_v31, %v2155_v31 }
 0x14c   : > { %v1209_v12 = vadd.f32 %v1208_v4, %v2133_v19  ;;  %v1341_v26 = vadd.f32 %v1340_v60, %v1278_v7  ;;  %v848_v33 = vpop.f32.mrf.mxu3 }
 0x14d   : > { %v1866_v58 = vpack.c.bf16 %v848_v33, %v2332_v28 }
 0x14e   : > { %v1210_v16 = vadd.f32 %v1209_v12, %v2141_v23  ;;  %v1342_v29 = vadd.f32 %v1341_v26, %v1279_v2 }
 0x14f   : > { %1898 = vst [vmem:[%s2083_s16 + $0xf8] sm:$0xff] %v1866_v58   ;;  %v1306_v58 = vmul.f32 %v848_v33, %v848_v33 }
 0x150   : > { %v1343_v30 = vadd.f32 %v1342_v29, %v1280_v10  ;;  %v1211_v15 = vadd.f32 %v1210_v16, %v2155_v31 }
 0x152   : > { %v1212_v38 = vadd.f32 %v1211_v15, %v2163_v35  ;;  %v1344_v19 = vadd.f32 %v1343_v30, %v1281_v13 }
 0x154   : > { %v1213_v23 = vadd.f32 %v1212_v38, %v2177_v45  ;;  %v1345_v34 = vadd.f32 %v1344_v19, %v1282_v22 }
 0x156   : > { %v1214_v31 = vadd.f32 %v1213_v23, %v2185_v50  ;;  %v1346_v21 = vadd.f32 %v1345_v34, %v1283_v52  ;;  %v1287_v50 = vmul.f32 %v2223_v47, %v2223_v47 }
 0x158   : > { %v1215_v35 = vadd.f32 %v1214_v31, %v2201_v17  ;;  %v1347_v41 = vadd.f32 %v1346_v21, %v1284_v37  ;;  %v1302_v37 = vmul.f32 %v2281_v43, %v2281_v43 }
 0x15a   : > { %v1216_v57 = vadd.f32 %v1215_v35, %v2209_v53  ;;  %v1348_v45 = vadd.f32 %v1347_v41, %v1285_v42 }
 0x15c   : > { %v1349_v55 = vadd.f32 %v1348_v45, %v1286_v49  ;;  %v1217_v59 = vadd.f32 %v1216_v57, %v2223_v47  ;;  %v1291_v47 = vmul.f32 %v2135_v20, %v2135_v20 }
 0x15e   : > { %v1350_v48 = vadd.f32 %v1349_v55, %v1287_v50  ;;  %v1218_v17 = vadd.f32 %v1217_v59, %v2241_v56  ;;  %v1292_v56 = vmul.f32 %v2143_v24, %v2143_v24 }
 0x160   : > { %v1351_v5 = vadd.f32 %v1350_v48, %v1288_v40  ;;  %v1219_v53 = vadd.f32 %v1218_v17, %v2263_v6  ;;  %v1293_v6 = vmul.f32 %v2157_v32, %v2157_v32 }
 0x162   : > { %v1352_v1 = vadd.f32 %v1351_v5, %v1289_v62  ;;  %v1220_v44 = vadd.f32 %v1219_v53, %v2279_v39  ;;  %v1294_v39 = vmul.f32 %v2165_v36, %v2165_v36 }
 0x164   : > { %v1221_v63 = vadd.f32 %v1220_v44, %v2135_v20  ;;  %v1353_v9 = vadd.f32 %v1352_v1, %v1290_v8  ;;  %v1295_v20 = vmul.f32 %v2179_v46, %v2179_v46 }
 0x166   : > { %v1222_v14 = vadd.f32 %v1221_v63, %v2143_v24  ;;  %v1354_v7 = vadd.f32 %v1353_v9, %v1291_v47  ;;  %v1296_v24 = vmul.f32 %v2187_v51, %v2187_v51 }
 0x168   : > { %v1223_v4 = vadd.f32 %v1222_v14, %v2157_v32  ;;  %v1355_v60 = vadd.f32 %v1354_v7, %v1292_v56  ;;  %v1297_v32 = vmul.f32 %v2203_v0, %v2203_v0 }
 0x16a   : > { %v1224_v25 = vadd.f32 %v1223_v4, %v2165_v36  ;;  %v1356_v2 = vadd.f32 %v1355_v60, %v1293_v6  ;;  %v1298_v36 = vmul.f32 %v2211_v54, %v2211_v54 }
 0x16c   : > { %v1225_v12 = vadd.f32 %v1224_v25, %v2179_v46  ;;  %v1357_v26 = vadd.f32 %v1356_v2, %v1294_v39  ;;  %v1299_v46 = vmul.f32 %v2225_v11, %v2225_v11 }
 0x16e   : > { %v1226_v10 = vadd.f32 %v1225_v12, %v2187_v51  ;;  %v1358_v16 = vadd.f32 %v1357_v26, %v1295_v20  ;;  %v1300_v51 = vmul.f32 %v2243_v27, %v2243_v27 }
 0x170   : > { %v1359_v29 = vadd.f32 %v1358_v16, %v1296_v24  ;;  %v1227_v13 = vadd.f32 %v1226_v10, %v2203_v0  ;;  %v1301_v0 = vmul.f32 %v2265_v18, %v2265_v18 }
 0x172   : > { %v1228_v30 = vadd.f32 %v1227_v13, %v2211_v54  ;;  %v1360_v15 = vadd.f32 %v1359_v29, %v1297_v32 }
 0x174   : > { %v1229_v22 = vadd.f32 %v1228_v30, %v2225_v11  ;;  %v1361_v38 = vadd.f32 %v1360_v15, %v1298_v36 }
 0x176   : > { %v1230_v19 = vadd.f32 %v1229_v22, %v2243_v27  ;;  %v1362_v52 = vadd.f32 %v1361_v38, %v1299_v46  ;;  %v1303_v27 = vmul.f32 %v2301_v61, %v2301_v61 }
 0x178   : > { %v1231_v23 = vadd.f32 %v1230_v19, %v2265_v18  ;;  %v1363_v34 = vadd.f32 %v1362_v52, %v1300_v51  ;;  %v1304_v18 = vmul.f32 %v2315_v3, %v2315_v3 }
 0x17a   : > { %v1232_v54 = vadd.f32 %v1231_v23, %v2281_v43  ;;  %v1364_v11 = vadd.f32 %v1363_v34, %v1301_v0  ;;  %v1305_v43 = vmul.f32 %v2332_v28, %v2332_v28 }
 0x17c   : > { %v1365_v31 = vadd.f32 %v1364_v11, %v1302_v37  ;;  %v1233_v21 = vadd.f32 %v1232_v54, %v2301_v61 }
 0x17e   : > { %v1366_v42 = vadd.f32 %v1365_v31, %v1303_v27  ;;  %v1234_v35 = vadd.f32 %v1233_v21, %v2315_v3 }
 0x180   : > { %v1367_v41 = vadd.f32 %v1366_v42, %v1304_v18  ;;  %v1235_v57 = vadd.f32 %v1234_v35, %v2332_v28 }
 0x182   : > { %v1368_v49 = vadd.f32 %v1367_v41, %v1305_v43  ;;  %v1236_v45 = vadd.f32 %v1235_v57, %v848_v33 }
 0x184   : > { %v1237_v55 = vrot.slane %v1236_v45, 4  ;;  %v1369_v59 = vadd.f32 %v1368_v49, %v1306_v58 }
 0x186   : > { %v1238_v61 = vadd.f32 %v1237_v55, %v1236_v45  ;;  %v1370_v50 = vrot.slane %v1369_v59, 4 }
 0x188   : > { %v1239_v48 = vrot.slane %v1238_v61, 2  ;;  %v1371_v17 = vadd.f32 %v1370_v50, %v1369_v59 }
 0x18a   : > { %v1240_v40 = vadd.f32 %v1239_v48, %v1238_v61  ;;  %v1372_v5 = vrot.slane %v1371_v17, 2 }
 0x18c   : > { %v1241_v3 = vrot.slane %v1240_v40, 1  ;;  %v1373_v53 = vadd.f32 %v1372_v5, %v1371_v17 }
 0x18e   : > { %v1374_v62 = vrot.slane %v1373_v53, 1  ;;  %v1242_v1 = vadd.f32 %v1241_v3, %v1240_v40 }
 0x190   : > { %v1375_v28 = vadd.f32 %v1374_v62, %v1373_v53 }
 0x192   : > { %v1377_v33 = vsel %vm1376_vm0, %v1242_v1, %v1375_v28 }
 0x193   : > { %v1379_v44 = vsel %vm1378_vm1, %v1377_v33, 0.0 }
 0x194   : > { %1380 = vst [vmem:[%s229_s20] sm:$0xff] %v1379_v44 }
 0x195 PF: > { %s14_s14 = sadd.s32 1, %s1969_s14   ;;  %s2423_s12 = smov %s1965_s13 }
 0x196   : > { %p11_p6 = scmp.ge.s32.totalorder %s14_s14, 10   ;;  %s2424_s13 = smov %s2426_s15 }
 0x198   :  { %13 = sbr.rel (!%p11_p6) target bundleno = 2 (0x2), region = 81 }

// kernel: conv3d_block_forward.3
= control target key start
LH: loop header
LB: loop body
LE: loop exit
PB: predicated region body
PF: predicated region fallthrough
CT: control target
= control target key end

     0   :  { %s3489_s12 = smov 0   ;;  %s4927_s0 = inlined_call_operand.vmem [shape: bf16[4096,128], index: 0, kind: input, shape index: {}, may-alias: {0,3}]   ;;  %s4928_s1 = inlined_call_operand.vmem [shape: f32[1,128], index: 1, kind: input, shape index: {}]   ;;  %s4929_s2 = inlined_call_operand.vmem [shape: f32[1,128], index: 2, kind: input, shape index: {}]   ;;  %s4930_s3 = inlined_call_operand.vmem [shape: bf16[4096,128], index: 3, kind: output, shape index: {}, may-alias: {0,3}]  }
   0x1 LB: > { %s2030_s13 = sadd.s32 4294967295, %s3467_s12   ;;  %p2034_p0 = scmp.ge.s32.totalorder %s3467_s12, 1  ;;  %s3467_s12 = sphi %s3489_s12, %s13_s12  }
   0x2   : > { %p138_p1 = scmp.lt.s32.totalorder %s3467_s12, 3 }
   0x4   : > { %p139_p2 = pnand %p2034_p0, %p138_p1 }
   0x6   : > { %142 = sbr.rel (%p139_p2) target bundleno = 393 (0x189), region = 32 }
   0xb   : > { %s2035_s14 = sshll.u32 %s2030_s13, 8  ;;  %v3607_v55 = vld [vmem:[%s4928_s1] ss:$0 sm:$0xff] }
   0xc   : > { %p163_p3 = scmp.lt.s32.totalorder %s2035_s14, 511  ;;  %v3616_v60 = vld [vmem:[%s4929_s2] ss:$0 sm:$0xff] }
   0xe   : > { %s5210_s14 = smov (!%p163_p3, %s2035_s14), 511 }
   0xf   : > { %s2036_s15 = sshll.u32 %s5210_s14, 2 }
  0x10   : > { %s3505_s18 = scalar_lea.vmem %s4927_s0, %s2036_s15  ;;  %s3663_s25 = scalar_lea.vmem %s4930_s3, %s2036_s15 }
  0x11   : > { %v3508_v0 = vld [vmem:[%s3505_s18] sm:$0xff]   ;;  %v3511_v1 = vld [vmem:[%s3505_s18 + $0x8] sm:$0xff]   ;;  %v3514_v2 = vld [vmem:[%s3505_s18 + $0x10] sm:$0xff]  }
  0x12   : > { %v3517_v3 = vld [vmem:[%s3505_s18 + $0x18] sm:$0xff]   ;;  %v3520_v4 = vld [vmem:[%s3505_s18 + $0x20] sm:$0xff]   ;;  %v2043_v5 = vunpack.c.l.bf16 %v3508_v0  ;;  %v2044_v6 = vunpack.c.h.bf16 %v3508_v0  ;;  %v3525_v7 = vld [vmem:[%s3505_s18 + $0x28] sm:$0xff]   ;;  %v2047_v11 = vunpack.c.l.bf16 %v3511_v1  ;;  %v2048_v12 = vunpack.c.h.bf16 %v3511_v1 }
  0x13   : > { %v3528_v8 = vld [vmem:[%s3505_s18 + $0x30] sm:$0xff]   ;;  %v3531_v9 = vld [vmem:[%s3505_s18 + $0x38] sm:$0xff]   ;;  %v3534_v10 = vld [vmem:[%s3505_s18 + $0x40] sm:$0xff]   ;;  %v2051_v13 = vunpack.c.l.bf16 %v3514_v2  ;;  %v2052_v14 = vunpack.c.h.bf16 %v3514_v2  ;;  %v2055_v17 = vunpack.c.l.bf16 %v3517_v3  ;;  %v2056_v18 = vunpack.c.h.bf16 %v3517_v3 }
  0x14   : > { %v3541_v15 = vld [vmem:[%s3505_s18 + $0x48] sm:$0xff]   ;;  %v3544_v16 = vld [vmem:[%s3505_s18 + $0x50] sm:$0xff]   ;;  %v3551_v21 = vld [vmem:[%s3505_s18 + $0x58] sm:$0xff]   ;;  %v690_v1 = vmul.f32 %v3607_v55, %v2043_v5  ;;  %v691_v2 = vmul.f32 %v3607_v55, %v2044_v6  ;;  %v692_v3 = vmul.f32 %v3607_v55, %v2047_v11  ;;  %v693_v59 = vmul.f32 %v3607_v55, %v2048_v12 }
  0x15   : > { %v3554_v22 = vld [vmem:[%s3505_s18 + $0x60] sm:$0xff]   ;;  %v3561_v27 = vld [vmem:[%s3505_s18 + $0x68] sm:$0xff]   ;;  %v3564_v28 = vld [vmem:[%s3505_s18 + $0x70] sm:$0xff]   ;;  %v694_v58 = vmul.f32 %v3607_v55, %v2051_v13  ;;  %v695_v57 = vmul.f32 %v3607_v55, %v2052_v14  ;;  %v696_v62 = vmul.f32 %v3607_v55, %v2055_v17  ;;  %v697_v63 = vmul.f32 %v3607_v55, %v2056_v18 }
  0x16   : > { %v3571_v33 = vld [vmem:[%s3505_s18 + $0x78] sm:$0xff]   ;;  %v3574_v34 = vld [vmem:[%s3505_s18 + $0x80] sm:$0xff]   ;;  %v3581_v39 = vld [vmem:[%s3505_s18 + $0x88] sm:$0xff]   ;;  %v3631_v5 = vadd.f32 %v3616_v60, %v690_v1  ;;  %v3634_v6 = vadd.f32 %v3616_v60, %v691_v2  ;;  %v3637_v11 = vadd.f32 %v3616_v60, %v692_v3  ;;  %v3640_v12 = vadd.f32 %v3616_v60, %v693_v59 }
  0x17   : > { %v3584_v40 = vld [vmem:[%s3505_s18 + $0x90] sm:$0xff]   ;;  %v3591_v45 = vld [vmem:[%s3505_s18 + $0x98] sm:$0xff]   ;;  %v3594_v46 = vld [vmem:[%s3505_s18 + $0xa0] sm:$0xff]   ;;  %v3643_v13 = vadd.f32 %v3616_v60, %v694_v58  ;;  %v3646_v14 = vadd.f32 %v3616_v60, %v695_v57  ;;  %v3649_v17 = vadd.f32 %v3616_v60, %v696_v62  ;;  %v3652_v18 = vadd.f32 %v3616_v60, %v697_v63 }
  0x18   : > { %v3666_v62 = vld [vmem:[%s3505_s18 + $0xa8] sm:$0xff]   ;;  %v3669_v63 = vld [vmem:[%s3505_s18 + $0xb0] sm:$0xff]   ;;  %v3672_v2 = vld [vmem:[%s3505_s18 + $0xb8] sm:$0xff]  }
  0x19   : > { %v3675_v3 = vld [vmem:[%s3505_s18 + $0xc0] sm:$0xff]   ;;  %v3678_v0 = vld [vmem:[%s3505_s18 + $0xc8] sm:$0xff]   ;;  %v3681_v61 = vld [vmem:[%s3505_s18 + $0xd0] sm:$0xff]  }
  0x1a   : > { %v3684_v56 = vld [vmem:[%s3505_s18 + $0xd8] sm:$0xff]   ;;  %v3687_v54 = vld [vmem:[%s3505_s18 + $0xe0] sm:$0xff]   ;;  %v3690_v53 = vld [vmem:[%s3505_s18 + $0xe8] sm:$0xff]  }
  0x1b   : > { %v3693_v52 = vld [vmem:[%s3505_s18 + $0xf0] sm:$0xff]   ;;  %v3696_v51 = vld [vmem:[%s3505_s18 + $0xf8] sm:$0xff]   ;;  %v3699_v50 = vld [vmem:[%s3505_s18 + $0x100] sm:$0xff]  }
  0x1c   : > { %v3702_v49 = vld [vmem:[%s3505_s18 + $0x108] sm:$0xff]   ;;  %v3705_v48 = vld [vmem:[%s3505_s18 + $0x110] sm:$0xff]   ;;  %v3708_v47 = vld [vmem:[%s3505_s18 + $0x118] sm:$0xff]  }
  0x1d   : > { %v3711_v44 = vld [vmem:[%s3505_s18 + $0x120] sm:$0xff]   ;;  %v3714_v43 = vld [vmem:[%s3505_s18 + $0x128] sm:$0xff]   ;;  %v3717_v42 = vld [vmem:[%s3505_s18 + $0x130] sm:$0xff]  }
  0x1e   : > { %v3720_v41 = vld [vmem:[%s3505_s18 + $0x138] sm:$0xff]   ;;  %v3723_v38 = vld [vmem:[%s3505_s18 + $0x140] sm:$0xff]   ;;  %v3726_v37 = vld [vmem:[%s3505_s18 + $0x148] sm:$0xff]  }
  0x1f   : > { %v3729_v36 = vld [vmem:[%s3505_s18 + $0x150] sm:$0xff]   ;;  %v3732_v35 = vld [vmem:[%s3505_s18 + $0x158] sm:$0xff]   ;;  %v3735_v32 = vld [vmem:[%s3505_s18 + $0x160] sm:$0xff]  }
  0x20   : > { %v3738_v31 = vld [vmem:[%s3505_s18 + $0x168] sm:$0xff]   ;;  %v3741_v30 = vld [vmem:[%s3505_s18 + $0x170] sm:$0xff]   ;;  %v3744_v29 = vld [vmem:[%s3505_s18 + $0x178] sm:$0xff]  }
  0x21   : > { %5011 = vst [vmem:[#allocation2_spill] sm:$0xff] %v3744_v29  ;;  %v3747_v26 = vld [vmem:[%s3505_s18 + $0x180] sm:$0xff]   ;;  %v3750_v25 = vld [vmem:[%s3505_s18 + $0x188] sm:$0xff]   ;;  %v3753_v24 = vld [vmem:[%s3505_s18 + $0x190] sm:$0xff]   ;;  %v5093_v29 = vunpack.c.l.bf16 %v3520_v4 }
  0x22   : > { %5012 = vst [vmem:[#allocation3_spill] sm:$0xff] %v3747_v26  ;;  %v3756_v23 = vld [vmem:[%s3505_s18 + $0x198] sm:$0xff]   ;;  %v3759_v20 = vld [vmem:[%s3505_s18 + $0x1a0] sm:$0xff]   ;;  %v3762_v19 = vld [vmem:[%s3505_s18 + $0x1a8] sm:$0xff]  }
  0x23   : > { %5013 = vst [vmem:[#allocation4_spill] sm:$0xff] %v3750_v25  ;;  %v3765_v57 = vld [vmem:[%s3505_s18 + $0x1b0] sm:$0xff]   ;;  %v3768_v58 = vld [vmem:[%s3505_s18 + $0x1b8] sm:$0xff]   ;;  %v3771_v1 = vld [vmem:[%s3505_s18 + $0x1c0] sm:$0xff]  }
  0x24   : > { %5014 = vst [vmem:[#allocation5_spill] sm:$0xff] %v3753_v24  ;;  %v3774_v59 = vld [vmem:[%s3505_s18 + $0x1c8] sm:$0xff]   ;;  %v3924_v24 = vld [vmem:[%s3505_s18 + $0x358] sm:$0xff]   ;;  %v3933_v25 = vld [vmem:[%s3505_s18 + $0x370] sm:$0xff]  }
  0x25   : > { %5015 = vst [vmem:[#allocation6_spill] sm:$0xff] %v3756_v23  ;;  %v3777_v23 = vld [vmem:[%s3505_s18 + $0x1d0] sm:$0xff]   ;;  %v3979_v26 = vld [vmem:[%s3505_s18 + $0x3e0] sm:$0xff]  }
  0x26   : > { %5016 = vst [vmem:[#allocation7_spill] sm:$0xff] %v3759_v20  ;;  %v3780_v20 = vld [vmem:[%s3505_s18 + $0x1d8] sm:$0xff]  }
  0x27   : > { %5017 = vst [vmem:[#allocation8_spill] sm:$0xff] %v3762_v19  ;;  %v3783_v19 = vld [vmem:[%s3505_s18 + $0x1e0] sm:$0xff]  }
  0x28   : > { %5018 = vst [vmem:[#allocation9_spill] sm:$0xff] %v3765_v57  ;;  %v3786_v57 = vld [vmem:[%s3505_s18 + $0x1e8] sm:$0xff]  }
  0x29   : > { %5019 = vst [vmem:[#allocation10_spill] sm:$0xff] %v3768_v58  ;;  %v3789_v58 = vld [vmem:[%s3505_s18 + $0x1f0] sm:$0xff]  }
  0x2a   : > { %5020 = vst [vmem:[#allocation11_spill] sm:$0xff] %v3771_v1  ;;  %v3792_v1 = vld [vmem:[%s3505_s18 + $0x1f8] sm:$0xff]  }
  0x2b   : > { %5021 = vst [vmem:[#allocation12_spill] sm:$0xff] %v3774_v59  ;;  %v3795_v59 = vld [vmem:[%s3505_s18 + $0x200] sm:$0xff]  }
  0x2c   : > { %5022 = vst [vmem:[#allocation13_spill] sm:$0xff] %v3777_v23  ;;  %v3798_v23 = vld [vmem:[%s3505_s18 + $0x208] sm:$0xff]  }
  0x2d   : > { %5023 = vst [vmem:[#allocation14_spill] sm:$0xff] %v3780_v20  ;;  %v3801_v20 = vld [vmem:[%s3505_s18 + $0x210] sm:$0xff]  }
  0x2e   : > { %5024 = vst [vmem:[#allocation15_spill] sm:$0xff] %v3783_v19  ;;  %v3804_v19 = vld [vmem:[%s3505_s18 + $0x218] sm:$0xff]  }
  0x2f   : > { %5025 = vst [vmem:[#allocation16_spill] sm:$0xff] %v3786_v57  ;;  %v3807_v57 = vld [vmem:[%s3505_s18 + $0x220] sm:$0xff]  }
  0x30   : > { %5026 = vst [vmem:[#allocation17_spill] sm:$0xff] %v3789_v58  ;;  %v3810_v58 = vld [vmem:[%s3505_s18 + $0x228] sm:$0xff]  }
  0x31   : > { %5027 = vst [vmem:[#allocation18_spill] sm:$0xff] %v3792_v1  ;;  %v3813_v1 = vld [vmem:[%s3505_s18 + $0x230] sm:$0xff]  }
  0x32   : > { %5028 = vst [vmem:[#allocation19_spill] sm:$0xff] %v3795_v59  ;;  %v3816_v59 = vld [vmem:[%s3505_s18 + $0x238] sm:$0xff]  }
  0x33   : > { %5029 = vst [vmem:[#allocation20_spill] sm:$0xff] %v3798_v23  ;;  %v3819_v23 = vld [vmem:[%s3505_s18 + $0x240] sm:$0xff]  }
  0x34   : > { %5030 = vst [vmem:[#allocation21_spill] sm:$0xff] %v3801_v20  ;;  %v3822_v20 = vld [vmem:[%s3505_s18 + $0x248] sm:$0xff]  }
  0x35   : > { %5031 = vst [vmem:[#allocation22_spill] sm:$0xff] %v3804_v19  ;;  %v3825_v19 = vld [vmem:[%s3505_s18 + $0x250] sm:$0xff]  }
  0x36   : > { %5032 = vst [vmem:[#allocation23_spill] sm:$0xff] %v3807_v57  ;;  %v3828_v57 = vld [vmem:[%s3505_s18 + $0x258] sm:$0xff]  }
  0x37   : > { %5033 = vst [vmem:[#allocation24_spill] sm:$0xff] %v3810_v58  ;;  %v3831_v58 = vld [vmem:[%s3505_s18 + $0x260] sm:$0xff]  }
  0x38   : > { %5034 = vst [vmem:[#allocation25_spill] sm:$0xff] %v3813_v1  ;;  %v3834_v1 = vld [vmem:[%s3505_s18 + $0x268] sm:$0xff]  }
  0x39   : > { %5035 = vst [vmem:[#allocation26_spill] sm:$0xff] %v3816_v59  ;;  %v3837_v59 = vld [vmem:[%s3505_s18 + $0x270] sm:$0xff]  }
  0x3a   : > { %5036 = vst [vmem:[#allocation27_spill] sm:$0xff] %v3819_v23  ;;  %v3840_v23 = vld [vmem:[%s3505_s18 + $0x278] sm:$0xff]  }
  0x3b   : > { %5037 = vst [vmem:[#allocation28_spill] sm:$0xff] %v3822_v20  ;;  %v3843_v20 = vld [vmem:[%s3505_s18 + $0x280] sm:$0xff]  }
  0x3c   : > { %5038 = vst [vmem:[#allocation29_spill] sm:$0xff] %v3825_v19  ;;  %v3846_v19 = vld [vmem:[%s3505_s18 + $0x288] sm:$0xff]  }
  0x3d   : > { %5039 = vst [vmem:[#allocation30_spill] sm:$0xff] %v3828_v57  ;;  %v3849_v57 = vld [vmem:[%s3505_s18 + $0x290] sm:$0xff]  }
  0x3e   : > { %5040 = vst [vmem:[#allocation31_spill] sm:$0xff] %v3831_v58  ;;  %v3852_v58 = vld [vmem:[%s3505_s18 + $0x298] sm:$0xff]  }
  0x3f   : > { %5041 = vst [vmem:[#allocation32_spill] sm:$0xff] %v3834_v1  ;;  %v3855_v1 = vld [vmem:[%s3505_s18 + $0x2a0] sm:$0xff]  }
  0x40   : > { %5042 = vst [vmem:[#allocation33_spill] sm:$0xff] %v3837_v59  ;;  %v3858_v59 = vld [vmem:[%s3505_s18 + $0x2a8] sm:$0xff]  }
  0x41   : > { %5043 = vst [vmem:[#allocation34_spill] sm:$0xff] %v3840_v23  ;;  %v3861_v23 = vld [vmem:[%s3505_s18 + $0x2b0] sm:$0xff]  }
  0x42   : > { %5044 = vst [vmem:[#allocation35_spill] sm:$0xff] %v3843_v20  ;;  %v3864_v20 = vld [vmem:[%s3505_s18 + $0x2b8] sm:$0xff]  }
  0x43   : > { %5045 = vst [vmem:[#allocation36_spill] sm:$0xff] %v3846_v19  ;;  %v3867_v19 = vld [vmem:[%s3505_s18 + $0x2c0] sm:$0xff]  }
  0x44   : > { %5046 = vst [vmem:[#allocation37_spill] sm:$0xff] %v3849_v57  ;;  %v3870_v57 = vld [vmem:[%s3505_s18 + $0x2c8] sm:$0xff]  }
  0x45   : > { %5047 = vst [vmem:[#allocation38_spill] sm:$0xff] %v3852_v58  ;;  %v3873_v58 = vld [vmem:[%s3505_s18 + $0x2d0] sm:$0xff]  }
  0x46   : > { %5048 = vst [vmem:[#allocation39_spill] sm:$0xff] %v3855_v1  ;;  %v3876_v1 = vld [vmem:[%s3505_s18 + $0x2d8] sm:$0xff]  }
  0x47   : > { %5049 = vst [vmem:[#allocation40_spill] sm:$0xff] %v3858_v59  ;;  %v3879_v59 = vld [vmem:[%s3505_s18 + $0x2e0] sm:$0xff]  }
  0x48   : > { %5050 = vst [vmem:[#allocation41_spill] sm:$0xff] %v3861_v23  ;;  %v3882_v23 = vld [vmem:[%s3505_s18 + $0x2e8] sm:$0xff]  }
  0x49   : > { %5051 = vst [vmem:[#allocation42_spill] sm:$0xff] %v3864_v20  ;;  %v3885_v20 = vld [vmem:[%s3505_s18 + $0x2f0] sm:$0xff]  }
  0x4a   : > { %5052 = vst [vmem:[#allocation43_spill] sm:$0xff] %v3867_v19  ;;  %v3888_v19 = vld [vmem:[%s3505_s18 + $0x2f8] sm:$0xff]  }
  0x4b   : > { %5053 = vst [vmem:[#allocation44_spill] sm:$0xff] %v3870_v57  ;;  %v3891_v57 = vld [vmem:[%s3505_s18 + $0x300] sm:$0xff]  }
  0x4c   : > { %5054 = vst [vmem:[#allocation45_spill] sm:$0xff] %v3873_v58  ;;  %v3894_v58 = vld [vmem:[%s3505_s18 + $0x308] sm:$0xff]  }
  0x4d   : > { %5055 = vst [vmem:[#allocation46_spill] sm:$0xff] %v3876_v1  ;;  %v3897_v1 = vld [vmem:[%s3505_s18 + $0x310] sm:$0xff]  }
  0x4e   : > { %5056 = vst [vmem:[#allocation47_spill] sm:$0xff] %v3879_v59  ;;  %v3900_v59 = vld [vmem:[%s3505_s18 + $0x318] sm:$0xff]  }
  0x4f   : > { %5057 = vst [vmem:[#allocation48_spill] sm:$0xff] %v3882_v23  ;;  %v3903_v23 = vld [vmem:[%s3505_s18 + $0x320] sm:$0xff]  }
  0x50   : > { %5058 = vst [vmem:[#allocation49_spill] sm:$0xff] %v3885_v20  ;;  %v3906_v20 = vld [vmem:[%s3505_s18 + $0x328] sm:$0xff]  }
  0x51   : > { %5059 = vst [vmem:[#allocation50_spill] sm:$0xff] %v3888_v19  ;;  %v3909_v19 = vld [vmem:[%s3505_s18 + $0x330] sm:$0xff]  }
  0x52   : > { %5060 = vst [vmem:[#allocation51_spill] sm:$0xff] %v3891_v57  ;;  %v3912_v57 = vld [vmem:[%s3505_s18 + $0x338] sm:$0xff]  }
  0x53   : > { %5061 = vst [vmem:[#allocation52_spill] sm:$0xff] %v3894_v58  ;;  %v3915_v58 = vld [vmem:[%s3505_s18 + $0x340] sm:$0xff]  }
  0x54   : > { %5062 = vst [vmem:[#allocation53_spill] sm:$0xff] %v3897_v1  ;;  %v3918_v1 = vld [vmem:[%s3505_s18 + $0x348] sm:$0xff]  }
  0x55   : > { %5063 = vst [vmem:[#allocation54_spill] sm:$0xff] %v3900_v59  ;;  %v3921_v59 = vld [vmem:[%s3505_s18 + $0x350] sm:$0xff]  }
  0x56   : > { %5064 = vst [vmem:[#allocation55_spill] sm:$0xff] %v3903_v23  ;;  %v3927_v23 = vld [vmem:[%s3505_s18 + $0x360] sm:$0xff]  }
  0x57   : > { %5065 = vst [vmem:[#allocation56_spill] sm:$0xff] %v3906_v20  ;;  %v3930_v20 = vld [vmem:[%s3505_s18 + $0x368] sm:$0xff]  }
  0x58   : > { %5066 = vst [vmem:[#allocation57_spill] sm:$0xff] %v3909_v19  ;;  %v3936_v19 = vld [vmem:[%s3505_s18 + $0x378] sm:$0xff]  }
  0x59   : > { %5067 = vst [vmem:[#allocation58_spill] sm:$0xff] %v3912_v57  ;;  %v3939_v57 = vld [vmem:[%s3505_s18 + $0x380] sm:$0xff]  }
  0x5a   : > { %5068 = vst [vmem:[#allocation59_spill] sm:$0xff] %v3915_v58  ;;  %v3942_v58 = vld [vmem:[%s3505_s18 + $0x388] sm:$0xff]  }
  0x5b   : > { %5069 = vst [vmem:[#allocation60_spill] sm:$0xff] %v3918_v1  ;;  %v3945_v1 = vld [vmem:[%s3505_s18 + $0x390] sm:$0xff]  }
  0x5c   : > { %5070 = vst [vmem:[#allocation61_spill] sm:$0xff] %v3921_v59  ;;  %v3948_v59 = vld [vmem:[%s3505_s18 + $0x398] sm:$0xff]  }
  0x5d   : > { %5071 = vst [vmem:[#allocation62_spill] sm:$0xff] %v3924_v24  ;;  %v3951_v24 = vld [vmem:[%s3505_s18 + $0x3a0] sm:$0xff]  }
  0x5e   : > { %5072 = vst [vmem:[#allocation63_spill] sm:$0xff] %v3927_v23  ;;  %v3954_v23 = vld [vmem:[%s3505_s18 + $0x3a8] sm:$0xff]  }
  0x5f   : > { %5073 = vst [vmem:[#allocation64_spill] sm:$0xff] %v3930_v20  ;;  %v3957_v20 = vld [vmem:[%s3505_s18 + $0x3b0] sm:$0xff]  }
  0x60   : > { %5074 = vst [vmem:[#allocation65_spill] sm:$0xff] %v3933_v25  ;;  %v3960_v25 = vld [vmem:[%s3505_s18 + $0x3b8] sm:$0xff]  }
  0x61   : > { %5075 = vst [vmem:[#allocation66_spill] sm:$0xff] %v3936_v19  ;;  %v3963_v19 = vld [vmem:[%s3505_s18 + $0x3c0] sm:$0xff]  }
  0x62   : > { %5076 = vst [vmem:[#allocation67_spill] sm:$0xff] %v3939_v57  ;;  %v3966_v57 = vld [vmem:[%s3505_s18 + $0x3c8] sm:$0xff]  }
  0x63   : > { %5077 = vst [vmem:[#allocation68_spill] sm:$0xff] %v3942_v58  ;;  %v1210_v58 = vmax.f32 %v3643_v13, 0.0  ;;  %v5091_v13 = vmax.f32 %v3637_v11, 0.0  ;;  %v5097_v11 = vunpack.c.l.bf16 %v3525_v7 }
  0x64   : > { %5078 = vst [vmem:[#allocation69_spill] sm:$0xff] %v3945_v1  ;;  %v1211_v1 = vmax.f32 %v3646_v14, 0.0  ;;  %v5092_v14 = vmax.f32 %v3640_v12, 0.0 }
  0x65   : > { %5079 = vst [vmem:[#allocation70_spill] sm:$0xff] %v3948_v59  ;;  %v1212_v59 = vmax.f32 %v3649_v17, 0.0  ;;  %v700_v12 = vmul.f32 %v3607_v55, %v5097_v11 }
  0x66   : > { %5080 = vst [vmem:[#allocation71_spill] sm:$0xff] %v3951_v24  ;;  %v3973_v24 = vld [vmem:[%s3505_s18 + $0x3d0] sm:$0xff]   ;;  %v2561_v17 = vpack.c.bf16 %v5092_v14, %v5091_v13  ;;  %v5098_v13 = vunpack.c.h.bf16 %v3525_v7  ;;  %v5099_v14 = vunpack.c.l.bf16 %v3528_v8 }
  0x67   : > { %5081 = vst [vmem:[#allocation72_spill] sm:$0xff] %v3954_v23  ;;  %v1213_v23 = vmax.f32 %v3652_v18, 0.0  ;;  %v698_v18 = vmul.f32 %v3607_v55, %v5093_v29 }
  0x68   : > { %5082 = vst [vmem:[#allocation73_spill] sm:$0xff] %v3957_v20  ;;  %v3976_v20 = vld [vmem:[%s3505_s18 + $0x3d8] sm:$0xff]   ;;  %v701_v29 = vmul.f32 %v3607_v55, %v5098_v13 }
  0x69   : > { %5083 = vst [vmem:[#allocation74_spill] sm:$0xff] %v3960_v25  ;;  %v5089_v25 = vmax.f32 %v3631_v5, 0.0  ;;  %v3999_v5 = vld [vmem:[%s3505_s18 + $0x3f0] sm:$0xff]  }
  0x6a   : > { %5084 = vst [vmem:[#allocation75_spill] sm:$0xff] %v3963_v19  ;;  %v5090_v19 = vmax.f32 %v3634_v6, 0.0  ;;  %v2571_v6 = vpack.c.bf16 %v1213_v23, %v1212_v59  ;;  %v5100_v23 = vunpack.c.h.bf16 %v3528_v8  ;;  %v961_v7 = vadd.f32 %v3616_v60, %v701_v29 }
  0x6b   : > { %5085 = vst [vmem:[#allocation76_spill] sm:$0xff] %v3966_v57 }
  0x6c   : > { %5086 = vst [vmem:[#allocation77_spill] sm:$0xff] %v3973_v24  ;;  %v2556_v57 = vpack.c.bf16 %v5090_v19, %v5089_v25  ;;  %v5094_v24 = vunpack.c.h.bf16 %v3520_v4  ;;  %v4002_v19 = vld [vmem:[%s3505_s18 + $0x3f8] sm:$0xff]   ;;  %v2566_v25 = vpack.c.bf16 %v1211_v1, %v1210_v58  ;;  %v958_v4 = vadd.f32 %v3616_v60, %v698_v18 }
  0x6d   : > { %5087 = vst [vmem:[#allocation78_spill] sm:$0xff] %v3976_v20  ;;  %v703_v59 = vmul.f32 %v3607_v55, %v5100_v23  ;;  %v960_v1 = vadd.f32 %v3616_v60, %v700_v12  ;;  %v5101_v58 = vunpack.c.l.bf16 %v3531_v9  ;;  %v5102_v18 = vunpack.c.h.bf16 %v3531_v9 }
  0x6e   : > { %5088 = vst [vmem:[#allocation79_spill] sm:$0xff] %v3979_v26  ;;  %v699_v20 = vmul.f32 %v3607_v55, %v5094_v24  ;;  %v3996_v26 = vld [vmem:[%s3505_s18 + $0x3e8] sm:$0xff]   ;;  %v1214_v11 = vmax.f32 %v958_v4, 0.0 }
  0x6f   : > { %5095 = vst [vmem:[#allocation80_spill] sm:$0xff] %v3999_v5  ;;  %v1216_v12 = vmax.f32 %v960_v1, 0.0 }
  0x70   : > { %5096 = vst [vmem:[#allocation81_spill] sm:$0xff] %v4002_v19  ;;  %v959_v24 = vadd.f32 %v3616_v60, %v699_v20  ;;  %v702_v19 = vmul.f32 %v3607_v55, %v5099_v14  ;;  %v705_v20 = vmul.f32 %v3607_v55, %v5102_v18  ;;  %v1217_v14 = vmax.f32 %v961_v7, 0.0 }
  0x71   : > { %2557 = vst [vmem:[%s3663_s25] sm:$0xff] %v2556_v57   ;;  %v704_v57 = vmul.f32 %v3607_v55, %v5101_v58 }
  0x72   : > { %3320 = vst [vmem:[%s3663_s25 + $0x8] sm:$0xff] %v2561_v17   ;;  %v1215_v13 = vmax.f32 %v959_v24, 0.0  ;;  %v962_v8 = vadd.f32 %v3616_v60, %v702_v19  ;;  %v963_v17 = vadd.f32 %v3616_v60, %v703_v59  ;;  %v965_v23 = vadd.f32 %v3616_v60, %v705_v20 }
  0x73   : > { %3321 = vst [vmem:[%s3663_s25 + $0x10] sm:$0xff] %v2566_v25   ;;  %v964_v29 = vadd.f32 %v3616_v60, %v704_v57  ;;  %v5103_v25 = vunpack.c.l.bf16 %v3534_v10  ;;  %v2581_v24 = vpack.c.bf16 %v1217_v14, %v1216_v12  ;;  %v5105_v57 = vunpack.c.l.bf16 %v3541_v15 }
  0x74   : > { %3322 = vst [vmem:[%s3663_s25 + $0x18] sm:$0xff] %v2571_v6   ;;  %v2576_v58 = vpack.c.bf16 %v1215_v13, %v1214_v11  ;;  %v1218_v9 = vmax.f32 %v962_v8, 0.0  ;;  %v1219_v5 = vmax.f32 %v963_v17, 0.0  ;;  %v1221_v18 = vmax.f32 %v965_v23, 0.0 }
  0x75   : > { %v706_v4 = vmul.f32 %v3607_v55, %v5103_v25  ;;  %v1220_v19 = vmax.f32 %v964_v29, 0.0  ;;  %v5104_v6 = vunpack.c.h.bf16 %v3534_v10  ;;  %v708_v20 = vmul.f32 %v3607_v55, %v5105_v57  ;;  %3324 = vst [vmem:[%s3663_s25 + $0x28] sm:$0xff] %v2581_v24  }
  0x76   : > { %3323 = vst [vmem:[%s3663_s25 + $0x20] sm:$0xff] %v2576_v58   ;;  %v2586_v1 = vpack.c.bf16 %v1219_v5, %v1218_v9  ;;  %v5106_v11 = vunpack.c.h.bf16 %v3541_v15  ;;  %v5107_v10 = vunpack.c.l.bf16 %v3544_v16  ;;  %v5108_v5 = vunpack.c.h.bf16 %v3544_v16 }
  0x77   : > { %v707_v59 = vmul.f32 %v3607_v55, %v5104_v6  ;;  %v966_v7 = vadd.f32 %v3616_v60, %v706_v4  ;;  %v2591_v8 = vpack.c.bf16 %v1221_v18, %v1220_v19  ;;  %v968_v23 = vadd.f32 %v3616_v60, %v708_v20 }
  0x78   : > { %v709_v13 = vmul.f32 %v3607_v55, %v5106_v11  ;;  %v710_v12 = vmul.f32 %v3607_v55, %v5107_v10  ;;  %v711_v14 = vmul.f32 %v3607_v55, %v5108_v5  ;;  %3325 = vst [vmem:[%s3663_s25 + $0x30] sm:$0xff] %v2586_v1   ;;  %v5109_v58 = vunpack.c.l.bf16 %v3551_v21 }
  0x79   : > { %v967_v17 = vadd.f32 %v3616_v60, %v707_v59  ;;  %v1222_v29 = vmax.f32 %v966_v7, 0.0  ;;  %3326 = vst [vmem:[%s3663_s25 + $0x38] sm:$0xff] %v2591_v8   ;;  %v5110_v16 = vunpack.c.h.bf16 %v3551_v21  ;;  %v1224_v18 = vmax.f32 %v968_v23, 0.0 }
  0x7a   : > { %v969_v15 = vadd.f32 %v3616_v60, %v709_v13  ;;  %v712_v9 = vmul.f32 %v3607_v55, %v5109_v58  ;;  %v970_v4 = vadd.f32 %v3616_v60, %v710_v12  ;;  %v971_v24 = vadd.f32 %v3616_v60, %v711_v14 }
  0x7b   : > { %v1223_v25 = vmax.f32 %v967_v17, 0.0  ;;  %v713_v19 = vmul.f32 %v3607_v55, %v5110_v16  ;;  %v5111_v1 = vunpack.c.l.bf16 %v3554_v22  ;;  %v5112_v21 = vunpack.c.h.bf16 %v3554_v22 }
  0x7c   : > { %v1225_v6 = vmax.f32 %v969_v15, 0.0  ;;  %v972_v59 = vadd.f32 %v3616_v60, %v712_v9  ;;  %v1226_v20 = vmax.f32 %v970_v4, 0.0  ;;  %v1227_v11 = vmax.f32 %v971_v24, 0.0 }
  0x7d   : > { %v714_v7 = vmul.f32 %v3607_v55, %v5111_v1  ;;  %v2596_v57 = vpack.c.bf16 %v1223_v25, %v1222_v29  ;;  %v973_v13 = vadd.f32 %v3616_v60, %v713_v19  ;;  %v715_v10 = vmul.f32 %v3607_v55, %v5112_v21 }
  0x7e   : > { %v2601_v8 = vpack.c.bf16 %v1225_v6, %v1224_v18  ;;  %v1228_v17 = vmax.f32 %v972_v59, 0.0  ;;  %v2606_v5 = vpack.c.bf16 %v1227_v11, %v1226_v20  ;;  %v5113_v23 = vunpack.c.l.bf16 %v3561_v27 }
  0x7f   : > { %v974_v12 = vadd.f32 %v3616_v60, %v714_v7  ;;  %3327 = vst [vmem:[%s3663_s25 + $0x40] sm:$0xff] %v2596_v57   ;;  %v1229_v14 = vmax.f32 %v973_v13, 0.0  ;;  %v5114_v15 = vunpack.c.h.bf16 %v3561_v27  ;;  %v975_v9 = vadd.f32 %v3616_v60, %v715_v10 }
  0x80   : > { %v716_v29 = vmul.f32 %v3607_v55, %v5113_v23  ;;  %3328 = vst [vmem:[%s3663_s25 + $0x48] sm:$0xff] %v2601_v8   ;;  %v5115_v25 = vunpack.c.l.bf16 %v3564_v28  ;;  %v5116_v24 = vunpack.c.h.bf16 %v3564_v28  ;;  %v5117_v6 = vunpack.c.l.bf16 %v3571_v33 }
  0x81   : > { %v717_v58 = vmul.f32 %v3607_v55, %v5114_v15  ;;  %v1230_v22 = vmax.f32 %v974_v12, 0.0  ;;  %3329 = vst [vmem:[%s3663_s25 + $0x50] sm:$0xff] %v2606_v5   ;;  %v2611_v19 = vpack.c.bf16 %v1229_v14, %v1228_v17  ;;  %v1231_v1 = vmax.f32 %v975_v9, 0.0 }
  0x82   : > { %v718_v4 = vmul.f32 %v3607_v55, %v5115_v25  ;;  %v719_v16 = vmul.f32 %v3607_v55, %v5116_v24  ;;  %v976_v18 = vadd.f32 %v3616_v60, %v716_v29  ;;  %v720_v59 = vmul.f32 %v3607_v55, %v5117_v6 }
  0x83   : > { %v977_v27 = vadd.f32 %v3616_v60, %v717_v58  ;;  %v5118_v28 = vunpack.c.h.bf16 %v3571_v33  ;;  %3330 = vst [vmem:[%s3663_s25 + $0x58] sm:$0xff] %v2611_v19   ;;  %v5119_v17 = vunpack.c.l.bf16 %v3574_v34  ;;  %v2616_v10 = vpack.c.bf16 %v1231_v1, %v1230_v22 }
  0x84   : > { %v978_v7 = vadd.f32 %v3616_v60, %v718_v4  ;;  %v979_v57 = vadd.f32 %v3616_v60, %v719_v16  ;;  %v1232_v11 = vmax.f32 %v976_v18, 0.0  ;;  %v980_v8 = vadd.f32 %v3616_v60, %v720_v59 }
  0x85   : > { %v721_v20 = vmul.f32 %v3607_v55, %v5118_v28  ;;  %v1233_v13 = vmax.f32 %v977_v27, 0.0  ;;  %v722_v21 = vmul.f32 %v3607_v55, %v5119_v17  ;;  %v5120_v29 = vunpack.c.h.bf16 %v3574_v34  ;;  %3331 = vst [vmem:[%s3663_s25 + $0x60] sm:$0xff] %v2616_v10  }
  0x86   : > { %v1234_v12 = vmax.f32 %v978_v7, 0.0  ;;  %v1235_v5 = vmax.f32 %v979_v57, 0.0  ;;  %v1236_v33 = vmax.f32 %v980_v8, 0.0  ;;  %v5121_v4 = vunpack.c.l.bf16 %v3581_v39 }
  0x87   : > { %v981_v14 = vadd.f32 %v3616_v60, %v721_v20  ;;  %v2621_v23 = vpack.c.bf16 %v1233_v13, %v1232_v11  ;;  %v723_v15 = vmul.f32 %v3607_v55, %v5120_v29  ;;  %v982_v58 = vadd.f32 %v3616_v60, %v722_v21 }
  0x88   : > { %v2626_v9 = vpack.c.bf16 %v1235_v5, %v1234_v12  ;;  %v724_v22 = vmul.f32 %v3607_v55, %v5121_v4  ;;  %v5122_v24 = vunpack.c.h.bf16 %v3581_v39  ;;  %v5123_v18 = vunpack.c.l.bf16 %v3584_v40 }
  0x89   : > { %v1237_v25 = vmax.f32 %v981_v14, 0.0  ;;  %3332 = vst [vmem:[%s3663_s25 + $0x68] sm:$0xff] %v2621_v23   ;;  %v983_v19 = vadd.f32 %v3616_v60, %v723_v15  ;;  %v1238_v34 = vmax.f32 %v982_v58, 0.0  ;;  %v5124_v6 = vunpack.c.h.bf16 %v3584_v40 }
  0x8a   : > { %v725_v16 = vmul.f32 %v3607_v55, %v5122_v24  ;;  %v726_v27 = vmul.f32 %v3607_v55, %v5123_v18  ;;  %3333 = vst [vmem:[%s3663_s25 + $0x70] sm:$0xff] %v2626_v9   ;;  %v984_v7 = vadd.f32 %v3616_v60, %v724_v22  ;;  %v5125_v57 = vunpack.c.l.bf16 %v3591_v45 }
  0x8b   : > { %v727_v59 = vmul.f32 %v3607_v55, %v5124_v6  ;;  %v2631_v1 = vpack.c.bf16 %v1237_v25, %v1236_v33  ;;  %v1239_v20 = vmax.f32 %v983_v19, 0.0  ;;  %v5126_v40 = vunpack.c.h.bf16 %v3591_v45 }
  0x8c   : > { %v985_v39 = vadd.f32 %v3616_v60, %v725_v16  ;;  %v728_v28 = vmul.f32 %v3607_v55, %v5125_v57  ;;  %v986_v11 = vadd.f32 %v3616_v60, %v726_v27  ;;  %v1240_v17 = vmax.f32 %v984_v7, 0.0 }
  0x8d   : > { %v987_v13 = vadd.f32 %v3616_v60, %v727_v59  ;;  %v729_v8 = vmul.f32 %v3607_v55, %v5126_v40  ;;  %3334 = vst [vmem:[%s3663_s25 + $0x78] sm:$0xff] %v2631_v1   ;;  %v5127_v12 = vunpack.c.l.bf16 %v3594_v46  ;;  %v2636_v14 = vpack.c.bf16 %v1239_v20, %v1238_v34 }
  0x8e   : > { %v1241_v21 = vmax.f32 %v985_v39, 0.0  ;;  %v988_v10 = vadd.f32 %v3616_v60, %v728_v28  ;;  %v1242_v23 = vmax.f32 %v986_v11, 0.0  ;;  %v5128_v58 = vunpack.c.h.bf16 %v3594_v46 }
  0x8f   : > { %v730_v5 = vmul.f32 %v3607_v55, %v5127_v12  ;;  %v1243_v33 = vmax.f32 %v987_v13, 0.0  ;;  %v989_v29 = vadd.f32 %v3616_v60, %v729_v8  ;;  %3335 = vst [vmem:[%s3663_s25 + $0x80] sm:$0xff] %v2636_v14   ;;  %v2127_v24 = vunpack.c.l.bf16 %v3666_v62 }
  0x90   : > { %v2641_v15 = vpack.c.bf16 %v1241_v21, %v1240_v17  ;;  %v1244_v45 = vmax.f32 %v988_v10, 0.0  ;;  %v731_v9 = vmul.f32 %v3607_v55, %v5128_v58  ;;  %v2128_v16 = vunpack.c.h.bf16 %v3666_v62 }
  0x91   : > { %v990_v25 = vadd.f32 %v3616_v60, %v730_v5  ;;  %v2646_v4 = vpack.c.bf16 %v1243_v33, %v1242_v23  ;;  %v1245_v22 = vmax.f32 %v989_v29, 0.0  ;;  %v2131_v18 = vunpack.c.l.bf16 %v3669_v63 }
  0x92   : > { %3336 = vst [vmem:[%s3663_s25 + $0x88] sm:$0xff] %v2641_v15   ;;  %v991_v19 = vadd.f32 %v3616_v60, %v731_v9  ;;  %v2132_v46 = vunpack.c.h.bf16 %v3669_v63  ;;  %v732_v6 = vmul.f32 %v3607_v55, %v2127_v24  ;;  %v733_v59 = vmul.f32 %v3607_v55, %v2128_v16 }
  0x93   : > { %v1246_v34 = vmax.f32 %v990_v25, 0.0  ;;  %3337 = vst [vmem:[%s3663_s25 + $0x90] sm:$0xff] %v2646_v4   ;;  %v2651_v27 = vpack.c.bf16 %v1245_v22, %v1244_v45  ;;  %v2135_v1 = vunpack.c.l.bf16 %v3672_v2  ;;  %v734_v39 = vmul.f32 %v3607_v55, %v2131_v18 }
  0x94   : > { %v1247_v7 = vmax.f32 %v991_v19, 0.0  ;;  %v735_v62 = vmul.f32 %v3607_v55, %v2132_v46  ;;  %v2136_v57 = vunpack.c.h.bf16 %v3672_v2  ;;  %v992_v28 = vadd.f32 %v3616_v60, %v732_v6 }
  0x95   : > { %3338 = vst [vmem:[%s3663_s25 + $0x98] sm:$0xff] %v2651_v27   ;;  %v993_v63 = vadd.f32 %v3616_v60, %v733_v59  ;;  %v736_v20 = vmul.f32 %v3607_v55, %v2135_v1  ;;  %v2139_v11 = vunpack.c.l.bf16 %v3675_v3  ;;  %v994_v40 = vadd.f32 %v3616_v60, %v734_v39 }
  0x96   : > { %v2656_v13 = vpack.c.bf16 %v1247_v7, %v1246_v34  ;;  %v995_v8 = vadd.f32 %v3616_v60, %v735_v62  ;;  %v737_v17 = vmul.f32 %v3607_v55, %v2136_v57  ;;  %v1248_v21 = vmax.f32 %v992_v28, 0.0 }
  0x97   : > { %v1249_v10 = vmax.f32 %v993_v63, 0.0  ;;  %v996_v2 = vadd.f32 %v3616_v60, %v736_v20  ;;  %v2140_v12 = vunpack.c.h.bf16 %v3675_v3  ;;  %v1250_v5 = vmax.f32 %v994_v40, 0.0 }
  0x98   : > { %3339 = vst [vmem:[%s3663_s25 + $0xa0] sm:$0xff] %v2656_v13   ;;  %v1251_v14 = vmax.f32 %v995_v8, 0.0  ;;  %v997_v23 = vadd.f32 %v3616_v60, %v737_v17  ;;  %v738_v33 = vmul.f32 %v3607_v55, %v2139_v11  ;;  %v2143_v58 = vunpack.c.l.bf16 %v3678_v0 }
  0x99   : > { %v2661_v29 = vpack.c.bf16 %v1249_v10, %v1248_v21  ;;  %v1252_v15 = vmax.f32 %v996_v2, 0.0  ;;  %v739_v45 = vmul.f32 %v3607_v55, %v2140_v12  ;;  %v2144_v3 = vunpack.c.h.bf16 %v3678_v0 }
  0x9a   : > { %v2666_v9 = vpack.c.bf16 %v1251_v14, %v1250_v5  ;;  %v1253_v25 = vmax.f32 %v997_v23, 0.0  ;;  %v998_v4 = vadd.f32 %v3616_v60, %v738_v33  ;;  %v740_v24 = vmul.f32 %v3607_v55, %v2143_v58 }
  0x9b   : > { %3340 = vst [vmem:[%s3663_s25 + $0xa8] sm:$0xff] %v2661_v29   ;;  %v999_v22 = vadd.f32 %v3616_v60, %v739_v45  ;;  %v2147_v16 = vunpack.c.l.bf16 %v3681_v61  ;;  %v2148_v19 = vunpack.c.h.bf16 %v3681_v61  ;;  %v741_v46 = vmul.f32 %v3607_v55, %v2144_v3 }
  0x9c   : > { %3341 = vst [vmem:[%s3663_s25 + $0xb0] sm:$0xff] %v2666_v9   ;;  %v2671_v34 = vpack.c.bf16 %v1253_v25, %v1252_v15  ;;  %v1254_v18 = vmax.f32 %v998_v4, 0.0  ;;  %v2151_v27 = vunpack.c.l.bf16 %v3684_v56  ;;  %v1000_v59 = vadd.f32 %v3616_v60, %v740_v24 }
  0x9d   : > { %v1255_v6 = vmax.f32 %v999_v22, 0.0  ;;  %v742_v0 = vmul.f32 %v3607_v55, %v2147_v16  ;;  %v743_v1 = vmul.f32 %v3607_v55, %v2148_v19  ;;  %v1001_v7 = vadd.f32 %v3616_v60, %v741_v46 }
  0x9e   : > { %3342 = vst [vmem:[%s3663_s25 + $0xb8] sm:$0xff] %v2671_v34   ;;  %v2152_v61 = vunpack.c.h.bf16 %v3684_v56  ;;  %v744_v39 = vmul.f32 %v3607_v55, %v2151_v27  ;;  %v2155_v62 = vunpack.c.l.bf16 %v3687_v54  ;;  %v1256_v28 = vmax.f32 %v1000_v59, 0.0 }
  0x9f   : > { %v2676_v57 = vpack.c.bf16 %v1255_v6, %v1254_v18  ;;  %v1002_v63 = vadd.f32 %v3616_v60, %v742_v0  ;;  %v1003_v20 = vadd.f32 %v3616_v60, %v743_v1  ;;  %v1257_v11 = vmax.f32 %v1001_v7, 0.0 }
  0xa0   : > { %v745_v13 = vmul.f32 %v3607_v55, %v2152_v61  ;;  %v1004_v40 = vadd.f32 %v3616_v60, %v744_v39  ;;  %v2156_v8 = vunpack.c.h.bf16 %v3687_v54  ;;  %v746_v21 = vmul.f32 %v3607_v55, %v2155_v62 }
  0xa1   : > { %3343 = vst [vmem:[%s3663_s25 + $0xc0] sm:$0xff] %v2676_v57   ;;  %v1258_v56 = vmax.f32 %v1002_v63, 0.0  ;;  %v1259_v17 = vmax.f32 %v1003_v20, 0.0  ;;  %v2159_v10 = vunpack.c.l.bf16 %v3690_v53  ;;  %v2681_v2 = vpack.c.bf16 %v1257_v11, %v1256_v28 }
  0xa2   : > { %v1005_v12 = vadd.f32 %v3616_v60, %v745_v13  ;;  %v1260_v5 = vmax.f32 %v1004_v40, 0.0  ;;  %v747_v14 = vmul.f32 %v3607_v55, %v2156_v8  ;;  %v1006_v33 = vadd.f32 %v3616_v60, %v746_v21 }
  0xa3   : > { %v2686_v23 = vpack.c.bf16 %v1259_v17, %v1258_v56  ;;  %v2160_v29 = vunpack.c.h.bf16 %v3690_v53  ;;  %v748_v54 = vmul.f32 %v3607_v55, %v2159_v10  ;;  %3344 = vst [vmem:[%s3663_s25 + $0xc8] sm:$0xff] %v2681_v2   ;;  %v2163_v58 = vunpack.c.l.bf16 %v3693_v52 }
  0xa4   : > { %v1261_v15 = vmax.f32 %v1005_v12, 0.0  ;;  %v1007_v45 = vadd.f32 %v3616_v60, %v747_v14  ;;  %v2164_v9 = vunpack.c.h.bf16 %v3693_v52  ;;  %v1262_v25 = vmax.f32 %v1006_v33, 0.0 }
  0xa5   : > { %3345 = vst [vmem:[%s3663_s25 + $0xd0] sm:$0xff] %v2686_v23   ;;  %v749_v4 = vmul.f32 %v3607_v55, %v2160_v29  ;;  %v1008_v3 = vadd.f32 %v3616_v60, %v748_v54  ;;  %v2167_v22 = vunpack.c.l.bf16 %v3696_v51  ;;  %v750_v16 = vmul.f32 %v3607_v55, %v2163_v58 }
  0xa6   : > { %v2691_v53 = vpack.c.bf16 %v1261_v15, %v1260_v5  ;;  %v1263_v24 = vmax.f32 %v1007_v45, 0.0  ;;  %v751_v19 = vmul.f32 %v3607_v55, %v2164_v9  ;;  %v2168_v52 = vunpack.c.h.bf16 %v3696_v51 }
  0xa7   : > { %v1009_v34 = vadd.f32 %v3616_v60, %v749_v4  ;;  %v1264_v18 = vmax.f32 %v1008_v3, 0.0  ;;  %v752_v46 = vmul.f32 %v3607_v55, %v2167_v22  ;;  %v1010_v6 = vadd.f32 %v3616_v60, %v750_v16 }
  0xa8   : > { %3346 = vst [vmem:[%s3663_s25 + $0xd8] sm:$0xff] %v2691_v53   ;;  %v2696_v27 = vpack.c.bf16 %v1263_v24, %v1262_v25  ;;  %v1011_v59 = vadd.f32 %v3616_v60, %v751_v19  ;;  %v2171_v0 = vunpack.c.l.bf16 %v3699_v50  ;;  %v753_v7 = vmul.f32 %v3607_v55, %v2168_v52 }
  0xa9   : > { %v1265_v1 = vmax.f32 %v1009_v34, 0.0  ;;  %v1012_v61 = vadd.f32 %v3616_v60, %v752_v46  ;;  %v2172_v39 = vunpack.c.h.bf16 %v3699_v50  ;;  %v1266_v51 = vmax.f32 %v1010_v6, 0.0 }
  0xaa   : > { %3347 = vst [vmem:[%s3663_s25 + $0xe0] sm:$0xff] %v2696_v27   ;;  %v1267_v62 = vmax.f32 %v1011_v59, 0.0  ;;  %v754_v57 = vmul.f32 %v3607_v55, %v2171_v0  ;;  %v2175_v28 = vunpack.c.l.bf16 %v3702_v49  ;;  %v1013_v20 = vadd.f32 %v3616_v60, %v753_v7 }
  0xab   : > { %v2701_v63 = vpack.c.bf16 %v1265_v1, %v1264_v18  ;;  %v1268_v11 = vmax.f32 %v1012_v61, 0.0  ;;  %v755_v13 = vmul.f32 %v3607_v55, %v2172_v39  ;;  %v2176_v56 = vunpack.c.h.bf16 %v3702_v49 }
  0xac   : > { %v2706_v40 = vpack.c.bf16 %v1267_v62, %v1266_v51  ;;  %v1014_v8 = vadd.f32 %v3616_v60, %v754_v57  ;;  %v756_v50 = vmul.f32 %v3607_v55, %v2175_v28  ;;  %v1269_v17 = vmax.f32 %v1013_v20, 0.0 }
  0xad   : > { %3348 = vst [vmem:[%s3663_s25 + $0xe8] sm:$0xff] %v2701_v63   ;;  %v1015_v21 = vadd.f32 %v3616_v60, %v755_v13  ;;  %v2179_v10 = vunpack.c.l.bf16 %v3705_v48  ;;  %v2180_v2 = vunpack.c.h.bf16 %v3705_v48  ;;  %v757_v5 = vmul.f32 %v3607_v55, %v2176_v56 }
  0xae   : > { %3349 = vst [vmem:[%s3663_s25 + $0xf0] sm:$0xff] %v2706_v40   ;;  %v1270_v12 = vmax.f32 %v1014_v8, 0.0  ;;  %v1016_v14 = vadd.f32 %v3616_v60, %v756_v50  ;;  %v2183_v23 = vunpack.c.l.bf16 %v3708_v47  ;;  %v2711_v49 = vpack.c.bf16 %v1269_v17, %v1268_v11 }
  0xaf   : > { %v1271_v33 = vmax.f32 %v1015_v21, 0.0  ;;  %v758_v29 = vmul.f32 %v3607_v55, %v2179_v10  ;;  %v759_v54 = vmul.f32 %v3607_v55, %v2180_v2  ;;  %v1017_v15 = vadd.f32 %v3616_v60, %v757_v5 }
  0xb0   : > { %v1272_v45 = vmax.f32 %v1016_v14, 0.0  ;;  %v2184_v48 = vunpack.c.h.bf16 %v3708_v47  ;;  %v760_v58 = vmul.f32 %v3607_v55, %v2183_v23  ;;  %3350 = vst [vmem:[%s3663_s25 + $0xf8] sm:$0xff] %v2711_v49   ;;  %v2187_v3 = vunpack.c.l.bf16 %v3711_v44 }
  0xb1   : > { %v2716_v9 = vpack.c.bf16 %v1271_v33, %v1270_v12  ;;  %v1018_v25 = vadd.f32 %v3616_v60, %v758_v29  ;;  %v1019_v4 = vadd.f32 %v3616_v60, %v759_v54  ;;  %v1273_v22 = vmax.f32 %v1017_v15, 0.0 }
  0xb2   : > { %v761_v53 = vmul.f32 %v3607_v55, %v2184_v48  ;;  %v1020_v24 = vadd.f32 %v3616_v60, %v760_v58  ;;  %v2188_v16 = vunpack.c.h.bf16 %v3711_v44  ;;  %v762_v34 = vmul.f32 %v3607_v55, %v2187_v3 }
  0xb3   : > { %3351 = vst [vmem:[%s3663_s25 + $0x100] sm:$0xff] %v2716_v9   ;;  %v1274_v47 = vmax.f32 %v1018_v25, 0.0  ;;  %v1275_v19 = vmax.f32 %v1019_v4, 0.0  ;;  %v2191_v18 = vunpack.c.l.bf16 %v3714_v43  ;;  %v2721_v52 = vpack.c.bf16 %v1273_v22, %v1272_v45 }
  0xb4   : > { %v1021_v46 = vadd.f32 %v3616_v60, %v761_v53  ;;  %v1276_v27 = vmax.f32 %v1020_v24, 0.0  ;;  %v763_v6 = vmul.f32 %v3607_v55, %v2188_v16  ;;  %v1022_v0 = vadd.f32 %v3616_v60, %v762_v34 }
  0xb5   : > { %v2726_v59 = vpack.c.bf16 %v1275_v19, %v1274_v47  ;;  %v2192_v1 = vunpack.c.h.bf16 %v3714_v43  ;;  %v764_v44 = vmul.f32 %v3607_v55, %v2191_v18  ;;  %3352 = vst [vmem:[%s3663_s25 + $0x108] sm:$0xff] %v2721_v52   ;;  %v2195_v39 = vunpack.c.l.bf16 %v3717_v42 }
  0xb6   : > { %v1277_v7 = vmax.f32 %v1021_v46, 0.0  ;;  %v1023_v61 = vadd.f32 %v3616_v60, %v763_v6  ;;  %v2196_v51 = vunpack.c.h.bf16 %v3717_v42  ;;  %v1278_v62 = vmax.f32 %v1022_v0, 0.0 }
  0xb7   : > { %3353 = vst [vmem:[%s3663_s25 + $0x110] sm:$0xff] %v2726_v59   ;;  %v765_v57 = vmul.f32 %v3607_v55, %v2192_v1  ;;  %v1024_v28 = vadd.f32 %v3616_v60, %v764_v44  ;;  %v2199_v63 = vunpack.c.l.bf16 %v3720_v41  ;;  %v766_v11 = vmul.f32 %v3607_v55, %v2195_v39 }
  0xb8   : > { %v2731_v43 = vpack.c.bf16 %v1277_v7, %v1276_v27  ;;  %v1279_v20 = vmax.f32 %v1023_v61, 0.0  ;;  %v767_v13 = vmul.f32 %v3607_v55, %v2196_v51  ;;  %v2200_v42 = vunpack.c.h.bf16 %v3720_v41 }
  0xb9   : > { %v1025_v40 = vadd.f32 %v3616_v60, %v765_v57  ;;  %v1280_v8 = vmax.f32 %v1024_v28, 0.0  ;;  %v768_v56 = vmul.f32 %v3607_v55, %v2199_v63  ;;  %v1026_v17 = vadd.f32 %v3616_v60, %v766_v11 }
  0xba   : > { %3354 = vst [vmem:[%s3663_s25 + $0x118] sm:$0xff] %v2731_v43   ;;  %v2736_v50 = vpack.c.bf16 %v1279_v20, %v1278_v62  ;;  %v1027_v21 = vadd.f32 %v3616_v60, %v767_v13  ;;  %v2203_v10 = vunpack.c.l.bf16 %v3723_v38  ;;  %v769_v12 = vmul.f32 %v3607_v55, %v2200_v42  ;;  %v4320_v20 = vld [vmem:[%s4928_s1] ss:$0 sm:$0xff] }
  0xbb   : > { %v1281_v2 = vmax.f32 %v1025_v40, 0.0  ;;  %v1028_v5 = vadd.f32 %v3616_v60, %v768_v56  ;;  %v2204_v14 = vunpack.c.h.bf16 %v3723_v38  ;;  %v1282_v41 = vmax.f32 %v1026_v17, 0.0  ;;  %v4330_v42 = vld [vmem:[%s4929_s2] ss:$0 sm:$0xff] }
  0xbc   : > { %3355 = vst [vmem:[%s3663_s25 + $0x120] sm:$0xff] %v2736_v50   ;;  %v1283_v23 = vmax.f32 %v1027_v21, 0.0  ;;  %v770_v49 = vmul.f32 %v3607_v55, %v2203_v10  ;;  %v2207_v33 = vunpack.c.l.bf16 %v3726_v37  ;;  %v1029_v54 = vadd.f32 %v3616_v60, %v769_v12  ;;  %v5129_v10 = vld [vmem:[#allocation2_spill] sm:$0xff] }
  0xbd   : > { %v2741_v29 = vpack.c.bf16 %v1281_v2, %v1280_v8  ;;  %v1284_v15 = vmax.f32 %v1028_v5, 0.0  ;;  %v771_v45 = vmul.f32 %v3607_v55, %v2204_v14  ;;  %v2208_v9 = vunpack.c.h.bf16 %v3726_v37 }
  0xbe   : > { %v2746_v48 = vpack.c.bf16 %v1283_v23, %v1282_v41  ;;  %v1030_v58 = vadd.f32 %v3616_v60, %v770_v49  ;;  %v772_v38 = vmul.f32 %v3607_v55, %v2207_v33  ;;  %v1285_v25 = vmax.f32 %v1029_v54, 0.0 }
  0xbf   : > { %3356 = vst [vmem:[%s3663_s25 + $0x128] sm:$0xff] %v2741_v29   ;;  %v1031_v4 = vadd.f32 %v3616_v60, %v771_v45  ;;  %v2211_v3 = vunpack.c.l.bf16 %v3729_v36  ;;  %v2212_v22 = vunpack.c.h.bf16 %v3729_v36  ;;  %v773_v24 = vmul.f32 %v3607_v55, %v2208_v9  ;;  %v5130_v45 = vld [vmem:[#allocation3_spill] sm:$0xff] }
  0xc0   : > { %3357 = vst [vmem:[%s3663_s25 + $0x130] sm:$0xff] %v2746_v48   ;;  %v1286_v53 = vmax.f32 %v1030_v58, 0.0  ;;  %v1032_v16 = vadd.f32 %v3616_v60, %v772_v38  ;;  %v2215_v47 = vunpack.c.l.bf16 %v3732_v35  ;;  %v2751_v37 = vpack.c.bf16 %v1285_v25, %v1284_v15 }
  0xc1   : > { %v1287_v19 = vmax.f32 %v1031_v4, 0.0  ;;  %v774_v34 = vmul.f32 %v3607_v55, %v2211_v3  ;;  %v775_v18 = vmul.f32 %v3607_v55, %v2212_v22  ;;  %v1033_v52 = vadd.f32 %v3616_v60, %v773_v24 }
  0xc2   : > { %v1288_v46 = vmax.f32 %v1032_v16, 0.0  ;;  %v2216_v36 = vunpack.c.h.bf16 %v3732_v35  ;;  %v776_v27 = vmul.f32 %v3607_v55, %v2215_v47  ;;  %3358 = vst [vmem:[%s3663_s25 + $0x138] sm:$0xff] %v2751_v37   ;;  %v2219_v1 = vunpack.c.l.bf16 %v3735_v32 }
  0xc3   : > { %v2756_v6 = vpack.c.bf16 %v1287_v19, %v1286_v53  ;;  %v1034_v59 = vadd.f32 %v3616_v60, %v774_v34  ;;  %v1035_v0 = vadd.f32 %v3616_v60, %v775_v18  ;;  %v1289_v44 = vmax.f32 %v1033_v52, 0.0  ;;  %v5131_v53 = vld [vmem:[#allocation4_spill] sm:$0xff] }
  0xc4   : > { %v777_v7 = vmul.f32 %v3607_v55, %v2216_v36  ;;  %v1036_v61 = vadd.f32 %v3616_v60, %v776_v27  ;;  %v2220_v39 = vunpack.c.h.bf16 %v3735_v32  ;;  %v778_v62 = vmul.f32 %v3607_v55, %v2219_v1 }
  0xc5   : > { %3359 = vst [vmem:[%s3663_s25 + $0x140] sm:$0xff] %v2756_v6   ;;  %v1290_v35 = vmax.f32 %v1034_v59, 0.0  ;;  %v1291_v51 = vmax.f32 %v1035_v0, 0.0  ;;  %v2223_v57 = vunpack.c.l.bf16 %v3738_v31  ;;  %v2761_v28 = vpack.c.bf16 %v1289_v44, %v1288_v46  ;;  %v5132_v6 = vld [vmem:[#allocation5_spill] sm:$0xff] }
  0xc6   : > { %v1037_v63 = vadd.f32 %v3616_v60, %v777_v7  ;;  %v1292_v43 = vmax.f32 %v1036_v61, 0.0  ;;  %v779_v11 = vmul.f32 %v4320_v20, %v2220_v39  ;;  %v1038_v13 = vadd.f32 %v3616_v60, %v778_v62  ;;  %v5133_v61 = vld [vmem:[#allocation6_spill] sm:$0xff] }
  0xc7   : > { %v2766_v32 = vpack.c.bf16 %v1291_v51, %v1290_v35  ;;  %v2224_v40 = vunpack.c.h.bf16 %v3738_v31  ;;  %v780_v55 = vmul.f32 %v4320_v20, %v2223_v57  ;;  %3360 = vst [vmem:[%s3663_s25 + $0x148] sm:$0xff] %v2761_v28   ;;  %v2227_v50 = vunpack.c.l.bf16 %v3741_v30 }
  0xc8   : > { %v1293_v8 = vmax.f32 %v1037_v63, 0.0  ;;  %v1039_v56 = vadd.f32 %v4330_v42, %v779_v11  ;;  %v2228_v17 = vunpack.c.h.bf16 %v3741_v30  ;;  %v1294_v60 = vmax.f32 %v1038_v13, 0.0 }
  0xc9   : > { %3361 = vst [vmem:[%s3663_s25 + $0x150] sm:$0xff] %v2766_v32   ;;  %v781_v31 = vmul.f32 %v4320_v20, %v2224_v40  ;;  %v1040_v21 = vadd.f32 %v4330_v42, %v780_v55  ;;  %v2231_v2 = vunpack.c.l.bf16 %v5129_v10  ;;  %v782_v14 = vmul.f32 %v4320_v20, %v2227_v50  ;;  %v5134_v55 = vld [vmem:[#allocation7_spill] sm:$0xff] }
  0xca   : > { %v2771_v12 = vpack.c.bf16 %v1293_v8, %v1292_v43  ;;  %v1295_v5 = vmax.f32 %v1039_v56, 0.0  ;;  %v783_v41 = vmul.f32 %v4320_v20, %v2228_v17  ;;  %v2232_v30 = vunpack.c.h.bf16 %v5129_v10 }
  0xcb   : > { %v1041_v23 = vadd.f32 %v4330_v42, %v781_v31  ;;  %v1296_v49 = vmax.f32 %v1040_v21, 0.0  ;;  %v784_v33 = vmul.f32 %v4320_v20, %v2231_v2  ;;  %v1042_v54 = vadd.f32 %v4330_v42, %v782_v14  ;;  %v5135_v2 = vld [vmem:[#allocation8_spill] sm:$0xff] }
  0xcc   : > { %3362 = vst [vmem:[%s3663_s25 + $0x158] sm:$0xff] %v2771_v12   ;;  %v2776_v29 = vpack.c.bf16 %v1295_v5, %v1294_v60  ;;  %v1043_v15 = vadd.f32 %v4330_v42, %v783_v41  ;;  %v2235_v48 = vunpack.c.l.bf16 %v5130_v45  ;;  %v785_v9 = vmul.f32 %v4320_v20, %v2232_v30 }
  0xcd   : > { %v1297_v58 = vmax.f32 %v1041_v23, 0.0  ;;  %v1044_v38 = vadd.f32 %v4330_v42, %v784_v33  ;;  %v2236_v25 = vunpack.c.h.bf16 %v5130_v45  ;;  %v1298_v4 = vmax.f32 %v1042_v54, 0.0  ;;  %v5136_v45 = vld [vmem:[#allocation9_spill] sm:$0xff] }
  0xce   : > { %3363 = vst [vmem:[%s3663_s25 + $0x160] sm:$0xff] %v2776_v29   ;;  %v1299_v3 = vmax.f32 %v1043_v15, 0.0  ;;  %v786_v22 = vmul.f32 %v4320_v20, %v2235_v48  ;;  %v2239_v24 = vunpack.c.l.bf16 %v5131_v53  ;;  %v1045_v47 = vadd.f32 %v4330_v42, %v785_v9 }
  0xcf   : > { %v2781_v16 = vpack.c.bf16 %v1297_v58, %v1296_v49  ;;  %v1300_v37 = vmax.f32 %v1044_v38, 0.0  ;;  %v787_v19 = vmul.f32 %v4320_v20, %v2236_v25  ;;  %v2240_v52 = vunpack.c.h.bf16 %v5131_v53 }
  0xd0   : > { %v2786_v34 = vpack.c.bf16 %v1299_v3, %v1298_v4  ;;  %v1046_v18 = vadd.f32 %v4330_v42, %v786_v22  ;;  %v788_v46 = vmul.f32 %v4320_v20, %v2239_v24  ;;  %v1301_v36 = vmax.f32 %v1045_v47, 0.0  ;;  %v5137_v4 = vld [vmem:[#allocation10_spill] sm:$0xff] }
  0xd1   : > { %3364 = vst [vmem:[%s3663_s25 + $0x168] sm:$0xff] %v2781_v16   ;;  %v1047_v27 = vadd.f32 %v4330_v42, %v787_v19  ;;  %v2243_v59 = vunpack.c.l.bf16 %v5132_v6  ;;  %v2244_v0 = vunpack.c.h.bf16 %v5132_v6  ;;  %v789_v44 = vmul.f32 %v4320_v20, %v2240_v52 }
  0xd2   : > { %3365 = vst [vmem:[%s3663_s25 + $0x170] sm:$0xff] %v2786_v34   ;;  %v1302_v1 = vmax.f32 %v1046_v18, 0.0  ;;  %v1048_v7 = vadd.f32 %v4330_v42, %v788_v46  ;;  %v2247_v39 = vunpack.c.l.bf16 %v5133_v61  ;;  %v2791_v35 = vpack.c.bf16 %v1301_v36, %v1300_v37  ;;  %v5138_v36 = vld [vmem:[#allocation11_spill] sm:$0xff] }
  0xd3   : > { %v1303_v51 = vmax.f32 %v1047_v27, 0.0  ;;  %v790_v62 = vmul.f32 %v4320_v20, %v2243_v59  ;;  %v791_v57 = vmul.f32 %v4320_v20, %v2244_v0  ;;  %v1049_v28 = vadd.f32 %v4330_v42, %v789_v44 }
  0xd4   : > { %v1304_v63 = vmax.f32 %v1048_v7, 0.0  ;;  %v2248_v43 = vunpack.c.h.bf16 %v5133_v61  ;;  %v792_v11 = vmul.f32 %v4320_v20, %v2247_v39  ;;  %3366 = vst [vmem:[%s3663_s25 + $0x178] sm:$0xff] %v2791_v35   ;;  %v2251_v8 = vunpack.c.l.bf16 %v5134_v55  ;;  %v5139_v39 = vld [vmem:[#allocation12_spill] sm:$0xff] }
  0xd5   : > { %v2796_v32 = vpack.c.bf16 %v1303_v51, %v1302_v1  ;;  %v1050_v13 = vadd.f32 %v4330_v42, %v790_v62  ;;  %v1051_v40 = vadd.f32 %v4330_v42, %v791_v57  ;;  %v1305_v56 = vmax.f32 %v1049_v28, 0.0 }
  0xd6   : > { %v793_v50 = vmul.f32 %v4320_v20, %v2248_v43  ;;  %v1052_v17 = vadd.f32 %v4330_v42, %v792_v11  ;;  %v2252_v60 = vunpack.c.h.bf16 %v5134_v55  ;;  %v794_v10 = vmul.f32 %v4320_v20, %v2251_v8  ;;  %v5140_v55 = vld [vmem:[#allocation13_spill] sm:$0xff] }
  0xd7   : > { %3367 = vst [vmem:[%s3663_s25 + $0x180] sm:$0xff] %v2796_v32   ;;  %v1306_v31 = vmax.f32 %v1050_v13, 0.0  ;;  %v1307_v21 = vmax.f32 %v1051_v40, 0.0  ;;  %v2255_v12 = vunpack.c.l.bf16 %v5135_v2  ;;  %v2801_v5 = vpack.c.bf16 %v1305_v56, %v1304_v63 }
  0xd8   : > { %v1053_v14 = vadd.f32 %v4330_v42, %v793_v50  ;;  %v1308_v41 = vmax.f32 %v1052_v17, 0.0  ;;  %v795_v23 = vmul.f32 %v4320_v20, %v2252_v60  ;;  %v1054_v30 = vadd.f32 %v4330_v42, %v794_v10 }
  0xd9   : > { %v2806_v49 = vpack.c.bf16 %v1307_v21, %v1306_v31  ;;  %v2256_v33 = vunpack.c.h.bf16 %v5135_v2  ;;  %v796_v29 = vmul.f32 %v4320_v20, %v2255_v12  ;;  %3368 = vst [vmem:[%s3663_s25 + $0x188] sm:$0xff] %v2801_v5   ;;  %v2259_v48 = vunpack.c.l.bf16 %v5136_v45  ;;  %v5141_v31 = vld [vmem:[#allocation14_spill] sm:$0xff] }
  0xda   : > { %v1309_v54 = vmax.f32 %v1053_v14, 0.0  ;;  %v1055_v15 = vadd.f32 %v4330_v42, %v795_v23  ;;  %v2260_v58 = vunpack.c.h.bf16 %v5136_v45  ;;  %v1310_v9 = vmax.f32 %v1054_v30, 0.0 }
  0xdb   : > { %3369 = vst [vmem:[%s3663_s25 + $0x190] sm:$0xff] %v2806_v49   ;;  %v797_v38 = vmul.f32 %v4320_v20, %v2256_v33  ;;  %v1056_v25 = vadd.f32 %v4330_v42, %v796_v29  ;;  %v2263_v3 = vunpack.c.l.bf16 %v5137_v4  ;;  %v798_v24 = vmul.f32 %v4320_v20, %v2259_v48 }
  0xdc   : > { %v2811_v22 = vpack.c.bf16 %v1309_v54, %v1308_v41  ;;  %v1311_v53 = vmax.f32 %v1055_v15, 0.0  ;;  %v799_v16 = vmul.f32 %v4320_v20, %v2260_v58  ;;  %v2264_v19 = vunpack.c.h.bf16 %v5137_v4  ;;  %v5142_v54 = vld [vmem:[#allocation15_spill] sm:$0xff] }
  0xdd   : > { %v1057_v47 = vadd.f32 %v4330_v42, %v797_v38  ;;  %v1312_v37 = vmax.f32 %v1056_v25, 0.0  ;;  %v800_v34 = vmul.f32 %v4320_v20, %v2263_v3  ;;  %v1058_v52 = vadd.f32 %v4330_v42, %v798_v24  ;;  %v5143_v3 = vld [vmem:[#allocation16_spill] sm:$0xff] }
  0xde   : > { %3370 = vst [vmem:[%s3663_s25 + $0x198] sm:$0xff] %v2811_v22   ;;  %v2816_v18 = vpack.c.bf16 %v1311_v53, %v1310_v9  ;;  %v1059_v46 = vadd.f32 %v4330_v42, %v799_v16  ;;  %v2267_v27 = vunpack.c.l.bf16 %v5138_v36  ;;  %v801_v59 = vmul.f32 %v4320_v20, %v2264_v19 }
  0xdf   : > { %v1313_v6 = vmax.f32 %v1057_v47, 0.0  ;;  %v1060_v0 = vadd.f32 %v4330_v42, %v800_v34  ;;  %v2268_v1 = vunpack.c.h.bf16 %v5138_v36  ;;  %v1314_v44 = vmax.f32 %v1058_v52, 0.0  ;;  %v5144_v36 = vld [vmem:[#allocation17_spill] sm:$0xff] }
  0xe0   : > { %3371 = vst [vmem:[%s3663_s25 + $0x1a0] sm:$0xff] %v2816_v18   ;;  %v1315_v7 = vmax.f32 %v1059_v46, 0.0  ;;  %v802_v61 = vmul.f32 %v4320_v20, %v2267_v27  ;;  %v2271_v35 = vunpack.c.l.bf16 %v5139_v39  ;;  %v1061_v62 = vadd.f32 %v4330_v42, %v801_v59 }
  0xe1   : > { %v2821_v51 = vpack.c.bf16 %v1313_v6, %v1312_v37  ;;  %v1316_v57 = vmax.f32 %v1060_v0, 0.0  ;;  %v803_v28 = vmul.f32 %v4320_v20, %v2268_v1  ;;  %v2272_v11 = vunpack.c.h.bf16 %v5139_v39 }
  0xe2   : > { %v2826_v63 = vpack.c.bf16 %v1315_v7, %v1314_v44  ;;  %v1062_v43 = vadd.f32 %v4330_v42, %v802_v61  ;;  %v804_v32 = vmul.f32 %v4320_v20, %v2271_v35  ;;  %v1317_v13 = vmax.f32 %v1061_v62, 0.0  ;;  %v5145_v44 = vld [vmem:[#allocation18_spill] sm:$0xff] }
  0xe3   : > { %3372 = vst [vmem:[%s3663_s25 + $0x1a8] sm:$0xff] %v2821_v51   ;;  %v1063_v40 = vadd.f32 %v4330_v42, %v803_v28  ;;  %v2275_v8 = vunpack.c.l.bf16 %v5140_v55  ;;  %v2276_v56 = vunpack.c.h.bf16 %v5140_v55  ;;  %v805_v17 = vmul.f32 %v4320_v20, %v2272_v11 }
  0xe4   : > { %3373 = vst [vmem:[%s3663_s25 + $0x1b0] sm:$0xff] %v2826_v63   ;;  %v1318_v50 = vmax.f32 %v1062_v43, 0.0  ;;  %v1064_v60 = vadd.f32 %v4330_v42, %v804_v32  ;;  %v2279_v21 = vunpack.c.l.bf16 %v5141_v31  ;;  %v2831_v10 = vpack.c.bf16 %v1317_v13, %v1316_v57  ;;  %v5146_v13 = vld [vmem:[#allocation19_spill] sm:$0xff] }
  0xe5   : > { %v1319_v2 = vmax.f32 %v1063_v40, 0.0  ;;  %v806_v12 = vmul.f32 %v4320_v20, %v2275_v8  ;;  %v807_v5 = vmul.f32 %v4320_v20, %v2276_v56  ;;  %v1065_v14 = vadd.f32 %v4330_v42, %v805_v17 }
  0xe6   : > { %v1320_v41 = vmax.f32 %v1064_v60, 0.0  ;;  %v2280_v23 = vunpack.c.h.bf16 %v5141_v31  ;;  %v808_v49 = vmul.f32 %v4320_v20, %v2279_v21  ;;  %3374 = vst [vmem:[%s3663_s25 + $0x1b8] sm:$0xff] %v2831_v10   ;;  %v2283_v15 = vunpack.c.l.bf16 %v5142_v54  ;;  %v5147_v21 = vld [vmem:[#allocation20_spill] sm:$0xff] }
  0xe7   : > { %v2836_v30 = vpack.c.bf16 %v1319_v2, %v1318_v50  ;;  %v1066_v33 = vadd.f32 %v4330_v42, %v806_v12  ;;  %v1067_v29 = vadd.f32 %v4330_v42, %v807_v5  ;;  %v1321_v45 = vmax.f32 %v1065_v14, 0.0 }
  0xe8   : > { %v809_v48 = vmul.f32 %v4320_v20, %v2280_v23  ;;  %v1068_v58 = vadd.f32 %v4330_v42, %v808_v49  ;;  %v2284_v9 = vunpack.c.h.bf16 %v5142_v54  ;;  %v810_v4 = vmul.f32 %v4320_v20, %v2283_v15  ;;  %v5148_v54 = vld [vmem:[#allocation21_spill] sm:$0xff] }
  0xe9   : > { %3375 = vst [vmem:[%s3663_s25 + $0x1c0] sm:$0xff] %v2836_v30   ;;  %v1322_v38 = vmax.f32 %v1066_v33, 0.0  ;;  %v1323_v25 = vmax.f32 %v1067_v29, 0.0  ;;  %v2287_v22 = vunpack.c.l.bf16 %v5143_v3  ;;  %v2841_v53 = vpack.c.bf16 %v1321_v45, %v1320_v41 }
  0xea   : > { %v1069_v24 = vadd.f32 %v4330_v42, %v809_v48  ;;  %v1324_v16 = vmax.f32 %v1068_v58, 0.0  ;;  %v811_v47 = vmul.f32 %v4320_v20, %v2284_v9  ;;  %v1070_v19 = vadd.f32 %v4330_v42, %v810_v4 }
  0xeb   : > { %v2846_v37 = vpack.c.bf16 %v1323_v25, %v1322_v38  ;;  %v2288_v34 = vunpack.c.h.bf16 %v5143_v3  ;;  %v812_v18 = vmul.f32 %v4320_v20, %v2287_v22  ;;  %3376 = vst [vmem:[%s3663_s25 + $0x1c8] sm:$0xff] %v2841_v53   ;;  %v2291_v27 = vunpack.c.l.bf16 %v5144_v36  ;;  %v5149_v38 = vld [vmem:[#allocation22_spill] sm:$0xff] }
  0xec   : > { %v1325_v52 = vmax.f32 %v1069_v24, 0.0  ;;  %v1071_v46 = vadd.f32 %v4330_v42, %v811_v47  ;;  %v2292_v6 = vunpack.c.h.bf16 %v5144_v36  ;;  %v1326_v59 = vmax.f32 %v1070_v19, 0.0 }
  0xed   : > { %3377 = vst [vmem:[%s3663_s25 + $0x1d0] sm:$0xff] %v2846_v37   ;;  %v813_v0 = vmul.f32 %v4320_v20, %v2288_v34  ;;  %v1072_v1 = vadd.f32 %v4330_v42, %v812_v18  ;;  %v2295_v7 = vunpack.c.l.bf16 %v5145_v44  ;;  %v814_v35 = vmul.f32 %v4320_v20, %v2291_v27 }
  0xee   : > { %v2851_v61 = vpack.c.bf16 %v1325_v52, %v1324_v16  ;;  %v1327_v39 = vmax.f32 %v1071_v46, 0.0  ;;  %v815_v51 = vmul.f32 %v4320_v20, %v2292_v6  ;;  %v2296_v28 = vunpack.c.h.bf16 %v5145_v44  ;;  %v5150_v52 = vld [vmem:[#allocation23_spill] sm:$0xff] }
  0xef   : > { %v1073_v62 = vadd.f32 %v4330_v42, %v813_v0  ;;  %v1328_v57 = vmax.f32 %v1072_v1, 0.0  ;;  %v816_v63 = vmul.f32 %v4320_v20, %v2295_v7  ;;  %v1074_v11 = vadd.f32 %v4330_v42, %v814_v35  ;;  %v5151_v7 = vld [vmem:[#allocation24_spill] sm:$0xff] }
  0xf0   : > { %3378 = vst [vmem:[%s3663_s25 + $0x1d8] sm:$0xff] %v2851_v61   ;;  %v2856_v43 = vpack.c.bf16 %v1327_v39, %v1326_v59  ;;  %v1075_v32 = vadd.f32 %v4330_v42, %v815_v51  ;;  %v2299_v40 = vunpack.c.l.bf16 %v5146_v13  ;;  %v817_v8 = vmul.f32 %v4320_v20, %v2296_v28 }
  0xf1   : > { %v1329_v55 = vmax.f32 %v1073_v62, 0.0  ;;  %v1076_v56 = vadd.f32 %v4330_v42, %v816_v63  ;;  %v2300_v50 = vunpack.c.h.bf16 %v5146_v13  ;;  %v1330_v17 = vmax.f32 %v1074_v11, 0.0  ;;  %v5152_v13 = vld [vmem:[#allocation25_spill] sm:$0xff] }
  0xf2   : > { %3379 = vst [vmem:[%s3663_s25 + $0x1e0] sm:$0xff] %v2856_v43   ;;  %v1331_v60 = vmax.f32 %v1075_v32, 0.0  ;;  %v818_v31 = vmul.f32 %v4320_v20, %v2299_v40  ;;  %v2303_v10 = vunpack.c.l.bf16 %v5147_v21  ;;  %v1077_v12 = vadd.f32 %v4330_v42, %v817_v8 }
  0xf3   : > { %v2861_v2 = vpack.c.bf16 %v1329_v55, %v1328_v57  ;;  %v1332_v5 = vmax.f32 %v1076_v56, 0.0  ;;  %v819_v14 = vmul.f32 %v4320_v20, %v2300_v50  ;;  %v2304_v49 = vunpack.c.h.bf16 %v5147_v21 }
  0xf4   : > { %v2866_v41 = vpack.c.bf16 %v1331_v60, %v1330_v17  ;;  %v1078_v23 = vadd.f32 %v4330_v42, %v818_v31  ;;  %v820_v30 = vmul.f32 %v4320_v20, %v2303_v10  ;;  %v1333_v33 = vmax.f32 %v1077_v12, 0.0  ;;  %v5153_v17 = vld [vmem:[#allocation26_spill] sm:$0xff] }
  0xf5   : > { %3380 = vst [vmem:[%s3663_s25 + $0x1e8] sm:$0xff] %v2861_v2   ;;  %v1079_v29 = vadd.f32 %v4330_v42, %v819_v14  ;;  %v2307_v15 = vunpack.c.l.bf16 %v5148_v54  ;;  %v2308_v45 = vunpack.c.h.bf16 %v5148_v54  ;;  %v821_v58 = vmul.f32 %v4320_v20, %v2304_v49 }
  0xf6   : > { %3381 = vst [vmem:[%s3663_s25 + $0x1f0] sm:$0xff] %v2866_v41   ;;  %v1334_v48 = vmax.f32 %v1078_v23, 0.0  ;;  %v1080_v9 = vadd.f32 %v4330_v42, %v820_v30  ;;  %v2311_v25 = vunpack.c.l.bf16 %v5149_v38  ;;  %v2871_v4 = vpack.c.bf16 %v1333_v33, %v1332_v5  ;;  %v5154_v33 = vld [vmem:[#allocation27_spill] sm:$0xff] }
  0xf7   : > { %v1335_v3 = vmax.f32 %v1079_v29, 0.0  ;;  %v822_v22 = vmul.f32 %v4320_v20, %v2307_v15  ;;  %v823_v53 = vmul.f32 %v4320_v20, %v2308_v45  ;;  %v1081_v24 = vadd.f32 %v4330_v42, %v821_v58 }
  0xf8   : > { %v1336_v16 = vmax.f32 %v1080_v9, 0.0  ;;  %v2312_v47 = vunpack.c.h.bf16 %v5149_v38  ;;  %v824_v37 = vmul.f32 %v4320_v20, %v2311_v25  ;;  %3382 = vst [vmem:[%s3663_s25 + $0x1f8] sm:$0xff] %v2871_v4   ;;  %v2315_v46 = vunpack.c.l.bf16 %v5150_v52  ;;  %v5155_v25 = vld [vmem:[#allocation28_spill] sm:$0xff] }
  0xf9   : > { %v2876_v19 = vpack.c.bf16 %v1335_v3, %v1334_v48  ;;  %v1082_v34 = vadd.f32 %v4330_v42, %v822_v22  ;;  %v1083_v18 = vadd.f32 %v4330_v42, %v823_v53  ;;  %v1337_v36 = vmax.f32 %v1081_v24, 0.0 }
  0xfa   : > { %v825_v27 = vmul.f32 %v4320_v20, %v2312_v47  ;;  %v1084_v6 = vadd.f32 %v4330_v42, %v824_v37  ;;  %v2316_v59 = vunpack.c.h.bf16 %v5150_v52  ;;  %v826_v44 = vmul.f32 %v4320_v20, %v2315_v46  ;;  %v5156_v52 = vld [vmem:[#allocation29_spill] sm:$0xff] }
  0xfb   : > { %3383 = vst [vmem:[%s3663_s25 + $0x200] sm:$0xff] %v2876_v19   ;;  %v1338_v0 = vmax.f32 %v1082_v34, 0.0  ;;  %v1339_v1 = vmax.f32 %v1083_v18, 0.0  ;;  %v2319_v61 = vunpack.c.l.bf16 %v5151_v7  ;;  %v2881_v39 = vpack.c.bf16 %v1337_v36, %v1336_v16 }
  0xfc   : > { %v1085_v35 = vadd.f32 %v4330_v42, %v825_v27  ;;  %v1340_v51 = vmax.f32 %v1084_v6, 0.0  ;;  %v827_v62 = vmul.f32 %v4320_v20, %v2316_v59  ;;  %v1086_v28 = vadd.f32 %v4330_v42, %v826_v44 }
  0xfd   : > { %v2886_v57 = vpack.c.bf16 %v1339_v1, %v1338_v0  ;;  %v2320_v63 = vunpack.c.h.bf16 %v5151_v7  ;;  %v828_v43 = vmul.f32 %v4320_v20, %v2319_v61  ;;  %3384 = vst [vmem:[%s3663_s25 + $0x208] sm:$0xff] %v2881_v39   ;;  %v2323_v40 = vunpack.c.l.bf16 %v5152_v13  ;;  %v5157_v0 = vld [vmem:[#allocation30_spill] sm:$0xff] }
  0xfe   : > { %v1341_v11 = vmax.f32 %v1085_v35, 0.0  ;;  %v1087_v32 = vadd.f32 %v4330_v42, %v827_v62  ;;  %v2324_v55 = vunpack.c.h.bf16 %v5152_v13  ;;  %v1342_v8 = vmax.f32 %v1086_v28, 0.0 }
  0xff   : > { %3385 = vst [vmem:[%s3663_s25 + $0x210] sm:$0xff] %v2886_v57   ;;  %v829_v56 = vmul.f32 %v4320_v20, %v2320_v63  ;;  %v1088_v50 = vadd.f32 %v4330_v42, %v828_v43  ;;  %v2327_v60 = vunpack.c.l.bf16 %v5153_v17  ;;  %v830_v10 = vmul.f32 %v4320_v20, %v2323_v40 }
 0x100   : > { %v2891_v31 = vpack.c.bf16 %v1341_v11, %v1340_v51  ;;  %v1343_v21 = vmax.f32 %v1087_v32, 0.0  ;;  %v831_v2 = vmul.f32 %v4320_v20, %v2324_v55  ;;  %v2328_v14 = vunpack.c.h.bf16 %v5153_v17  ;;  %v5158_v11 = vld [vmem:[#allocation31_spill] sm:$0xff] }
 0x101   : > { %v1089_v12 = vadd.f32 %v4330_v42, %v829_v56  ;;  %v1344_v5 = vmax.f32 %v1088_v50, 0.0  ;;  %v832_v41 = vmul.f32 %v4320_v20, %v2327_v60  ;;  %v1090_v49 = vadd.f32 %v4330_v42, %v830_v10  ;;  %v5159_v60 = vld [vmem:[#allocation32_spill] sm:$0xff] }
 0x102   : > { %3386 = vst [vmem:[%s3663_s25 + $0x218] sm:$0xff] %v2891_v31   ;;  %v2896_v23 = vpack.c.bf16 %v1343_v21, %v1342_v8  ;;  %v1091_v30 = vadd.f32 %v4330_v42, %v831_v2  ;;  %v2331_v29 = vunpack.c.l.bf16 %v5154_v33  ;;  %v833_v15 = vmul.f32 %v4320_v20, %v2328_v14 }
 0x103   : > { %v1345_v54 = vmax.f32 %v1089_v12, 0.0  ;;  %v1092_v45 = vadd.f32 %v4330_v42, %v832_v41  ;;  %v2332_v48 = vunpack.c.h.bf16 %v5154_v33  ;;  %v1346_v58 = vmax.f32 %v1090_v49, 0.0  ;;  %v5160_v33 = vld [vmem:[#allocation33_spill] sm:$0xff] }
 0x104   : > { %3387 = vst [vmem:[%s3663_s25 + $0x220] sm:$0xff] %v2896_v23   ;;  %v1347_v9 = vmax.f32 %v1091_v30, 0.0  ;;  %v834_v38 = vmul.f32 %v4320_v20, %v2331_v29  ;;  %v2335_v4 = vunpack.c.l.bf16 %v5155_v25  ;;  %v1093_v22 = vadd.f32 %v4330_v42, %v833_v15 }
 0x105   : > { %v2901_v3 = vpack.c.bf16 %v1345_v54, %v1344_v5  ;;  %v1348_v53 = vmax.f32 %v1092_v45, 0.0  ;;  %v835_v24 = vmul.f32 %v4320_v20, %v2332_v48  ;;  %v2336_v37 = vunpack.c.h.bf16 %v5155_v25 }
 0x106   : > { %v2906_v16 = vpack.c.bf16 %v1347_v9, %v1346_v58  ;;  %v1094_v47 = vadd.f32 %v4330_v42, %v834_v38  ;;  %v836_v19 = vmul.f32 %v4320_v20, %v2335_v4  ;;  %v1349_v34 = vmax.f32 %v1093_v22, 0.0  ;;  %v5161_v58 = vld [vmem:[#allocation34_spill] sm:$0xff] }
 0x107   : > { %3388 = vst [vmem:[%s3663_s25 + $0x228] sm:$0xff] %v2901_v3   ;;  %v1095_v18 = vadd.f32 %v4330_v42, %v835_v24  ;;  %v2339_v46 = vunpack.c.l.bf16 %v5156_v52  ;;  %v2340_v36 = vunpack.c.h.bf16 %v5156_v52  ;;  %v837_v6 = vmul.f32 %v4320_v20, %v2336_v37 }
 0x108   : > { %3389 = vst [vmem:[%s3663_s25 + $0x230] sm:$0xff] %v2906_v16   ;;  %v1350_v27 = vmax.f32 %v1094_v47, 0.0  ;;  %v1096_v59 = vadd.f32 %v4330_v42, %v836_v19  ;;  %v2343_v1 = vunpack.c.l.bf16 %v5157_v0  ;;  %v2911_v44 = vpack.c.bf16 %v1349_v34, %v1348_v53  ;;  %v5162_v34 = vld [vmem:[#allocation35_spill] sm:$0xff] }
 0x109   : > { %v1351_v7 = vmax.f32 %v1095_v18, 0.0  ;;  %v838_v61 = vmul.f32 %v4320_v20, %v2339_v46  ;;  %v839_v39 = vmul.f32 %v4320_v20, %v2340_v36  ;;  %v1097_v35 = vadd.f32 %v4330_v42, %v837_v6 }
 0x10a   : > { %v1352_v51 = vmax.f32 %v1096_v59, 0.0  ;;  %v2344_v62 = vunpack.c.h.bf16 %v5157_v0  ;;  %v840_v57 = vmul.f32 %v4320_v20, %v2343_v1  ;;  %3390 = vst [vmem:[%s3663_s25 + $0x238] sm:$0xff] %v2911_v44   ;;  %v2347_v32 = vunpack.c.l.bf16 %v5158_v11  ;;  %v5163_v1 = vld [vmem:[#allocation36_spill] sm:$0xff] }
 0x10b   : > { %v2916_v28 = vpack.c.bf16 %v1351_v7, %v1350_v27  ;;  %v1098_v63 = vadd.f32 %v4330_v42, %v838_v61  ;;  %v1099_v43 = vadd.f32 %v4330_v42, %v839_v39  ;;  %v1353_v13 = vmax.f32 %v1097_v35, 0.0 }
 0x10c   : > { %v841_v40 = vmul.f32 %v4320_v20, %v2344_v62  ;;  %v1100_v55 = vadd.f32 %v4330_v42, %v840_v57  ;;  %v2348_v8 = vunpack.c.h.bf16 %v5158_v11  ;;  %v842_v17 = vmul.f32 %v4320_v20, %v2347_v32  ;;  %v5164_v11 = vld [vmem:[#allocation37_spill] sm:$0xff] }
 0x10d   : > { %3391 = vst [vmem:[%s3663_s25 + $0x240] sm:$0xff] %v2916_v28   ;;  %v1354_v56 = vmax.f32 %v1098_v63, 0.0  ;;  %v1355_v50 = vmax.f32 %v1099_v43, 0.0  ;;  %v2351_v31 = vunpack.c.l.bf16 %v5159_v60  ;;  %v2921_v21 = vpack.c.bf16 %v1353_v13, %v1352_v51 }
 0x10e   : > { %v1101_v10 = vadd.f32 %v4330_v42, %v841_v40  ;;  %v1356_v2 = vmax.f32 %v1100_v55, 0.0  ;;  %v843_v12 = vmul.f32 %v4320_v20, %v2348_v8  ;;  %v1102_v14 = vadd.f32 %v4330_v42, %v842_v17 }
 0x10f   : > { %v2926_v5 = vpack.c.bf16 %v1355_v50, %v1354_v56  ;;  %v2352_v41 = vunpack.c.h.bf16 %v5159_v60  ;;  %v844_v23 = vmul.f32 %v4320_v20, %v2351_v31  ;;  %3392 = vst [vmem:[%s3663_s25 + $0x248] sm:$0xff] %v2921_v21   ;;  %v2355_v29 = vunpack.c.l.bf16 %v5160_v33  ;;  %v5165_v56 = vld [vmem:[#allocation38_spill] sm:$0xff] }
 0x110   : > { %v1357_v49 = vmax.f32 %v1101_v10, 0.0  ;;  %v1103_v30 = vadd.f32 %v4330_v42, %v843_v12  ;;  %v2356_v54 = vunpack.c.h.bf16 %v5160_v33  ;;  %v1358_v15 = vmax.f32 %v1102_v14, 0.0 }
 0x111   : > { %3393 = vst [vmem:[%s3663_s25 + $0x250] sm:$0xff] %v2926_v5   ;;  %v845_v45 = vmul.f32 %v4320_v20, %v2352_v41  ;;  %v1104_v48 = vadd.f32 %v4330_v42, %v844_v23  ;;  %v2359_v9 = vunpack.c.l.bf16 %v5161_v58  ;;  %v846_v4 = vmul.f32 %v4320_v20, %v2355_v29 }
 0x112   : > { %v2931_v38 = vpack.c.bf16 %v1357_v49, %v1356_v2  ;;  %v1359_v25 = vmax.f32 %v1103_v30, 0.0  ;;  %v847_v3 = vmul.f32 %v4320_v20, %v2356_v54  ;;  %v2360_v24 = vunpack.c.h.bf16 %v5161_v58  ;;  %v5166_v49 = vld [vmem:[#allocation39_spill] sm:$0xff] }
 0x113   : > { %v1105_v22 = vadd.f32 %v4330_v42, %v845_v45  ;;  %v1360_v53 = vmax.f32 %v1104_v48, 0.0  ;;  %v848_v16 = vmul.f32 %v4320_v20, %v2359_v9  ;;  %v1106_v37 = vadd.f32 %v4330_v42, %v846_v4  ;;  %v5167_v9 = vld [vmem:[#allocation40_spill] sm:$0xff] }
 0x114   : > { %3394 = vst [vmem:[%s3663_s25 + $0x258] sm:$0xff] %v2931_v38   ;;  %v2936_v47 = vpack.c.bf16 %v1359_v25, %v1358_v15  ;;  %v1107_v19 = vadd.f32 %v4330_v42, %v847_v3  ;;  %v2363_v18 = vunpack.c.l.bf16 %v5162_v34  ;;  %v849_v46 = vmul.f32 %v4320_v20, %v2360_v24 }
 0x115   : > { %v1361_v52 = vmax.f32 %v1105_v22, 0.0  ;;  %v1108_v36 = vadd.f32 %v4330_v42, %v848_v16  ;;  %v2364_v27 = vunpack.c.h.bf16 %v5162_v34  ;;  %v1362_v6 = vmax.f32 %v1106_v37, 0.0  ;;  %v5168_v34 = vld [vmem:[#allocation41_spill] sm:$0xff] }
 0x116   : > { %3395 = vst [vmem:[%s3663_s25 + $0x260] sm:$0xff] %v2936_v47   ;;  %v1363_v59 = vmax.f32 %v1107_v19, 0.0  ;;  %v850_v0 = vmul.f32 %v4320_v20, %v2363_v18  ;;  %v2367_v44 = vunpack.c.l.bf16 %v5163_v1  ;;  %v1109_v61 = vadd.f32 %v4330_v42, %v849_v46 }
 0x117   : > { %v2941_v7 = vpack.c.bf16 %v1361_v52, %v1360_v53  ;;  %v1364_v39 = vmax.f32 %v1108_v36, 0.0  ;;  %v851_v35 = vmul.f32 %v4320_v20, %v2364_v27  ;;  %v2368_v57 = vunpack.c.h.bf16 %v5163_v1 }
 0x118   : > { %v2946_v51 = vpack.c.bf16 %v1363_v59, %v1362_v6  ;;  %v1110_v62 = vadd.f32 %v4330_v42, %v850_v0  ;;  %v852_v28 = vmul.f32 %v4320_v20, %v2367_v44  ;;  %v1365_v63 = vmax.f32 %v1109_v61, 0.0  ;;  %v5169_v6 = vld [vmem:[#allocation42_spill] sm:$0xff] }
 0x119   : > { %3396 = vst [vmem:[%s3663_s25 + $0x268] sm:$0xff] %v2941_v7   ;;  %v1111_v43 = vadd.f32 %v4330_v42, %v851_v35  ;;  %v2371_v32 = vunpack.c.l.bf16 %v5164_v11  ;;  %v2372_v13 = vunpack.c.h.bf16 %v5164_v11  ;;  %v853_v55 = vmul.f32 %v4320_v20, %v2368_v57 }
 0x11a   : > { %3397 = vst [vmem:[%s3663_s25 + $0x270] sm:$0xff] %v2946_v51   ;;  %v1366_v40 = vmax.f32 %v1110_v62, 0.0  ;;  %v1112_v8 = vadd.f32 %v4330_v42, %v852_v28  ;;  %v2375_v50 = vunpack.c.l.bf16 %v5165_v56  ;;  %v2951_v17 = vpack.c.bf16 %v1365_v63, %v1364_v39  ;;  %v5170_v63 = vld [vmem:[#allocation43_spill] sm:$0xff] }
 0x11b   : > { %v1367_v60 = vmax.f32 %v1111_v43, 0.0  ;;  %v854_v31 = vmul.f32 %v4320_v20, %v2371_v32  ;;  %v855_v21 = vmul.f32 %v4320_v20, %v2372_v13  ;;  %v1113_v10 = vadd.f32 %v4330_v42, %v853_v55 }
 0x11c   : > { %v1368_v2 = vmax.f32 %v1112_v8, 0.0  ;;  %v2376_v12 = vunpack.c.h.bf16 %v5165_v56  ;;  %v856_v5 = vmul.f32 %v4320_v20, %v2375_v50  ;;  %3398 = vst [vmem:[%s3663_s25 + $0x278] sm:$0xff] %v2951_v17   ;;  %v2379_v30 = vunpack.c.l.bf16 %v5166_v49  ;;  %v5171_v50 = vld [vmem:[#allocation44_spill] sm:$0xff] }
 0x11d   : > { %v2956_v14 = vpack.c.bf16 %v1367_v60, %v1366_v40  ;;  %v1114_v41 = vadd.f32 %v4330_v42, %v854_v31  ;;  %v1115_v23 = vadd.f32 %v4330_v42, %v855_v21  ;;  %v1369_v33 = vmax.f32 %v1113_v10, 0.0 }
 0x11e   : > { %v857_v29 = vmul.f32 %v4320_v20, %v2376_v12  ;;  %v1116_v54 = vadd.f32 %v4330_v42, %v856_v5  ;;  %v2380_v15 = vunpack.c.h.bf16 %v5166_v49  ;;  %v858_v58 = vmul.f32 %v4320_v20, %v2379_v30  ;;  %v5172_v49 = vld [vmem:[#allocation45_spill] sm:$0xff] }
 0x11f   : > { %3399 = vst [vmem:[%s3663_s25 + $0x280] sm:$0xff] %v2956_v14   ;;  %v1370_v45 = vmax.f32 %v1114_v41, 0.0  ;;  %v1371_v48 = vmax.f32 %v1115_v23, 0.0  ;;  %v2383_v38 = vunpack.c.l.bf16 %v5167_v9  ;;  %v2961_v25 = vpack.c.bf16 %v1369_v33, %v1368_v2 }
 0x120   : > { %v1117_v4 = vadd.f32 %v4330_v42, %v857_v29  ;;  %v1372_v3 = vmax.f32 %v1116_v54, 0.0  ;;  %v859_v22 = vmul.f32 %v4320_v20, %v2380_v15  ;;  %v1118_v24 = vadd.f32 %v4330_v42, %v858_v58 }
 0x121   : > { %v2966_v53 = vpack.c.bf16 %v1371_v48, %v1370_v45  ;;  %v2384_v16 = vunpack.c.h.bf16 %v5167_v9  ;;  %v860_v47 = vmul.f32 %v4320_v20, %v2383_v38  ;;  %3400 = vst [vmem:[%s3663_s25 + $0x288] sm:$0xff] %v2961_v25   ;;  %v2387_v18 = vunpack.c.l.bf16 %v5168_v34  ;;  %v5173_v45 = vld [vmem:[#allocation46_spill] sm:$0xff] }
 0x122   : > { %v1373_v37 = vmax.f32 %v1117_v4, 0.0  ;;  %v1119_v19 = vadd.f32 %v4330_v42, %v859_v22  ;;  %v2388_v52 = vunpack.c.h.bf16 %v5168_v34  ;;  %v1374_v46 = vmax.f32 %v1118_v24, 0.0 }
 0x123   : > { %3401 = vst [vmem:[%s3663_s25 + $0x290] sm:$0xff] %v2966_v53   ;;  %v861_v36 = vmul.f32 %v4320_v20, %v2384_v16  ;;  %v1120_v27 = vadd.f32 %v4330_v42, %v860_v47  ;;  %v2391_v59 = vunpack.c.l.bf16 %v5169_v6  ;;  %v862_v44 = vmul.f32 %v4320_v20, %v2387_v18 }
 0x124   : > { %v2971_v0 = vpack.c.bf16 %v1373_v37, %v1372_v3  ;;  %v1375_v1 = vmax.f32 %v1119_v19, 0.0  ;;  %v863_v7 = vmul.f32 %v4320_v20, %v2388_v52  ;;  %v2392_v35 = vunpack.c.h.bf16 %v5169_v6  ;;  %v5174_v37 = vld [vmem:[#allocation47_spill] sm:$0xff] }
 0x125   : > { %v1121_v61 = vadd.f32 %v4330_v42, %v861_v36  ;;  %v1376_v39 = vmax.f32 %v1120_v27, 0.0  ;;  %v864_v51 = vmul.f32 %v4320_v20, %v2391_v59  ;;  %v1122_v57 = vadd.f32 %v4330_v42, %v862_v44  ;;  %v5175_v59 = vld [vmem:[#allocation48_spill] sm:$0xff] }
 0x126   : > { %3402 = vst [vmem:[%s3663_s25 + $0x298] sm:$0xff] %v2971_v0   ;;  %v2976_v62 = vpack.c.bf16 %v1375_v1, %v1374_v46  ;;  %v1123_v28 = vadd.f32 %v4330_v42, %v863_v7  ;;  %v2395_v43 = vunpack.c.l.bf16 %v5170_v63  ;;  %v865_v32 = vmul.f32 %v4320_v20, %v2392_v35 }
 0x127   : > { %v1377_v11 = vmax.f32 %v1121_v61, 0.0  ;;  %v1124_v13 = vadd.f32 %v4330_v42, %v864_v51  ;;  %v2396_v40 = vunpack.c.h.bf16 %v5170_v63  ;;  %v1378_v55 = vmax.f32 %v1122_v57, 0.0  ;;  %v5176_v63 = vld [vmem:[#allocation49_spill] sm:$0xff] }
 0x128   : > { %3403 = vst [vmem:[%s3663_s25 + $0x2a0] sm:$0xff] %v2976_v62   ;;  %v1379_v8 = vmax.f32 %v1123_v28, 0.0  ;;  %v866_v56 = vmul.f32 %v4320_v20, %v2395_v43  ;;  %v2399_v17 = vunpack.c.l.bf16 %v5171_v50  ;;  %v1125_v31 = vadd.f32 %v4330_v42, %v865_v32 }
 0x129   : > { %v2981_v60 = vpack.c.bf16 %v1377_v11, %v1376_v39  ;;  %v1380_v21 = vmax.f32 %v1124_v13, 0.0  ;;  %v867_v10 = vmul.f32 %v4320_v20, %v2396_v40  ;;  %v2400_v5 = vunpack.c.h.bf16 %v5171_v50 }
 0x12a   : > { %v2986_v2 = vpack.c.bf16 %v1379_v8, %v1378_v55  ;;  %v1126_v12 = vadd.f32 %v4330_v42, %v866_v56  ;;  %v868_v14 = vmul.f32 %v4320_v20, %v2399_v17  ;;  %v1381_v41 = vmax.f32 %v1125_v31, 0.0  ;;  %v5177_v55 = vld [vmem:[#allocation50_spill] sm:$0xff] }
 0x12b   : > { %3404 = vst [vmem:[%s3663_s25 + $0x2a8] sm:$0xff] %v2981_v60   ;;  %v1127_v23 = vadd.f32 %v4330_v42, %v867_v10  ;;  %v2403_v30 = vunpack.c.l.bf16 %v5172_v49  ;;  %v2404_v33 = vunpack.c.h.bf16 %v5172_v49  ;;  %v869_v54 = vmul.f32 %v4320_v20, %v2400_v5 }
 0x12c   : > { %3405 = vst [vmem:[%s3663_s25 + $0x2b0] sm:$0xff] %v2986_v2   ;;  %v1382_v29 = vmax.f32 %v1126_v12, 0.0  ;;  %v1128_v15 = vadd.f32 %v4330_v42, %v868_v14  ;;  %v2407_v48 = vunpack.c.l.bf16 %v5173_v45  ;;  %v2991_v58 = vpack.c.bf16 %v1381_v41, %v1380_v21  ;;  %v5178_v41 = vld [vmem:[#allocation51_spill] sm:$0xff] }
 0x12d   : > { %v1383_v9 = vmax.f32 %v1127_v23, 0.0  ;;  %v870_v38 = vmul.f32 %v4320_v20, %v2403_v30  ;;  %v871_v25 = vmul.f32 %v4320_v20, %v2404_v33  ;;  %v1129_v4 = vadd.f32 %v4330_v42, %v869_v54 }
 0x12e   : > { %v1384_v3 = vmax.f32 %v1128_v15, 0.0  ;;  %v2408_v22 = vunpack.c.h.bf16 %v5173_v45  ;;  %v872_v53 = vmul.f32 %v4320_v20, %v2407_v48  ;;  %3406 = vst [vmem:[%s3663_s25 + $0x2b8] sm:$0xff] %v2991_v58   ;;  %v2411_v19 = vunpack.c.l.bf16 %v5174_v37  ;;  %v4691_v45 = vld [vmem:[%s4928_s1] ss:$0 sm:$0xff]  ;;  %v5179_v58 = vld [vmem:[#allocation52_spill] sm:$0xff] }
 0x12f   : > { %v2996_v24 = vpack.c.bf16 %v1383_v9, %v1382_v29  ;;  %v1130_v16 = vadd.f32 %v4330_v42, %v870_v38  ;;  %v1131_v47 = vadd.f32 %v4330_v42, %v871_v25  ;;  %v1385_v34 = vmax.f32 %v1129_v4, 0.0 }
 0x130   : > { %v873_v18 = vmul.f32 %v4320_v20, %v2408_v22  ;;  %v1132_v52 = vadd.f32 %v4330_v42, %v872_v53  ;;  %v2412_v46 = vunpack.c.h.bf16 %v5174_v37  ;;  %v874_v6 = vmul.f32 %v4320_v20, %v2411_v19  ;;  %v4700_v22 = vld [vmem:[%s4929_s2] ss:$0 sm:$0xff] }
 0x131   : > { %3407 = vst [vmem:[%s3663_s25 + $0x2c0] sm:$0xff] %v2996_v24   ;;  %v1386_v36 = vmax.f32 %v1130_v16, 0.0  ;;  %v1387_v27 = vmax.f32 %v1131_v47, 0.0  ;;  %v2415_v0 = vunpack.c.l.bf16 %v5175_v59  ;;  %v3001_v1 = vpack.c.bf16 %v1385_v34, %v1384_v3 }
 0x132   : > { %v1133_v44 = vadd.f32 %v4330_v42, %v873_v18  ;;  %v1388_v7 = vmax.f32 %v1132_v52, 0.0  ;;  %v875_v61 = vmul.f32 %v4320_v20, %v2412_v46  ;;  %v1134_v35 = vadd.f32 %v4330_v42, %v874_v6 }
 0x133   : > { %v3006_v39 = vpack.c.bf16 %v1387_v27, %v1386_v36  ;;  %v2416_v51 = vunpack.c.h.bf16 %v5175_v59  ;;  %v876_v62 = vmul.f32 %v4320_v20, %v2415_v0  ;;  %3408 = vst [vmem:[%s3663_s25 + $0x2c8] sm:$0xff] %v3001_v1   ;;  %v2419_v43 = vunpack.c.l.bf16 %v5176_v63  ;;  %v5181_v36 = vld [vmem:[#allocation54_spill] sm:$0xff] }
 0x134   : > { %v1389_v57 = vmax.f32 %v1133_v44, 0.0  ;;  %v1135_v28 = vadd.f32 %v4330_v42, %v875_v61  ;;  %v2420_v11 = vunpack.c.h.bf16 %v5176_v63  ;;  %v1390_v32 = vmax.f32 %v1134_v35, 0.0 }
 0x135   : > { %3409 = vst [vmem:[%s3663_s25 + $0x2d0] sm:$0xff] %v3006_v39   ;;  %v877_v13 = vmul.f32 %v4320_v20, %v2416_v51  ;;  %v1136_v40 = vadd.f32 %v4330_v42, %v876_v62  ;;  %v2423_v8 = vunpack.c.l.bf16 %v5177_v55  ;;  %v878_v17 = vmul.f32 %v4320_v20, %v2419_v43 }
 0x136   : > { %v3011_v56 = vpack.c.bf16 %v1389_v57, %v1388_v7  ;;  %v1391_v50 = vmax.f32 %v1135_v28, 0.0  ;;  %v879_v60 = vmul.f32 %v4320_v20, %v2420_v11  ;;  %v2424_v10 = vunpack.c.h.bf16 %v5177_v55  ;;  %v5182_v57 = vld [vmem:[#allocation55_spill] sm:$0xff] }
 0x137   : > { %v1137_v31 = vadd.f32 %v4330_v42, %v877_v13  ;;  %v1392_v21 = vmax.f32 %v1136_v40, 0.0  ;;  %v880_v2 = vmul.f32 %v4320_v20, %v2423_v8  ;;  %v1138_v5 = vadd.f32 %v4330_v42, %v878_v17  ;;  %v5183_v8 = vld [vmem:[#allocation56_spill] sm:$0xff] }
 0x138   : > { %3410 = vst [vmem:[%s3663_s25 + $0x2d8] sm:$0xff] %v3011_v56   ;;  %v3016_v12 = vpack.c.bf16 %v1391_v50, %v1390_v32  ;;  %v1139_v14 = vadd.f32 %v4330_v42, %v879_v60  ;;  %v2427_v23 = vunpack.c.l.bf16 %v5178_v41  ;;  %v881_v30 = vmul.f32 %v4320_v20, %v2424_v10 }
 0x139   : > { %v1393_v49 = vmax.f32 %v1137_v31, 0.0  ;;  %v1140_v33 = vadd.f32 %v4330_v42, %v880_v2  ;;  %v2428_v29 = vunpack.c.h.bf16 %v5178_v41  ;;  %v1394_v54 = vmax.f32 %v1138_v5, 0.0  ;;  %v5184_v41 = vld [vmem:[#allocation57_spill] sm:$0xff] }
 0x13a   : > { %3411 = vst [vmem:[%s3663_s25 + $0x2e0] sm:$0xff] %v3016_v12   ;;  %v1395_v15 = vmax.f32 %v1139_v14, 0.0  ;;  %v882_v48 = vmul.f32 %v4691_v45, %v2427_v23  ;;  %v2431_v9 = vunpack.c.l.bf16 %v5179_v58  ;;  %v1141_v20 = vadd.f32 %v4330_v42, %v881_v30  ;;  %v5180_v42 = vld [vmem:[#allocation53_spill] sm:$0xff] }
 0x13b   : > { %v3021_v38 = vpack.c.bf16 %v1393_v49, %v1392_v21  ;;  %v1396_v25 = vmax.f32 %v1140_v33, 0.0  ;;  %v883_v4 = vmul.f32 %v4691_v45, %v2428_v29  ;;  %v2432_v24 = vunpack.c.h.bf16 %v5179_v58 }
 0x13c   : > { %v3026_v3 = vpack.c.bf16 %v1395_v15, %v1394_v54  ;;  %v1142_v53 = vadd.f32 %v4700_v22, %v882_v48  ;;  %v884_v16 = vmul.f32 %v4691_v45, %v2431_v9  ;;  %v1397_v47 = vmax.f32 %v1141_v20, 0.0  ;;  %v5185_v54 = vld [vmem:[#allocation58_spill] sm:$0xff] }
 0x13d   : > { %3412 = vst [vmem:[%s3663_s25 + $0x2e8] sm:$0xff] %v3021_v38   ;;  %v1143_v37 = vadd.f32 %v4700_v22, %v883_v4  ;;  %v2435_v19 = vunpack.c.l.bf16 %v5180_v42  ;;  %v2436_v34 = vunpack.c.h.bf16 %v5180_v42  ;;  %v885_v52 = vmul.f32 %v4691_v45, %v2432_v24 }
 0x13e   : > { %3413 = vst [vmem:[%s3663_s25 + $0x2f0] sm:$0xff] %v3026_v3   ;;  %v1398_v18 = vmax.f32 %v1142_v53, 0.0  ;;  %v1144_v46 = vadd.f32 %v4700_v22, %v884_v16  ;;  %v2439_v27 = vunpack.c.l.bf16 %v5181_v36  ;;  %v3031_v6 = vpack.c.bf16 %v1397_v47, %v1396_v25  ;;  %v5186_v47 = vld [vmem:[#allocation59_spill] sm:$0xff] }
 0x13f   : > { %v1399_v59 = vmax.f32 %v1143_v37, 0.0  ;;  %v886_v0 = vmul.f32 %v4691_v45, %v2435_v19  ;;  %v887_v1 = vmul.f32 %v4691_v45, %v2436_v34  ;;  %v1145_v44 = vadd.f32 %v4700_v22, %v885_v52 }
 0x140   : > { %v1400_v7 = vmax.f32 %v1144_v46, 0.0  ;;  %v2440_v61 = vunpack.c.h.bf16 %v5181_v36  ;;  %v888_v39 = vmul.f32 %v4691_v45, %v2439_v27  ;;  %3414 = vst [vmem:[%s3663_s25 + $0x2f8] sm:$0xff] %v3031_v6   ;;  %v2443_v28 = vunpack.c.l.bf16 %v5182_v57  ;;  %v5187_v27 = vld [vmem:[#allocation60_spill] sm:$0xff] }
 0x141   : > { %v3036_v35 = vpack.c.bf16 %v1399_v59, %v1398_v18  ;;  %v1146_v51 = vadd.f32 %v4700_v22, %v886_v0  ;;  %v1147_v62 = vadd.f32 %v4700_v22, %v887_v1  ;;  %v1401_v63 = vmax.f32 %v1145_v44, 0.0 }
 0x142   : > { %v889_v43 = vmul.f32 %v4691_v45, %v2440_v61  ;;  %v1148_v11 = vadd.f32 %v4700_v22, %v888_v39  ;;  %v2444_v32 = vunpack.c.h.bf16 %v5182_v57  ;;  %v890_v55 = vmul.f32 %v4691_v45, %v2443_v28  ;;  %v5188_v57 = vld [vmem:[#allocation61_spill] sm:$0xff] }
 0x143   : > { %3415 = vst [vmem:[%s3663_s25 + $0x300] sm:$0xff] %v3036_v35   ;;  %v1402_v13 = vmax.f32 %v1146_v51, 0.0  ;;  %v1403_v40 = vmax.f32 %v1147_v62, 0.0  ;;  %v2447_v56 = vunpack.c.l.bf16 %v5183_v8  ;;  %v3041_v50 = vpack.c.bf16 %v1401_v63, %v1400_v7 }
 0x144   : > { %v1149_v17 = vadd.f32 %v4700_v22, %v889_v43  ;;  %v1404_v60 = vmax.f32 %v1148_v11, 0.0  ;;  %v891_v31 = vmul.f32 %v4691_v45, %v2444_v32  ;;  %v1150_v10 = vadd.f32 %v4700_v22, %v890_v55 }
 0x145   : > { %v3046_v21 = vpack.c.bf16 %v1403_v40, %v1402_v13  ;;  %v2448_v2 = vunpack.c.h.bf16 %v5183_v8  ;;  %v892_v12 = vmul.f32 %v4691_v45, %v2447_v56  ;;  %3416 = vst [vmem:[%s3663_s25 + $0x308] sm:$0xff] %v3041_v50   ;;  %v2451_v23 = vunpack.c.l.bf16 %v5184_v41  ;;  %v5189_v13 = vld [vmem:[#allocation62_spill] sm:$0xff] }
 0x146   : > { %v1405_v5 = vmax.f32 %v1149_v17, 0.0  ;;  %v1151_v14 = vadd.f32 %v4700_v22, %v891_v31  ;;  %v2452_v49 = vunpack.c.h.bf16 %v5184_v41  ;;  %v1406_v30 = vmax.f32 %v1150_v10, 0.0 }
 0x147   : > { %3417 = vst [vmem:[%s3663_s25 + $0x310] sm:$0xff] %v3046_v21   ;;  %v893_v33 = vmul.f32 %v4691_v45, %v2448_v2  ;;  %v1152_v29 = vadd.f32 %v4700_v22, %v892_v12  ;;  %v2455_v15 = vunpack.c.l.bf16 %v5185_v54  ;;  %v894_v9 = vmul.f32 %v4691_v45, %v2451_v23 }
 0x148   : > { %v3051_v48 = vpack.c.bf16 %v1405_v5, %v1404_v60  ;;  %v1407_v58 = vmax.f32 %v1151_v14, 0.0  ;;  %v895_v38 = vmul.f32 %v4691_v45, %v2452_v49  ;;  %v2456_v4 = vunpack.c.h.bf16 %v5185_v54  ;;  %v5190_v5 = vld [vmem:[#allocation63_spill] sm:$0xff] }
 0x149   : > { %v1153_v20 = vadd.f32 %v4700_v22, %v893_v33  ;;  %v1408_v25 = vmax.f32 %v1152_v29, 0.0  ;;  %v896_v3 = vmul.f32 %v4691_v45, %v2455_v15  ;;  %v1154_v24 = vadd.f32 %v4700_v22, %v894_v9  ;;  %v5191_v15 = vld [vmem:[#allocation64_spill] sm:$0xff] }
 0x14a   : > { %3418 = vst [vmem:[%s3663_s25 + $0x318] sm:$0xff] %v3051_v48   ;;  %v3056_v53 = vpack.c.bf16 %v1407_v58, %v1406_v30  ;;  %v1155_v16 = vadd.f32 %v4700_v22, %v895_v38  ;;  %v2459_v37 = vunpack.c.l.bf16 %v5186_v47  ;;  %v897_v19 = vmul.f32 %v4691_v45, %v2456_v4 }
 0x14b   : > { %v1409_v42 = vmax.f32 %v1153_v20, 0.0  ;;  %v1156_v34 = vadd.f32 %v4700_v22, %v896_v3  ;;  %v2460_v18 = vunpack.c.h.bf16 %v5186_v47  ;;  %v1410_v52 = vmax.f32 %v1154_v24, 0.0  ;;  %v5192_v47 = vld [vmem:[#allocation65_spill] sm:$0xff] }
 0x14c   : > { %3419 = vst [vmem:[%s3663_s25 + $0x320] sm:$0xff] %v3056_v53   ;;  %v1411_v46 = vmax.f32 %v1155_v16, 0.0  ;;  %v898_v36 = vmul.f32 %v4691_v45, %v2459_v37  ;;  %v2463_v6 = vunpack.c.l.bf16 %v5187_v27  ;;  %v1157_v0 = vadd.f32 %v4700_v22, %v897_v19 }
 0x14d   : > { %v3061_v59 = vpack.c.bf16 %v1409_v42, %v1408_v25  ;;  %v1412_v1 = vmax.f32 %v1156_v34, 0.0  ;;  %v899_v44 = vmul.f32 %v4691_v45, %v2460_v18  ;;  %v2464_v39 = vunpack.c.h.bf16 %v5187_v27 }
 0x14e   : > { %v3066_v7 = vpack.c.bf16 %v1411_v46, %v1410_v52  ;;  %v1158_v61 = vadd.f32 %v4700_v22, %v898_v36  ;;  %v900_v35 = vmul.f32 %v4691_v45, %v2463_v6  ;;  %v1413_v51 = vmax.f32 %v1157_v0, 0.0  ;;  %v5193_v52 = vld [vmem:[#allocation66_spill] sm:$0xff] }
 0x14f   : > { %3420 = vst [vmem:[%s3663_s25 + $0x328] sm:$0xff] %v3061_v59   ;;  %v1159_v62 = vadd.f32 %v4700_v22, %v899_v44  ;;  %v2467_v28 = vunpack.c.l.bf16 %v5188_v57  ;;  %v2468_v63 = vunpack.c.h.bf16 %v5188_v57  ;;  %v901_v11 = vmul.f32 %v4691_v45, %v2464_v39 }
 0x150   : > { %3421 = vst [vmem:[%s3663_s25 + $0x330] sm:$0xff] %v3066_v7   ;;  %v1414_v43 = vmax.f32 %v1158_v61, 0.0  ;;  %v1160_v32 = vadd.f32 %v4700_v22, %v900_v35  ;;  %v2471_v40 = vunpack.c.l.bf16 %v5189_v13  ;;  %v3071_v55 = vpack.c.bf16 %v1413_v51, %v1412_v1  ;;  %v5194_v51 = vld [vmem:[#allocation67_spill] sm:$0xff] }
 0x151   : > { %v1415_v8 = vmax.f32 %v1159_v62, 0.0  ;;  %v902_v56 = vmul.f32 %v4691_v45, %v2467_v28  ;;  %v903_v50 = vmul.f32 %v4691_v45, %v2468_v63  ;;  %v1161_v17 = vadd.f32 %v4700_v22, %v901_v11 }
 0x152   : > { %v1416_v60 = vmax.f32 %v1160_v32, 0.0  ;;  %v2472_v31 = vunpack.c.h.bf16 %v5189_v13  ;;  %v904_v21 = vmul.f32 %v4691_v45, %v2471_v40  ;;  %3422 = vst [vmem:[%s3663_s25 + $0x338] sm:$0xff] %v3071_v55   ;;  %v2475_v14 = vunpack.c.l.bf16 %v5190_v5  ;;  %v5195_v40 = vld [vmem:[#allocation68_spill] sm:$0xff] }
 0x153   : > { %v3076_v10 = vpack.c.bf16 %v1415_v8, %v1414_v43  ;;  %v1162_v2 = vadd.f32 %v4700_v22, %v902_v56  ;;  %v1163_v12 = vadd.f32 %v4700_v22, %v903_v50  ;;  %v1417_v41 = vmax.f32 %v1161_v17, 0.0 }
 0x154   : > { %v905_v23 = vmul.f32 %v4691_v45, %v2472_v31  ;;  %v1164_v49 = vadd.f32 %v4700_v22, %v904_v21  ;;  %v2476_v30 = vunpack.c.h.bf16 %v5190_v5  ;;  %v906_v54 = vmul.f32 %v4691_v45, %v2475_v14  ;;  %v5196_v5 = vld [vmem:[#allocation69_spill] sm:$0xff] }
 0x155   : > { %3423 = vst [vmem:[%s3663_s25 + $0x340] sm:$0xff] %v3076_v10   ;;  %v1418_v33 = vmax.f32 %v1162_v2, 0.0  ;;  %v1419_v29 = vmax.f32 %v1163_v12, 0.0  ;;  %v2479_v48 = vunpack.c.l.bf16 %v5191_v15  ;;  %v3081_v58 = vpack.c.bf16 %v1417_v41, %v1416_v60 }
 0x156   : > { %v1165_v9 = vadd.f32 %v4700_v22, %v905_v23  ;;  %v1420_v38 = vmax.f32 %v1164_v49, 0.0  ;;  %v907_v20 = vmul.f32 %v4691_v45, %v2476_v30  ;;  %v1166_v4 = vadd.f32 %v4700_v22, %v906_v54 }
 0x157   : > { %v3086_v25 = vpack.c.bf16 %v1419_v29, %v1418_v33  ;;  %v2480_v3 = vunpack.c.h.bf16 %v5191_v15  ;;  %v908_v53 = vmul.f32 %v4691_v45, %v2479_v48  ;;  %3424 = vst [vmem:[%s3663_s25 + $0x348] sm:$0xff] %v3081_v58   ;;  %v2483_v37 = vunpack.c.l.bf16 %v5192_v47  ;;  %v5197_v33 = vld [vmem:[#allocation70_spill] sm:$0xff] }
 0x158   : > { %v1421_v24 = vmax.f32 %v1165_v9, 0.0  ;;  %v1167_v16 = vadd.f32 %v4700_v22, %v907_v20  ;;  %v2484_v42 = vunpack.c.h.bf16 %v5192_v47  ;;  %v1422_v19 = vmax.f32 %v1166_v4, 0.0 }
 0x159   : > { %3425 = vst [vmem:[%s3663_s25 + $0x350] sm:$0xff] %v3086_v25   ;;  %v909_v34 = vmul.f32 %v4691_v45, %v2480_v3  ;;  %v1168_v18 = vadd.f32 %v4700_v22, %v908_v53  ;;  %v2487_v46 = vunpack.c.l.bf16 %v5193_v52  ;;  %v910_v6 = vmul.f32 %v4691_v45, %v2483_v37 }
 0x15a   : > { %v3091_v36 = vpack.c.bf16 %v1421_v24, %v1420_v38  ;;  %v1423_v27 = vmax.f32 %v1167_v16, 0.0  ;;  %v911_v59 = vmul.f32 %v4691_v45, %v2484_v42  ;;  %v2488_v44 = vunpack.c.h.bf16 %v5193_v52  ;;  %v5198_v24 = vld [vmem:[#allocation71_spill] sm:$0xff] }
 0x15b   : > { %v1169_v0 = vadd.f32 %v4700_v22, %v909_v34  ;;  %v1424_v1 = vmax.f32 %v1168_v18, 0.0  ;;  %v912_v7 = vmul.f32 %v4691_v45, %v2487_v46  ;;  %v1170_v39 = vadd.f32 %v4700_v22, %v910_v6  ;;  %v5199_v46 = vld [vmem:[#allocation72_spill] sm:$0xff] }
 0x15c   : > { %3426 = vst [vmem:[%s3663_s25 + $0x358] sm:$0xff] %v3091_v36   ;;  %v3096_v61 = vpack.c.bf16 %v1423_v27, %v1422_v19  ;;  %v1171_v35 = vadd.f32 %v4700_v22, %v911_v59  ;;  %v2491_v62 = vunpack.c.l.bf16 %v5194_v51  ;;  %v913_v28 = vmul.f32 %v4691_v45, %v2488_v44 }
 0x15d   : > { %v1425_v57 = vmax.f32 %v1169_v0, 0.0  ;;  %v1172_v63 = vadd.f32 %v4700_v22, %v912_v7  ;;  %v2492_v43 = vunpack.c.h.bf16 %v5194_v51  ;;  %v1426_v11 = vmax.f32 %v1170_v39, 0.0  ;;  %v5200_v51 = vld [vmem:[#allocation73_spill] sm:$0xff] }
 0x15e   : > { %3427 = vst [vmem:[%s3663_s25 + $0x360] sm:$0xff] %v3096_v61   ;;  %v1427_v32 = vmax.f32 %v1171_v35, 0.0  ;;  %v914_v13 = vmul.f32 %v4691_v45, %v2491_v62  ;;  %v2495_v55 = vunpack.c.l.bf16 %v5195_v40  ;;  %v1173_v56 = vadd.f32 %v4700_v22, %v913_v28 }
 0x15f   : > { %v3101_v8 = vpack.c.bf16 %v1425_v57, %v1424_v1  ;;  %v1428_v50 = vmax.f32 %v1172_v63, 0.0  ;;  %v915_v17 = vmul.f32 %v4691_v45, %v2492_v43  ;;  %v2496_v21 = vunpack.c.h.bf16 %v5195_v40 }
 0x160   : > { %v3106_v60 = vpack.c.bf16 %v1427_v32, %v1426_v11  ;;  %v1174_v31 = vadd.f32 %v4700_v22, %v914_v13  ;;  %v916_v10 = vmul.f32 %v4691_v45, %v2495_v55  ;;  %v1429_v2 = vmax.f32 %v1173_v56, 0.0  ;;  %v5201_v11 = vld [vmem:[#allocation74_spill] sm:$0xff] }
 0x161   : > { %3428 = vst [vmem:[%s3663_s25 + $0x368] sm:$0xff] %v3101_v8   ;;  %v1175_v12 = vadd.f32 %v4700_v22, %v915_v17  ;;  %v2499_v14 = vunpack.c.l.bf16 %v5196_v5  ;;  %v2500_v41 = vunpack.c.h.bf16 %v5196_v5  ;;  %v917_v49 = vmul.f32 %v4691_v45, %v2496_v21 }
 0x162   : > { %3429 = vst [vmem:[%s3663_s25 + $0x370] sm:$0xff] %v3106_v60   ;;  %v1430_v23 = vmax.f32 %v1174_v31, 0.0  ;;  %v1176_v30 = vadd.f32 %v4700_v22, %v916_v10  ;;  %v2503_v29 = vunpack.c.l.bf16 %v5197_v33  ;;  %v3111_v54 = vpack.c.bf16 %v1429_v2, %v1428_v50  ;;  %v5202_v2 = vld [vmem:[#allocation75_spill] sm:$0xff] }
 0x163   : > { %v1431_v15 = vmax.f32 %v1175_v12, 0.0  ;;  %v918_v48 = vmul.f32 %v4691_v45, %v2499_v14  ;;  %v919_v58 = vmul.f32 %v4691_v45, %v2500_v41  ;;  %v1177_v9 = vadd.f32 %v4700_v22, %v917_v49 }
 0x164   : > { %v1432_v38 = vmax.f32 %v1176_v30, 0.0  ;;  %v2504_v20 = vunpack.c.h.bf16 %v5197_v33  ;;  %v920_v25 = vmul.f32 %v4691_v45, %v2503_v29  ;;  %3430 = vst [vmem:[%s3663_s25 + $0x378] sm:$0xff] %v3111_v54   ;;  %v2507_v16 = vunpack.c.l.bf16 %v5198_v24  ;;  %v5203_v29 = vld [vmem:[#allocation76_spill] sm:$0xff] }
 0x165   : > { %v3116_v4 = vpack.c.bf16 %v1431_v15, %v1430_v23  ;;  %v1178_v3 = vadd.f32 %v4700_v22, %v918_v48  ;;  %v1179_v53 = vadd.f32 %v4700_v22, %v919_v58  ;;  %v1433_v47 = vmax.f32 %v1177_v9, 0.0 }
 0x166   : > { %v921_v37 = vmul.f32 %v4691_v45, %v2504_v20  ;;  %v1180_v42 = vadd.f32 %v4700_v22, %v920_v25  ;;  %v2508_v19 = vunpack.c.h.bf16 %v5198_v24  ;;  %v922_v52 = vmul.f32 %v4691_v45, %v2507_v16  ;;  %v5204_v24 = vld [vmem:[#allocation77_spill] sm:$0xff] }
 0x167   : > { %3431 = vst [vmem:[%s3663_s25 + $0x380] sm:$0xff] %v3116_v4   ;;  %v1434_v34 = vmax.f32 %v1178_v3, 0.0  ;;  %v1435_v18 = vmax.f32 %v1179_v53, 0.0  ;;  %v2511_v36 = vunpack.c.l.bf16 %v5199_v46  ;;  %v3121_v27 = vpack.c.bf16 %v1433_v47, %v1432_v38 }
 0x168   : > { %v1181_v6 = vadd.f32 %v4700_v22, %v921_v37  ;;  %v1436_v59 = vmax.f32 %v1180_v42, 0.0  ;;  %v923_v0 = vmul.f32 %v4691_v45, %v2508_v19  ;;  %v1182_v44 = vadd.f32 %v4700_v22, %v922_v52 }
 0x169   : > { %v3126_v1 = vpack.c.bf16 %v1435_v18, %v1434_v34  ;;  %v2512_v7 = vunpack.c.h.bf16 %v5199_v46  ;;  %v924_v61 = vmul.f32 %v4691_v45, %v2511_v36  ;;  %3432 = vst [vmem:[%s3663_s25 + $0x388] sm:$0xff] %v3121_v27   ;;  %v2515_v62 = vunpack.c.l.bf16 %v5200_v51  ;;  %v5205_v34 = vld [vmem:[#allocation78_spill] sm:$0xff] }
 0x16a   : > { %v1437_v39 = vmax.f32 %v1181_v6, 0.0  ;;  %v1183_v35 = vadd.f32 %v4700_v22, %v923_v0  ;;  %v2516_v57 = vunpack.c.h.bf16 %v5200_v51  ;;  %v1438_v28 = vmax.f32 %v1182_v44, 0.0 }
 0x16b   : > { %3433 = vst [vmem:[%s3663_s25 + $0x390] sm:$0xff] %v3126_v1   ;;  %v925_v63 = vmul.f32 %v4691_v45, %v2512_v7  ;;  %v1184_v43 = vadd.f32 %v4700_v22, %v924_v61  ;;  %v2519_v32 = vunpack.c.l.bf16 %v5201_v11  ;;  %v926_v55 = vmul.f32 %v4691_v45, %v2515_v62 }
 0x16c   : > { %v3131_v13 = vpack.c.bf16 %v1437_v39, %v1436_v59  ;;  %v1439_v40 = vmax.f32 %v1183_v35, 0.0  ;;  %v927_v8 = vmul.f32 %v4691_v45, %v2516_v57  ;;  %v2520_v17 = vunpack.c.h.bf16 %v5201_v11  ;;  %v5206_v39 = vld [vmem:[#allocation79_spill] sm:$0xff] }
 0x16d   : > { %v1185_v56 = vadd.f32 %v4700_v22, %v925_v63  ;;  %v1440_v50 = vmax.f32 %v1184_v43, 0.0  ;;  %v928_v60 = vmul.f32 %v4691_v45, %v2519_v32  ;;  %v1186_v21 = vadd.f32 %v4700_v22, %v926_v55 }
 0x16e   : > { %3434 = vst [vmem:[%s3663_s25 + $0x398] sm:$0xff] %v3131_v13   ;;  %v3136_v31 = vpack.c.bf16 %v1439_v40, %v1438_v28  ;;  %v1187_v10 = vadd.f32 %v4700_v22, %v927_v8  ;;  %v2523_v12 = vunpack.c.l.bf16 %v5202_v2  ;;  %v929_v14 = vmul.f32 %v4691_v45, %v2520_v17 }
 0x16f   : > { %v1441_v5 = vmax.f32 %v1185_v56, 0.0  ;;  %v1188_v41 = vadd.f32 %v4700_v22, %v928_v60  ;;  %v2524_v23 = vunpack.c.h.bf16 %v5202_v2  ;;  %v1442_v49 = vmax.f32 %v1186_v21, 0.0 }
 0x170   : > { %3435 = vst [vmem:[%s3663_s25 + $0x3a0] sm:$0xff] %v3136_v31   ;;  %v1443_v30 = vmax.f32 %v1187_v10, 0.0  ;;  %v930_v33 = vmul.f32 %v4691_v45, %v2523_v12  ;;  %v2527_v54 = vunpack.c.l.bf16 %v5203_v29  ;;  %v1189_v48 = vadd.f32 %v4700_v22, %v929_v14  ;;  %v5207_v10 = vld [vmem:[#allocation80_spill] sm:$0xff] }
 0x171   : > { %v3141_v15 = vpack.c.bf16 %v1441_v5, %v1440_v50  ;;  %v1444_v58 = vmax.f32 %v1188_v41, 0.0  ;;  %v931_v9 = vmul.f32 %v4691_v45, %v2524_v23  ;;  %v2528_v25 = vunpack.c.h.bf16 %v5203_v29  ;;  %v5208_v23 = vld [vmem:[#allocation81_spill] sm:$0xff] }
 0x172   : > { %v3146_v38 = vpack.c.bf16 %v1443_v30, %v1442_v49  ;;  %v1190_v20 = vadd.f32 %v4700_v22, %v930_v33  ;;  %v932_v4 = vmul.f32 %v4691_v45, %v2527_v54  ;;  %v1445_v3 = vmax.f32 %v1189_v48, 0.0 }
 0x173   : > { %3436 = vst [vmem:[%s3663_s25 + $0x3a8] sm:$0xff] %v3141_v15   ;;  %v1191_v53 = vadd.f32 %v4700_v22, %v931_v9  ;;  %v2531_v16 = vunpack.c.l.bf16 %v5204_v24  ;;  %v2532_v47 = vunpack.c.h.bf16 %v5204_v24  ;;  %v933_v42 = vmul.f32 %v4691_v45, %v2528_v25 }
 0x174   : > { %3437 = vst [vmem:[%s3663_s25 + $0x3b0] sm:$0xff] %v3146_v38   ;;  %v1446_v37 = vmax.f32 %v1190_v20, 0.0  ;;  %v1192_v19 = vadd.f32 %v4700_v22, %v932_v4  ;;  %v2535_v18 = vunpack.c.l.bf16 %v5205_v34  ;;  %v3151_v52 = vpack.c.bf16 %v1445_v3, %v1444_v58 }
 0x175   : > { %v1447_v46 = vmax.f32 %v1191_v53, 0.0  ;;  %v934_v36 = vmul.f32 %v4691_v45, %v2531_v16  ;;  %v935_v27 = vmul.f32 %v4691_v45, %v2532_v47  ;;  %v1193_v6 = vadd.f32 %v4700_v22, %v933_v42 }
 0x176   : > { %v1448_v59 = vmax.f32 %v1192_v19, 0.0  ;;  %v2536_v0 = vunpack.c.h.bf16 %v5205_v34  ;;  %v936_v1 = vmul.f32 %v4691_v45, %v2535_v18  ;;  %3438 = vst [vmem:[%s3663_s25 + $0x3b8] sm:$0xff] %v3151_v52   ;;  %v2539_v35 = vunpack.c.l.bf16 %v5206_v39 }
 0x177   : > { %v3156_v44 = vpack.c.bf16 %v1447_v46, %v1446_v37  ;;  %v1194_v7 = vadd.f32 %v4700_v22, %v934_v36  ;;  %v1195_v61 = vadd.f32 %v4700_v22, %v935_v27  ;;  %v1449_v51 = vmax.f32 %v1193_v6, 0.0 }
 0x178   : > { %v937_v62 = vmul.f32 %v4691_v45, %v2536_v0  ;;  %v1196_v57 = vadd.f32 %v4700_v22, %v936_v1  ;;  %v2540_v28 = vunpack.c.h.bf16 %v5206_v39  ;;  %v938_v11 = vmul.f32 %v4691_v45, %v2539_v35 }
 0x179   : > { %3439 = vst [vmem:[%s3663_s25 + $0x3c0] sm:$0xff] %v3156_v44   ;;  %v1450_v63 = vmax.f32 %v1194_v7, 0.0  ;;  %v1451_v43 = vmax.f32 %v1195_v61, 0.0  ;;  %v2543_v32 = vunpack.c.l.bf16 %v3996_v26  ;;  %v3161_v13 = vpack.c.bf16 %v1449_v51, %v1448_v59 }
 0x17a   : > { %v1197_v40 = vadd.f32 %v4700_v22, %v937_v62  ;;  %v1452_v55 = vmax.f32 %v1196_v57, 0.0  ;;  %v939_v8 = vmul.f32 %v4691_v45, %v2540_v28  ;;  %v1198_v50 = vadd.f32 %v4700_v22, %v938_v11 }
 0x17b   : > { %v3166_v56 = vpack.c.bf16 %v1451_v43, %v1450_v63  ;;  %v2544_v17 = vunpack.c.h.bf16 %v3996_v26  ;;  %v940_v60 = vmul.f32 %v4691_v45, %v2543_v32  ;;  %3440 = vst [vmem:[%s3663_s25 + $0x3c8] sm:$0xff] %v3161_v13   ;;  %v2547_v2 = vunpack.c.l.bf16 %v5207_v10 }
 0x17c   : > { %v1453_v31 = vmax.f32 %v1197_v40, 0.0  ;;  %v1199_v21 = vadd.f32 %v4700_v22, %v939_v8  ;;  %v2548_v12 = vunpack.c.h.bf16 %v5207_v10  ;;  %v1454_v5 = vmax.f32 %v1198_v50, 0.0 }
 0x17d   : > { %3441 = vst [vmem:[%s3663_s25 + $0x3d0] sm:$0xff] %v3166_v56   ;;  %v941_v14 = vmul.f32 %v4691_v45, %v2544_v17  ;;  %v1200_v41 = vadd.f32 %v4700_v22, %v940_v60  ;;  %v2551_v49 = vunpack.c.l.bf16 %v5208_v23  ;;  %v942_v33 = vmul.f32 %v4691_v45, %v2547_v2 }
 0x17e   : > { %v3171_v26 = vpack.c.bf16 %v1453_v31, %v1452_v55  ;;  %v1455_v30 = vmax.f32 %v1199_v21, 0.0  ;;  %v943_v29 = vmul.f32 %v4691_v45, %v2548_v12  ;;  %v2552_v48 = vunpack.c.h.bf16 %v5208_v23 }
 0x17f   : > { %v1201_v54 = vadd.f32 %v4700_v22, %v941_v14  ;;  %v1456_v15 = vmax.f32 %v1200_v41, 0.0  ;;  %v944_v58 = vmul.f32 %v4691_v45, %v2551_v49  ;;  %v1202_v38 = vadd.f32 %v4700_v22, %v942_v33 }
 0x180   : > { %3442 = vst [vmem:[%s3663_s25 + $0x3d8] sm:$0xff] %v3171_v26   ;;  %v3176_v9 = vpack.c.bf16 %v1455_v30, %v1454_v5  ;;  %v1203_v20 = vadd.f32 %v4700_v22, %v943_v29  ;;  %v945_v4 = vmul.f32 %v4691_v45, %v2552_v48 }
 0x181   : > { %v1457_v25 = vmax.f32 %v1201_v54, 0.0  ;;  %v1204_v3 = vadd.f32 %v4700_v22, %v944_v58  ;;  %v1458_v53 = vmax.f32 %v1202_v38, 0.0 }
 0x182   : > { %3443 = vst [vmem:[%s3663_s25 + $0x3e0] sm:$0xff] %v3176_v9   ;;  %v1459_v24 = vmax.f32 %v1203_v20, 0.0  ;;  %v1205_v47 = vadd.f32 %v4700_v22, %v945_v4 }
 0x183   : > { %v3181_v16 = vpack.c.bf16 %v1457_v25, %v1456_v15  ;;  %v1460_v37 = vmax.f32 %v1204_v3, 0.0 }
 0x184   : > { %v3186_v42 = vpack.c.bf16 %v1459_v24, %v1458_v53  ;;  %v1461_v19 = vmax.f32 %v1205_v47, 0.0 }
 0x185   : > { %3444 = vst [vmem:[%s3663_s25 + $0x3e8] sm:$0xff] %v3181_v16  }
 0x186   : > { %3445 = vst [vmem:[%s3663_s25 + $0x3f0] sm:$0xff] %v3186_v42   ;;  %v3191_v34 = vpack.c.bf16 %v1461_v19, %v1460_v37 }
 0x188   : > { %3446 = vst [vmem:[%s3663_s25 + $0x3f8] sm:$0xff] %v3191_v34  }
 0x189 PF: > { %s13_s12 = sadd.s32 1, %s3467_s12  }
 0x18a   : > { %p10_p4 = scmp.ge.s32.totalorder %s13_s12, 4  }
 0x18c   :  { %12 = sbr.rel (!%p10_p4) target bundleno = 1 (0x1), region = 62 }

</bundles_post_ra>
